<compile_context>
chip_gen: v7x
topology: tpu7x:2x2x1
jax: 0.10.0
libtpu: 0.0.40
codegen_flags: <defaults>
</compile_context>

<pallas_src>
import functools

import jax
import jax.numpy as jnp
from jax.experimental import pallas as pl
from jax.experimental.pallas import tpu as pltpu

LANE = 128  # TPU lane width: channel dims are padded to a multiple of this.


# ---------------------------------------------------------------------------
# Kernel
# ---------------------------------------------------------------------------
def dirsage_layer_kernel(fused_final, *refs):
    """One DirSageConv layer; the last layer fuses JK-max + the final Linear.

    grid = (row tiles i, reduction tiles k).  f32 VMEM scratch accumulates the
    unnormalized neighbour sums for the current row tile; the layer epilogue
    (3-slice fused matmul, bias, ReLU, JK max, optional final Linear) runs on
    the last k step.
    """
    if fused_final:
        (x_k_ref, c_ik_ref, ct_ik_ref, x_i_ref, din_ref, dout_ref,
         w_ref, b_ref, jk_ref, lw_ref, lb_ref,
         o_ref, s2d_acc, d2s_acc) = refs
        o_jk_ref = None
    else:
        (x_k_ref, c_ik_ref, ct_ik_ref, x_i_ref, din_ref, dout_ref,
         w_ref, b_ref, jk_ref,
         o_ref, o_jk_ref, s2d_acc, d2s_acc) = refs
        lw_ref = lb_ref = None

    k = pl.program_id(1)

    @pl.when(k == 0)
    def _init():
        s2d_acc[...] = jnp.zeros_like(s2d_acc)
        d2s_acc[...] = jnp.zeros_like(d2s_acc)

    # int8 counts -> bf16 on the VPU (hidden under the counts DMA); both
    # reduction matmuls are bf16 x bf16 on the MXU with f32 accumulation.
    x_k = x_k_ref[...]                              # (tk, C) bf16
    c_ik = c_ik_ref[...].astype(jnp.bfloat16)       # counts[dst_i, src_k]
    ct_ik = ct_ik_ref[...].astype(jnp.bfloat16)     # counts.T[src_i, dst_k]

    # sum over src of counts[dst, src] * x[src]  (rows = this dst tile)
    s2d_acc[...] += jnp.dot(c_ik, x_k, preferred_element_type=jnp.float32)
    # sum over dst of counts[dst, src] * x[dst]  (rows = this src tile)
    d2s_acc[...] += jnp.dot(ct_ik, x_k, preferred_element_type=jnp.float32)

    @pl.when(k == pl.num_programs(1) - 1)
    def _finalize():
        c_in = x_i_ref.shape[-1]
        agg_s2d = s2d_acc[...] * din_ref[...]       # mean over in-neighbours
        agg_d2s = d2s_acc[...] * dout_ref[...]      # mean over out-neighbours
        # Three dots on static slices of the stacked weight (no (tm, 3C) concat
        # temp).  alpha / bias sums are pre-folded by the wrapper.  This is a
        # once-per-row-tile epilogue, so keeping it in f32 is essentially free.
        h = jnp.dot(x_i_ref[...].astype(jnp.float32), w_ref[0:c_in, :],
                    preferred_element_type=jnp.float32)
        h += jnp.dot(agg_s2d, w_ref[c_in:2 * c_in, :],
                     preferred_element_type=jnp.float32)
        h += jnp.dot(agg_d2s, w_ref[2 * c_in:3 * c_in, :],
                     preferred_element_type=jnp.float32)
        h = jnp.maximum(h + b_ref[...], 0.0)        # ReLU (jk='max' => every layer)
        xm = jnp.maximum(jk_ref[...], h)            # fused running JK max
        if fused_final:
            o_ref[...] = jnp.dot(xm, lw_ref[...],
                                 preferred_element_type=jnp.float32) + lb_ref[...]
        else:
            o_ref[...] = h.astype(o_ref.dtype)      # bf16 activations for next layer
            o_jk_ref[...] = xm                      # aliased onto the jk input buffer


# ---------------------------------------------------------------------------
# Wrappers
# ---------------------------------------------------------------------------
def dirsage_layer(x, counts, counts_t, din_inv, dout_inv, w_stacked, b_sum,
                  jk_run, final=None, *, tm=512, tk=512):
    """Launch one DirSageConv layer.

    Returns (h_bf16, jk_new_f32) for intermediate layers, or the final
    (n, d_out) f32 output when `final=(lin_w, lin_b)` fuses JK + the Linear.
    """
    n, c_in = x.shape
    c_out = w_stacked.shape[1]
    assert n % tm == 0 and n % tk == 0
    fused_final = final is not None

    in_specs = [
        pl.BlockSpec((tk, c_in), lambda i, k: (k, 0)),         # x rows (reduction)
        pl.BlockSpec((tm, tk), lambda i, k: (i, k)),           # counts[i, k]   (int8)
        pl.BlockSpec((tm, tk), lambda i, k: (i, k)),           # counts_T[i, k] (int8)
        pl.BlockSpec((tm, c_in), lambda i, k: (i, 0)),         # x rows (self term)
        pl.BlockSpec((tm, 1), lambda i, k: (i, 0)),            # 1 / in_deg
        pl.BlockSpec((tm, 1), lambda i, k: (i, 0)),            # 1 / out_deg
        pl.BlockSpec((3 * c_in, c_out), lambda i, k: (0, 0)),  # stacked weight (f32)
        pl.BlockSpec((1, c_out), lambda i, k: (0, 0)),         # pre-summed bias
        pl.BlockSpec((tm, c_out), lambda i, k: (i, 0)),        # running JK max (f32)
    ]
    args = [x, counts, counts_t, x, din_inv, dout_inv, w_stacked, b_sum, jk_run]

    if fused_final:
        lin_w, lin_b = final
        d_final = lin_w.shape[1]
        in_specs += [
            pl.BlockSpec((c_out, d_final), lambda i, k: (0, 0)),   # final Linear W
            pl.BlockSpec((1, d_final), lambda i, k: (0, 0)),       # final Linear b
        ]
        args += [lin_w, lin_b]
        out_shape = jax.ShapeDtypeStruct((n, d_final), jnp.float32)
        out_specs = pl.BlockSpec((tm, d_final), lambda i, k: (i, 0))
        io_aliases = {}
    else:
        out_shape = (jax.ShapeDtypeStruct((n, c_out), jnp.bfloat16),   # h for next layer
                     jax.ShapeDtypeStruct((n, c_out), jnp.float32))    # updated JK max
        out_specs = (pl.BlockSpec((tm, c_out), lambda i, k: (i, 0)),
                     pl.BlockSpec((tm, c_out), lambda i, k: (i, 0)))
        io_aliases = {8: 1}  # jk_run HBM buffer is reused for the updated JK max

    return pl.pallas_call(
        functools.partial(dirsage_layer_kernel, fused_final),
        out_shape=out_shape,
        grid=(n // tm, n // tk),
        in_specs=in_specs,
        out_specs=out_specs,
        scratch_shapes=[pltpu.VMEM((tm, c_in), jnp.float32),
                        pltpu.VMEM((tm, c_in), jnp.float32)],
        input_output_aliases=io_aliases,
        compiler_params=pltpu.CompilerParams(
            dimension_semantics=("parallel", "arbitrary"),
            vmem_limit_bytes=32 * 1024 * 1024),
    )(*args)


@functools.partial(jax.jit, static_argnames=("tm", "tk"))
def dirsage_forward(x, counts, counts_t, din_inv, dout_inv, layer_params,
                    lin_w, lin_b, alpha, *, tm=512, tk=512):
    n = x.shape[0]
    hid = layer_params[0]["w_self"].shape[1]
    # Running JK-max over (post-ReLU, hence >= 0) layer outputs.
    jk_run = jnp.zeros((n, hid), jnp.float32)
    h = x.astype(jnp.bfloat16)                 # bf16 activation stream in HBM
    n_layers = len(layer_params)
    for li, p in enumerate(layer_params):
        # Fold alpha into one stacked weight + pre-summed bias (single fused epilogue).
        w_stacked = jnp.concatenate(
            [p["w_self"], (1.0 - alpha) * p["w_s2d"], alpha * p["w_d2s"]], axis=0)
        b_sum = p["b_self"] + (1.0 - alpha) * p["b_s2d"] + alpha * p["b_d2s"]
        if li == n_layers - 1:
            h = dirsage_layer(h, counts, counts_t, din_inv, dout_inv, w_stacked,
                              b_sum, jk_run, final=(lin_w, lin_b), tm=tm, tk=tk)
        else:
            h, jk_run = dirsage_layer(h, counts, counts_t, din_inv, dout_inv,
                                      w_stacked, b_sum, jk_run, tm=tm, tk=tk)
    return h


# ---------------------------------------------------------------------------
# Parameter init (deterministic, PyTorch-Linear-style uniform) + graph setup
# ---------------------------------------------------------------------------
def _linear_params(key, d_in, d_out):
    kw, kb = jax.random.split(key)
    bound = 1.0 / (d_in ** 0.5)
    w = jax.random.uniform(kw, (d_in, d_out), jnp.float32, -bound, bound)  # [in, out]
    b = jax.random.uniform(kb, (1, d_out), jnp.float32, -bound, bound)
    return w, b


def make_dirsage_params(key, in_ch, hidden, out_ch, num_layers=3):
    layers = []
    dims = [in_ch] + [hidden] * num_layers
    for i in range(num_layers):
        key, k1, k2, k3 = jax.random.split(key, 4)
        w_self, b_self = _linear_params(k1, dims[i], dims[i + 1])
        w_s2d, b_s2d = _linear_params(k2, dims[i], dims[i + 1])
        w_d2s, b_d2s = _linear_params(k3, dims[i], dims[i + 1])
        layers.append(dict(w_self=w_self, b_self=b_self,
                           w_s2d=w_s2d, b_s2d=b_s2d,
                           w_d2s=w_d2s, b_d2s=b_d2s))
    key, kl = jax.random.split(key)
    lin_w, lin_b = _linear_params(kl, hidden, out_ch)
    return layers, lin_w, lin_b


def build_graph_operators(edge_index, num_nodes):
    """Edge-count matrix + reciprocal degrees (matches PyG SAGEConv aggr='mean')."""
    src, dst = edge_index[0], edge_index[1]
    ones = jnp.ones(src.shape[0], jnp.float32)
    counts = jnp.zeros((num_nodes, num_nodes), jnp.float32).at[dst, src].add(ones)
    in_deg = counts.sum(axis=1, keepdims=True)       # edges into each node
    out_deg = counts.sum(axis=0, keepdims=True).T    # edges out of each node
    din_inv = 1.0 / jnp.maximum(in_deg, 1.0)
    dout_inv = 1.0 / jnp.maximum(out_deg, 1.0)
    return counts, din_inv, dout_inv


def _round_up(v, m):
    return (v + m - 1) // m * m


def _pad2(a, rows, cols):
    return jnp.pad(a, ((0, rows - a.shape[0]), (0, cols - a.shape[1])))


# ---------------------------------------------------------------------------
# Pure-JAX reference (for correctness check)
# ---------------------------------------------------------------------------
def reference_forward(x, counts, layers, lin_w, lin_b, alpha):
    in_deg = counts.sum(axis=1, keepdims=True)
    out_deg = counts.sum(axis=0, keepdims=True).T
    a_s2d = counts / jnp.maximum(in_deg, 1.0)
    a_d2s = counts.T / jnp.maximum(out_deg, 1.0)
    xs = []
    h = x
    for p in layers:
        hs = h @ p["w_self"] + p["b_self"]
        h1 = (a_s2d @ h) @ p["w_s2d"] + p["b_s2d"]
        h2 = (a_d2s @ h) @ p["w_d2s"] + p["b_d2s"]
        h = jnp.maximum(hs + (1 - alpha) * h1 + alpha * h2, 0.0)
        xs.append(h)
    xm = xs[0]
    for t in xs[1:]:
        xm = jnp.maximum(xm, t)
    return xm @ lin_w + lin_b


# ---------------------------------------------------------------------------
if __name__ == "__main__":
    N, E = 200, 600
    IN_CH, HIDDEN, OUT_CH = 8, 32, 8
    NUM_LAYERS = 3
    ALPHA = 0.5        # alpha parameter (requires_grad=False, value 1/2)
    TILE = 128         # small tile so the 2x2 grid / k-reduction path is exercised

    key = jax.random.PRNGKey(0)
    kx, ksrc, kdst, kp = jax.random.split(key, 4)

    x = jax.random.normal(kx, (N, IN_CH), jnp.float32)
    edge_index = jnp.stack([
        jax.random.randint(ksrc, (E,), 0, N),
        jax.random.randint(kdst, (E,), 0, N),
    ], axis=0)

    counts, din_inv, dout_inv = build_graph_operators(edge_index, N)
    layers, lin_w, lin_b = make_dirsage_params(kp, IN_CH, HIDDEN, OUT_CH, NUM_LAYERS)

    # ---- pad to TPU-friendly shapes (lane-dense channels, tile-divisible N) ----
    n_p = _round_up(N, TILE)
    cin_p = _round_up(IN_CH, LANE)
    hid_p = _round_up(HIDDEN, LANE)
    out_p = _round_up(OUT_CH, LANE)

    # int8 counts are exact only for <= 127 parallel edges between a node pair.
    assert float(counts.max()) <= 127.0, "edge multiplicity too large for int8 counts"
    counts_p = _pad2(counts, n_p, n_p)
    counts_i8 = counts_p.astype(jnp.int8)
    counts_t_i8 = counts_p.T.astype(jnp.int8)      # precomputed transpose (no in-kernel vxpose)
    x_p = _pad2(x, n_p, cin_p)
    din_p = _pad2(din_inv, n_p, 1)
    dout_p = _pad2(dout_inv, n_p, 1)

    layers_p = []
    d_in = cin_p
    for p in layers:
        layers_p.append({k: _pad2(v, 1 if k.startswith("b") else d_in, hid_p)
                         for k, v in p.items()})
        d_in = hid_p
    lin_w_p = _pad2(lin_w, hid_p, out_p)
    lin_b_p = _pad2(lin_b, 1, out_p)

    # NOTE: padded rows carry h = ReLU(b) != 0 through JK / the final linear;
    # they are sliced off below, so never use out_full unsliced.
    out_full = dirsage_forward(x_p, counts_i8, counts_t_i8, din_p, dout_p,
                               layers_p, lin_w_p, lin_b_p, ALPHA, tm=TILE, tk=TILE)
    out_full = jax.block_until_ready(out_full)
    out = out_full[:N, :OUT_CH]

    ref = reference_forward(x, counts, layers, lin_w, lin_b, ALPHA)
    assert out.shape == (N, OUT_CH)
    # bf16 activation stream => loosened tolerance vs the f32 reference.
    assert jnp.allclose(out, ref, atol=3e-2, rtol=3e-2), "mismatch vs reference"

    print("KERNEL_OK")
</pallas_src>

<mosaic_0001>
module attributes {stable_mosaic.version = 11 : i64} {
  func.func @dirsage_layer_kernel(%arg0: i32, %arg1: i32, %arg2: memref<128x128xbf16, #tpu.memory_space<vmem>>, %arg3: memref<128x128xi8, #tpu.memory_space<vmem>>, %arg4: memref<128x128xi8, #tpu.memory_space<vmem>>, %arg5: memref<128x128xbf16, #tpu.memory_space<vmem>>, %arg6: memref<128x1xf32, #tpu.memory_space<vmem>>, %arg7: memref<128x1xf32, #tpu.memory_space<vmem>>, %arg8: memref<384x128xf32, #tpu.memory_space<vmem>>, %arg9: memref<1x128xf32, #tpu.memory_space<vmem>>, %arg10: memref<128x128xf32, #tpu.memory_space<vmem>>, %arg11: memref<128x128xbf16, #tpu.memory_space<vmem>>, %arg12: memref<128x128xf32, #tpu.memory_space<vmem>>, %arg13: memref<128x128xf32, #tpu.memory_space<vmem>>, %arg14: memref<128x128xf32, #tpu.memory_space<vmem>>) attributes {dimension_semantics = [#tpu.dimension_semantics<parallel>, #tpu.dimension_semantics<arbitrary>], iteration_bounds = array<i64: 2, 2>, scalar_prefetch = 0 : i64, scratch_operands = 2 : i64, tpu.core_type = #tpu.core_type<tc>, window_params = [{transform_indices = @transform_0, window_bounds = array<i64: 128, 128>}, {transform_indices = @transform_1, window_bounds = array<i64: 128, 128>}, {transform_indices = @transform_2, window_bounds = array<i64: 128, 128>}, {transform_indices = @transform_3, window_bounds = array<i64: 128, 128>}, {transform_indices = @transform_4, window_bounds = array<i64: 128, 1>}, {transform_indices = @transform_5, window_bounds = array<i64: 128, 1>}, {pipeline_mode = #tpu.pipeline_mode<synchronous>, transform_indices = @transform_6, window_bounds = array<i64: 384, 128>}, {pipeline_mode = #tpu.pipeline_mode<synchronous>, transform_indices = @transform_7, window_bounds = array<i64: 1, 128>}, {transform_indices = @transform_8, window_bounds = array<i64: 128, 128>}, {transform_indices = @transform_9, window_bounds = array<i64: 128, 128>}, {transform_indices = @transform_10, window_bounds = array<i64: 128, 128>}]} {
    %c0_i32 = arith.constant 0 : i32
    %0 = arith.cmpi eq, %arg1, %c0_i32 : i32
    %1 = arith.extui %0 : i1 to i32
    %c0_i32_0 = arith.constant 0 : i32
    %2 = arith.cmpi ne, %1, %c0_i32_0 : i32
    scf.if %2 {
      %cst_16 = arith.constant 0.000000e+00 : f32
      %19 = vector.broadcast %cst_16 : f32 to vector<128x128xf32>
      %c0_17 = arith.constant 0 : index
      %c0_18 = arith.constant 0 : index
      %20 = vector.load %arg13[%c0_17, %c0_18] : memref<128x128xf32, #tpu.memory_space<vmem>>, vector<128x128xf32>
      tpu.vector_store %arg13[%c0_17, %c0_18], %19 {strides = array<i32>} : memref<128x128xf32, #tpu.memory_space<vmem>>, vector<128x128xf32>,
      %cst_19 = arith.constant 0.000000e+00 : f32
      %21 = vector.broadcast %cst_19 : f32 to vector<128x128xf32>
      %c0_20 = arith.constant 0 : index
      %c0_21 = arith.constant 0 : index
      %22 = vector.load %arg14[%c0_20, %c0_21] : memref<128x128xf32, #tpu.memory_space<vmem>>, vector<128x128xf32>
      tpu.vector_store %arg14[%c0_20, %c0_21], %21 {strides = array<i32>} : memref<128x128xf32, #tpu.memory_space<vmem>>, vector<128x128xf32>,
    } else {
    }
    %c0 = arith.constant 0 : index
    %c0_1 = arith.constant 0 : index
    %3 = vector.load %arg2[%c0, %c0_1] : memref<128x128xbf16, #tpu.memory_space<vmem>>, vector<128x128xbf16>
    %c0_2 = arith.constant 0 : index
    %c0_3 = arith.constant 0 : index
    %4 = vector.load %arg3[%c0_2, %c0_3] : memref<128x128xi8, #tpu.memory_space<vmem>>, vector<128x128xi8>
    %5 = arith.sitofp %4 : vector<128x128xi8> to vector<128x128xbf16>
    %c0_4 = arith.constant 0 : index
    %c0_5 = arith.constant 0 : index
    %6 = vector.load %arg4[%c0_4, %c0_5] : memref<128x128xi8, #tpu.memory_space<vmem>>, vector<128x128xi8>
    %7 = arith.sitofp %6 : vector<128x128xi8> to vector<128x128xbf16>
    %c0_6 = arith.constant 0 : index
    %c0_7 = arith.constant 0 : index
    %8 = vector.load %arg13[%c0_6, %c0_7] : memref<128x128xf32, #tpu.memory_space<vmem>>, vector<128x128xf32>
    %cst = arith.constant dense<0.000000e+00> : vector<128x128xf32>
    %9 = tpu.matmul %5, %3, %cst {dimension_numbers = #tpu.dot_dimension_numbers<[1], [0], [0], [1], [0, 0, 1, 1], [], []>} : vector<128x128xbf16>, vector<128x128xbf16>, vector<128x128xf32> -> vector<128x128xf32>
    %10 = arith.addf %8, %9 : vector<128x128xf32>
    %c0_8 = arith.constant 0 : index
    %c0_9 = arith.constant 0 : index
    %11 = vector.load %arg13[%c0_8, %c0_9] : memref<128x128xf32, #tpu.memory_space<vmem>>, vector<128x128xf32>
    tpu.vector_store %arg13[%c0_8, %c0_9], %10 {strides = array<i32>} : memref<128x128xf32, #tpu.memory_space<vmem>>, vector<128x128xf32>,
    %c0_10 = arith.constant 0 : index
    %c0_11 = arith.constant 0 : index
    %12 = vector.load %arg14[%c0_10, %c0_11] : memref<128x128xf32, #tpu.memory_space<vmem>>, vector<128x128xf32>
    %cst_12 = arith.constant dense<0.000000e+00> : vector<128x128xf32>
    %13 = tpu.matmul %7, %3, %cst_12 {dimension_numbers = #tpu.dot_dimension_numbers<[1], [0], [0], [1], [0, 0, 1, 1], [], []>} : vector<128x128xbf16>, vector<128x128xbf16>, vector<128x128xf32> -> vector<128x128xf32>
    %14 = arith.addf %12, %13 : vector<128x128xf32>
    %c0_13 = arith.constant 0 : index
    %c0_14 = arith.constant 0 : index
    %15 = vector.load %arg14[%c0_13, %c0_14] : memref<128x128xf32, #tpu.memory_space<vmem>>, vector<128x128xf32>
    tpu.vector_store %arg14[%c0_13, %c0_14], %14 {strides = array<i32>} : memref<128x128xf32, #tpu.memory_space<vmem>>, vector<128x128xf32>,
    %c1_i32 = arith.constant 1 : i32
    %16 = arith.cmpi eq, %arg1, %c1_i32 : i32
    %17 = arith.extui %16 : i1 to i32
    %c0_i32_15 = arith.constant 0 : i32
    %18 = arith.cmpi ne, %17, %c0_i32_15 : i32
    scf.if %18 {
      %c0_16 = arith.constant 0 : index
      %c0_17 = arith.constant 0 : index
      %19 = vector.load %arg13[%c0_16, %c0_17] : memref<128x128xf32, #tpu.memory_space<vmem>>, vector<128x128xf32>
      %c0_18 = arith.constant 0 : index
      %c0_19 = arith.constant 0 : index
      %20 = vector.load %arg6[%c0_18, %c0_19] : memref<128x1xf32, #tpu.memory_space<vmem>>, vector<128x1xf32>
      %21 = vector.broadcast %20 : vector<128x1xf32> to vector<128x128xf32>
      %22 = arith.mulf %19, %21 : vector<128x128xf32>
      %c0_20 = arith.constant 0 : index
      %c0_21 = arith.constant 0 : index
      %23 = vector.load %arg14[%c0_20, %c0_21] : memref<128x128xf32, #tpu.memory_space<vmem>>, vector<128x128xf32>
      %c0_22 = arith.constant 0 : index
      %c0_23 = arith.constant 0 : index
      %24 = vector.load %arg7[%c0_22, %c0_23] : memref<128x1xf32, #tpu.memory_space<vmem>>, vector<128x1xf32>
      %25 = vector.broadcast %24 : vector<128x1xf32> to vector<128x128xf32>
      %26 = arith.mulf %23, %25 : vector<128x128xf32>
      %c0_24 = arith.constant 0 : index
      %c0_25 = arith.constant 0 : index
      %27 = vector.load %arg5[%c0_24, %c0_25] : memref<128x128xbf16, #tpu.memory_space<vmem>>, vector<128x128xbf16>
      %28 = arith.extf %27 : vector<128x128xbf16> to vector<128x128xf32>
      %c0_26 = arith.constant 0 : index
      %c0_27 = arith.constant 0 : index
      %29 = vector.load %arg8[%c0_26, %c0_27] : memref<384x128xf32, #tpu.memory_space<vmem>>, vector<128x128xf32>
      %cst_28 = arith.constant dense<0.000000e+00> : vector<128x128xf32>
      %30 = tpu.matmul %28, %29, %cst_28 {dimension_numbers = #tpu.dot_dimension_numbers<[1], [0], [0], [1], [0, 0, 1, 1], [], []>} : vector<128x128xf32>, vector<128x128xf32>, vector<128x128xf32> -> vector<128x128xf32>
      %c128 = arith.constant 128 : index
      %c0_29 = arith.constant 0 : index
      %31 = vector.load %arg8[%c128, %c0_29] : memref<384x128xf32, #tpu.memory_space<vmem>>, vector<128x128xf32>
      %cst_30 = arith.constant dense<0.000000e+00> : vector<128x128xf32>
      %32 = tpu.matmul %22, %31, %cst_30 {dimension_numbers = #tpu.dot_dimension_numbers<[1], [0], [0], [1], [0, 0, 1, 1], [], []>} : vector<128x128xf32>, vector<128x128xf32>, vector<128x128xf32> -> vector<128x128xf32>
      %33 = arith.addf %30, %32 : vector<128x128xf32>
      %c256 = arith.constant 256 : index
      %c0_31 = arith.constant 0 : index
      %34 = vector.load %arg8[%c256, %c0_31] : memref<384x128xf32, #tpu.memory_space<vmem>>, vector<128x128xf32>
      %cst_32 = arith.constant dense<0.000000e+00> : vector<128x128xf32>
      %35 = tpu.matmul %26, %34, %cst_32 {dimension_numbers = #tpu.dot_dimension_numbers<[1], [0], [0], [1], [0, 0, 1, 1], [], []>} : vector<128x128xf32>, vector<128x128xf32>, vector<128x128xf32> -> vector<128x128xf32>
      %36 = arith.addf %33, %35 : vector<128x128xf32>
      %c0_33 = arith.constant 0 : index
      %c0_34 = arith.constant 0 : index
      %37 = vector.load %arg9[%c0_33, %c0_34] : memref<1x128xf32, #tpu.memory_space<vmem>>, vector<1x128xf32>
      %38 = vector.broadcast %37 : vector<1x128xf32> to vector<128x128xf32>
      %39 = arith.addf %36, %38 : vector<128x128xf32>
      %cst_35 = arith.constant 0.000000e+00 : f32
      %40 = vector.broadcast %cst_35 : f32 to vector<128x128xf32>
      %41 = arith.maximumf %39, %40 : vector<128x128xf32>
      %c0_36 = arith.constant 0 : index
      %c0_37 = arith.constant 0 : index
      %42 = vector.load %arg10[%c0_36, %c0_37] : memref<128x128xf32, #tpu.memory_space<vmem>>, vector<128x128xf32>
      %43 = arith.maximumf %42, %41 : vector<128x128xf32>
      %44 = arith.truncf %41 : vector<128x128xf32> to vector<128x128xbf16>
      %c0_38 = arith.constant 0 : index
      %c0_39 = arith.constant 0 : index
      %45 = vector.load %arg11[%c0_38, %c0_39] : memref<128x128xbf16, #tpu.memory_space<vmem>>, vector<128x128xbf16>
      tpu.vector_store %arg11[%c0_38, %c0_39], %44 {strides = array<i32>} : memref<128x128xbf16, #tpu.memory_space<vmem>>, vector<128x128xbf16>,
      %c0_40 = arith.constant 0 : index
      %c0_41 = arith.constant 0 : index
      %46 = vector.load %arg12[%c0_40, %c0_41] : memref<128x128xf32, #tpu.memory_space<vmem>>, vector<128x128xf32>
      tpu.vector_store %arg12[%c0_40, %c0_41], %43 {strides = array<i32>} : memref<128x128xf32, #tpu.memory_space<vmem>>, vector<128x128xf32>,
    } else {
    }
    return
  }
  func.func @transform_0(%arg0: i32, %arg1: i32) -> (i32, i32) {
    %c0_i32 = arith.constant 0 : i32
    %c0_i32_0 = arith.constant 0 : i32
    return %arg1, %c0_i32 : i32, i32
  }
  func.func @transform_1(%arg0: i32, %arg1: i32) -> (i32, i32) {
    %c0_i32 = arith.constant 0 : i32
    return %arg0, %arg1 : i32, i32
  }
  func.func @transform_2(%arg0: i32, %arg1: i32) -> (i32, i32) {
    %c0_i32 = arith.constant 0 : i32
    return %arg0, %arg1 : i32, i32
  }
  func.func @transform_3(%arg0: i32, %arg1: i32) -> (i32, i32) {
    %c0_i32 = arith.constant 0 : i32
    %c0_i32_0 = arith.constant 0 : i32
    return %arg0, %c0_i32 : i32, i32
  }
  func.func @transform_4(%arg0: i32, %arg1: i32) -> (i32, i32) {
    %c0_i32 = arith.constant 0 : i32
    %c0_i32_0 = arith.constant 0 : i32
    return %arg0, %c0_i32 : i32, i32
  }
  func.func @transform_5(%arg0: i32, %arg1: i32) -> (i32, i32) {
    %c0_i32 = arith.constant 0 : i32
    %c0_i32_0 = arith.constant 0 : i32
    return %arg0, %c0_i32 : i32, i32
  }
  func.func @transform_6(%arg0: i32, %arg1: i32) -> (i32, i32) {
    %c0_i32 = arith.constant 0 : i32
    %c0_i32_0 = arith.constant 0 : i32
    %c0_i32_1 = arith.constant 0 : i32
    return %c0_i32, %c0_i32_0 : i32, i32
  }
  func.func @transform_7(%arg0: i32, %arg1: i32) -> (i32, i32) {
    %c0_i32 = arith.constant 0 : i32
    %c0_i32_0 = arith.constant 0 : i32
    %c0_i32_1 = arith.constant 0 : i32
    return %c0_i32, %c0_i32_0 : i32, i32
  }
  func.func @transform_8(%arg0: i32, %arg1: i32) -> (i32, i32) {
    %c0_i32 = arith.constant 0 : i32
    %c0_i32_0 = arith.constant 0 : i32
    return %arg0, %c0_i32 : i32, i32
  }
  func.func @transform_9(%arg0: i32, %arg1: i32) -> (i32, i32) {
    %c0_i32 = arith.constant 0 : i32
    %c0_i32_0 = arith.constant 0 : i32
    return %arg0, %c0_i32 : i32, i32
  }
  func.func @transform_10(%arg0: i32, %arg1: i32) -> (i32, i32) {
    %c0_i32 = arith.constant 0 : i32
    %c0_i32_0 = arith.constant 0 : i32
    return %arg0, %c0_i32 : i32, i32
  }
}

module attributes {stable_mosaic.version = 11 : i64} {
  func.func @dirsage_layer_kernel(%arg0: i32, %arg1: i32, %arg2: memref<128x128xbf16, #tpu.memory_space<vmem>>, %arg3: memref<128x128xi8, #tpu.memory_space<vmem>>, %arg4: memref<128x128xi8, #tpu.memory_space<vmem>>, %arg5: memref<128x128xbf16, #tpu.memory_space<vmem>>, %arg6: memref<128x1xf32, #tpu.memory_space<vmem>>, %arg7: memref<128x1xf32, #tpu.memory_space<vmem>>, %arg8: memref<384x128xf32, #tpu.memory_space<vmem>>, %arg9: memref<1x128xf32, #tpu.memory_space<vmem>>, %arg10: memref<128x128xf32, #tpu.memory_space<vmem>>, %arg11: memref<128x128xf32, #tpu.memory_space<vmem>>, %arg12: memref<1x128xf32, #tpu.memory_space<vmem>>, %arg13: memref<128x128xf32, #tpu.memory_space<vmem>>, %arg14: memref<128x128xf32, #tpu.memory_space<vmem>>, %arg15: memref<128x128xf32, #tpu.memory_space<vmem>>) attributes {dimension_semantics = [#tpu.dimension_semantics<parallel>, #tpu.dimension_semantics<arbitrary>], iteration_bounds = array<i64: 2, 2>, scalar_prefetch = 0 : i64, scratch_operands = 2 : i64, tpu.core_type = #tpu.core_type<tc>, window_params = [{transform_indices = @transform_0, window_bounds = array<i64: 128, 128>}, {transform_indices = @transform_1, window_bounds = array<i64: 128, 128>}, {transform_indices = @transform_2, window_bounds = array<i64: 128, 128>}, {transform_indices = @transform_3, window_bounds = array<i64: 128, 128>}, {transform_indices = @transform_4, window_bounds = array<i64: 128, 1>}, {transform_indices = @transform_5, window_bounds = array<i64: 128, 1>}, {pipeline_mode = #tpu.pipeline_mode<synchronous>, transform_indices = @transform_6, window_bounds = array<i64: 384, 128>}, {pipeline_mode = #tpu.pipeline_mode<synchronous>, transform_indices = @transform_7, window_bounds = array<i64: 1, 128>}, {transform_indices = @transform_8, window_bounds = array<i64: 128, 128>}, {pipeline_mode = #tpu.pipeline_mode<synchronous>, transform_indices = @transform_9, window_bounds = array<i64: 128, 128>}, {pipeline_mode = #tpu.pipeline_mode<synchronous>, transform_indices = @transform_10, window_bounds = array<i64: 1, 128>}, {transform_indices = @transform_11, window_bounds = array<i64: 128, 128>}]} {
    %c0_i32 = arith.constant 0 : i32
    %0 = arith.cmpi eq, %arg1, %c0_i32 : i32
    %1 = arith.extui %0 : i1 to i32
    %c0_i32_0 = arith.constant 0 : i32
    %2 = arith.cmpi ne, %1, %c0_i32_0 : i32
    scf.if %2 {
      %cst_16 = arith.constant 0.000000e+00 : f32
      %19 = vector.broadcast %cst_16 : f32 to vector<128x128xf32>
      %c0_17 = arith.constant 0 : index
      %c0_18 = arith.constant 0 : index
      %20 = vector.load %arg14[%c0_17, %c0_18] : memref<128x128xf32, #tpu.memory_space<vmem>>, vector<128x128xf32>
      tpu.vector_store %arg14[%c0_17, %c0_18], %19 {strides = array<i32>} : memref<128x128xf32, #tpu.memory_space<vmem>>, vector<128x128xf32>,
      %cst_19 = arith.constant 0.000000e+00 : f32
      %21 = vector.broadcast %cst_19 : f32 to vector<128x128xf32>
      %c0_20 = arith.constant 0 : index
      %c0_21 = arith.constant 0 : index
      %22 = vector.load %arg15[%c0_20, %c0_21] : memref<128x128xf32, #tpu.memory_space<vmem>>, vector<128x128xf32>
      tpu.vector_store %arg15[%c0_20, %c0_21], %21 {strides = array<i32>} : memref<128x128xf32, #tpu.memory_space<vmem>>, vector<128x128xf32>,
    } else {
    }
    %c0 = arith.constant 0 : index
    %c0_1 = arith.constant 0 : index
    %3 = vector.load %arg2[%c0, %c0_1] : memref<128x128xbf16, #tpu.memory_space<vmem>>, vector<128x128xbf16>
    %c0_2 = arith.constant 0 : index
    %c0_3 = arith.constant 0 : index
    %4 = vector.load %arg3[%c0_2, %c0_3] : memref<128x128xi8, #tpu.memory_space<vmem>>, vector<128x128xi8>
    %5 = arith.sitofp %4 : vector<128x128xi8> to vector<128x128xbf16>
    %c0_4 = arith.constant 0 : index
    %c0_5 = arith.constant 0 : index
    %6 = vector.load %arg4[%c0_4, %c0_5] : memref<128x128xi8, #tpu.memory_space<vmem>>, vector<128x128xi8>
    %7 = arith.sitofp %6 : vector<128x128xi8> to vector<128x128xbf16>
    %c0_6 = arith.constant 0 : index
    %c0_7 = arith.constant 0 : index
    %8 = vector.load %arg14[%c0_6, %c0_7] : memref<128x128xf32, #tpu.memory_space<vmem>>, vector<128x128xf32>
    %cst = arith.constant dense<0.000000e+00> : vector<128x128xf32>
    %9 = tpu.matmul %5, %3, %cst {dimension_numbers = #tpu.dot_dimension_numbers<[1], [0], [0], [1], [0, 0, 1, 1], [], []>} : vector<128x128xbf16>, vector<128x128xbf16>, vector<128x128xf32> -> vector<128x128xf32>
    %10 = arith.addf %8, %9 : vector<128x128xf32>
    %c0_8 = arith.constant 0 : index
    %c0_9 = arith.constant 0 : index
    %11 = vector.load %arg14[%c0_8, %c0_9] : memref<128x128xf32, #tpu.memory_space<vmem>>, vector<128x128xf32>
    tpu.vector_store %arg14[%c0_8, %c0_9], %10 {strides = array<i32>} : memref<128x128xf32, #tpu.memory_space<vmem>>, vector<128x128xf32>,
    %c0_10 = arith.constant 0 : index
    %c0_11 = arith.constant 0 : index
    %12 = vector.load %arg15[%c0_10, %c0_11] : memref<128x128xf32, #tpu.memory_space<vmem>>, vector<128x128xf32>
    %cst_12 = arith.constant dense<0.000000e+00> : vector<128x128xf32>
    %13 = tpu.matmul %7, %3, %cst_12 {dimension_numbers = #tpu.dot_dimension_numbers<[1], [0], [0], [1], [0, 0, 1, 1], [], []>} : vector<128x128xbf16>, vector<128x128xbf16>, vector<128x128xf32> -> vector<128x128xf32>
    %14 = arith.addf %12, %13 : vector<128x128xf32>
    %c0_13 = arith.constant 0 : index
    %c0_14 = arith.constant 0 : index
    %15 = vector.load %arg15[%c0_13, %c0_14] : memref<128x128xf32, #tpu.memory_space<vmem>>, vector<128x128xf32>
    tpu.vector_store %arg15[%c0_13, %c0_14], %14 {strides = array<i32>} : memref<128x128xf32, #tpu.memory_space<vmem>>, vector<128x128xf32>,
    %c1_i32 = arith.constant 1 : i32
    %16 = arith.cmpi eq, %arg1, %c1_i32 : i32
    %17 = arith.extui %16 : i1 to i32
    %c0_i32_15 = arith.constant 0 : i32
    %18 = arith.cmpi ne, %17, %c0_i32_15 : i32
    scf.if %18 {
      %c0_16 = arith.constant 0 : index
      %c0_17 = arith.constant 0 : index
      %19 = vector.load %arg14[%c0_16, %c0_17] : memref<128x128xf32, #tpu.memory_space<vmem>>, vector<128x128xf32>
      %c0_18 = arith.constant 0 : index
      %c0_19 = arith.constant 0 : index
      %20 = vector.load %arg6[%c0_18, %c0_19] : memref<128x1xf32, #tpu.memory_space<vmem>>, vector<128x1xf32>
      %21 = vector.broadcast %20 : vector<128x1xf32> to vector<128x128xf32>
      %22 = arith.mulf %19, %21 : vector<128x128xf32>
      %c0_20 = arith.constant 0 : index
      %c0_21 = arith.constant 0 : index
      %23 = vector.load %arg15[%c0_20, %c0_21] : memref<128x128xf32, #tpu.memory_space<vmem>>, vector<128x128xf32>
      %c0_22 = arith.constant 0 : index
      %c0_23 = arith.constant 0 : index
      %24 = vector.load %arg7[%c0_22, %c0_23] : memref<128x1xf32, #tpu.memory_space<vmem>>, vector<128x1xf32>
      %25 = vector.broadcast %24 : vector<128x1xf32> to vector<128x128xf32>
      %26 = arith.mulf %23, %25 : vector<128x128xf32>
      %c0_24 = arith.constant 0 : index
      %c0_25 = arith.constant 0 : index
      %27 = vector.load %arg5[%c0_24, %c0_25] : memref<128x128xbf16, #tpu.memory_space<vmem>>, vector<128x128xbf16>
      %28 = arith.extf %27 : vector<128x128xbf16> to vector<128x128xf32>
      %c0_26 = arith.constant 0 : index
      %c0_27 = arith.constant 0 : index
      %29 = vector.load %arg8[%c0_26, %c0_27] : memref<384x128xf32, #tpu.memory_space<vmem>>, vector<128x128xf32>
      %cst_28 = arith.constant dense<0.000000e+00> : vector<128x128xf32>
      %30 = tpu.matmul %28, %29, %cst_28 {dimension_numbers = #tpu.dot_dimension_numbers<[1], [0], [0], [1], [0, 0, 1, 1], [], []>} : vector<128x128xf32>, vector<128x128xf32>, vector<128x128xf32> -> vector<128x128xf32>
      %c128 = arith.constant 128 : index
      %c0_29 = arith.constant 0 : index
      %31 = vector.load %arg8[%c128, %c0_29] : memref<384x128xf32, #tpu.memory_space<vmem>>, vector<128x128xf32>
      %cst_30 = arith.constant dense<0.000000e+00> : vector<128x128xf32>
      %32 = tpu.matmul %22, %31, %cst_30 {dimension_numbers = #tpu.dot_dimension_numbers<[1], [0], [0], [1], [0, 0, 1, 1], [], []>} : vector<128x128xf32>, vector<128x128xf32>, vector<128x128xf32> -> vector<128x128xf32>
      %33 = arith.addf %30, %32 : vector<128x128xf32>
      %c256 = arith.constant 256 : index
      %c0_31 = arith.constant 0 : index
      %34 = vector.load %arg8[%c256, %c0_31] : memref<384x128xf32, #tpu.memory_space<vmem>>, vector<128x128xf32>
      %cst_32 = arith.constant dense<0.000000e+00> : vector<128x128xf32>
      %35 = tpu.matmul %26, %34, %cst_32 {dimension_numbers = #tpu.dot_dimension_numbers<[1], [0], [0], [1], [0, 0, 1, 1], [], []>} : vector<128x128xf32>, vector<128x128xf32>, vector<128x128xf32> -> vector<128x128xf32>
      %36 = arith.addf %33, %35 : vector<128x128xf32>
      %c0_33 = arith.constant 0 : index
      %c0_34 = arith.constant 0 : index
      %37 = vector.load %arg9[%c0_33, %c0_34] : memref<1x128xf32, #tpu.memory_space<vmem>>, vector<1x128xf32>
      %38 = vector.broadcast %37 : vector<1x128xf32> to vector<128x128xf32>
      %39 = arith.addf %36, %38 : vector<128x128xf32>
      %cst_35 = arith.constant 0.000000e+00 : f32
      %40 = vector.broadcast %cst_35 : f32 to vector<128x128xf32>
      %41 = arith.maximumf %39, %40 : vector<128x128xf32>
      %c0_36 = arith.constant 0 : index
      %c0_37 = arith.constant 0 : index
      %42 = vector.load %arg10[%c0_36, %c0_37] : memref<128x128xf32, #tpu.memory_space<vmem>>, vector<128x128xf32>
      %43 = arith.maximumf %42, %41 : vector<128x128xf32>
      %c0_38 = arith.constant 0 : index
      %c0_39 = arith.constant 0 : index
      %44 = vector.load %arg11[%c0_38, %c0_39] : memref<128x128xf32, #tpu.memory_space<vmem>>, vector<128x128xf32>
      %cst_40 = arith.constant dense<0.000000e+00> : vector<128x128xf32>
      %45 = tpu.matmul %43, %44, %cst_40 {dimension_numbers = #tpu.dot_dimension_numbers<[1], [0], [0], [1], [0, 0, 1, 1], [], []>} : vector<128x128xf32>, vector<128x128xf32>, vector<128x128xf32> -> vector<128x128xf32>
      %c0_41 = arith.constant 0 : index
      %c0_42 = arith.constant 0 : index
      %46 = vector.load %arg12[%c0_41, %c0_42] : memref<1x128xf32, #tpu.memory_space<vmem>>, vector<1x128xf32>
      %47 = vector.broadcast %46 : vector<1x128xf32> to vector<128x128xf32>
      %48 = arith.addf %45, %47 : vector<128x128xf32>
      %c0_43 = arith.constant 0 : index
      %c0_44 = arith.constant 0 : index
      %49 = vector.load %arg13[%c0_43, %c0_44] : memref<128x128xf32, #tpu.memory_space<vmem>>, vector<128x128xf32>
      tpu.vector_store %arg13[%c0_43, %c0_44], %48 {strides = array<i32>} : memref<128x128xf32, #tpu.memory_space<vmem>>, vector<128x128xf32>,
    } else {
    }
    return
  }
  func.func @transform_0(%arg0: i32, %arg1: i32) -> (i32, i32) {
    %c0_i32 = arith.constant 0 : i32
    %c0_i32_0 = arith.constant 0 : i32
    return %arg1, %c0_i32 : i32, i32
  }
  func.func @transform_1(%arg0: i32, %arg1: i32) -> (i32, i32) {
    %c0_i32 = arith.constant 0 : i32
    return %arg0, %arg1 : i32, i32
  }
  func.func @transform_2(%arg0: i32, %arg1: i32) -> (i32, i32) {
    %c0_i32 = arith.constant 0 : i32
    return %arg0, %arg1 : i32, i32
  }
  func.func @transform_3(%arg0: i32, %arg1: i32) -> (i32, i32) {
    %c0_i32 = arith.constant 0 : i32
    %c0_i32_0 = arith.constant 0 : i32
    return %arg0, %c0_i32 : i32, i32
  }
  func.func @transform_4(%arg0: i32, %arg1: i32) -> (i32, i32) {
    %c0_i32 = arith.constant 0 : i32
    %c0_i32_0 = arith.constant 0 : i32
    return %arg0, %c0_i32 : i32, i32
  }
  func.func @transform_5(%arg0: i32, %arg1: i32) -> (i32, i32) {
    %c0_i32 = arith.constant 0 : i32
    %c0_i32_0 = arith.constant 0 : i32
    return %arg0, %c0_i32 : i32, i32
  }
  func.func @transform_6(%arg0: i32, %arg1: i32) -> (i32, i32) {
    %c0_i32 = arith.constant 0 : i32
    %c0_i32_0 = arith.constant 0 : i32
    %c0_i32_1 = arith.constant 0 : i32
    return %c0_i32, %c0_i32_0 : i32, i32
  }
  func.func @transform_7(%arg0: i32, %arg1: i32) -> (i32, i32) {
    %c0_i32 = arith.constant 0 : i32
    %c0_i32_0 = arith.constant 0 : i32
    %c0_i32_1 = arith.constant 0 : i32
    return %c0_i32, %c0_i32_0 : i32, i32
  }
  func.func @transform_8(%arg0: i32, %arg1: i32) -> (i32, i32) {
    %c0_i32 = arith.constant 0 : i32
    %c0_i32_0 = arith.constant 0 : i32
    return %arg0, %c0_i32 : i32, i32
  }
  func.func @transform_9(%arg0: i32, %arg1: i32) -> (i32, i32) {
    %c0_i32 = arith.constant 0 : i32
    %c0_i32_0 = arith.constant 0 : i32
    %c0_i32_1 = arith.constant 0 : i32
    return %c0_i32, %c0_i32_0 : i32, i32
  }
  func.func @transform_10(%arg0: i32, %arg1: i32) -> (i32, i32) {
    %c0_i32 = arith.constant 0 : i32
    %c0_i32_0 = arith.constant 0 : i32
    %c0_i32_1 = arith.constant 0 : i32
    return %c0_i32, %c0_i32_0 : i32, i32
  }
  func.func @transform_11(%arg0: i32, %arg1: i32) -> (i32, i32) {
    %c0_i32 = arith.constant 0 : i32
    %c0_i32_0 = arith.constant 0 : i32
    return %arg0, %c0_i32 : i32, i32
  }
}

</mosaic_0001>

<bundles_post_ra>
// kernel: dirsage_forward.5
= control target key start
LH: loop header
LB: loop body
LE: loop exit
PB: predicated region body
PF: predicated region fallthrough
CT: control target
= control target key end

     0   :  { %s3764_s0 = inlined_call_operand.vmem [shape: bf16[256,128], index: 0, kind: input, shape index: {}, may-alias: {0,3}]   ;;  %s3765_s1 = inlined_call_operand.vmem [shape: s8[256,256], index: 1, kind: input, shape index: {}]   ;;  %s3766_s2 = inlined_call_operand.vmem [shape: s8[256,256], index: 2, kind: input, shape index: {}]   ;;  %s3767_s3 = inlined_call_operand.vmem [shape: bf16[256,128], index: 3, kind: input, shape index: {}, may-alias: {0,3}]   ;;  %s3768_s4 = inlined_call_operand.vmem [shape: f32[256,1], index: 4, kind: input, shape index: {}]   ;;  %s3769_s5 = inlined_call_operand.vmem [shape: f32[256,1], index: 5, kind: input, shape index: {}]   ;;  %s3770_s6 = inlined_call_operand.vmem [shape: f32[384,128], index: 6, kind: input, shape index: {}]   ;;  %s3771_s7 = inlined_call_operand.vmem [shape: f32[1,128], index: 7, kind: input, shape index: {}]   ;;  %s3772_s8 = inlined_call_operand.vmem [shape: f32[256,128], index: 8, kind: input, shape index: {}]   ;;  %s3773_s9 = inlined_call_operand.vmem [shape: f32[128,128], index: 9, kind: input, shape index: {}]   ;;  %s3774_s10 = inlined_call_operand.vmem [shape: f32[1,128], index: 10, kind: input, shape index: {}]   ;;  %s3775_s11 = inlined_call_operand.hbm [shape: f32[256,128], index: 11, kind: output, shape index: {}]  }
   0x1   :  { %3785 = sst [smem:[#allocation18_spill]] %s3764_s0 }
   0x2   :  { %3786 = sst [smem:[#allocation19_spill]] %s3765_s1 }
   0x3   :  { %3787 = sst [smem:[#allocation20_spill]] %s3766_s2 }
   0x4   :  { %3788 = sst [smem:[#allocation21_spill]] %s3771_s7 }
   0x5   :  { %3789 = sst [smem:[#allocation22_spill]] %s3774_s10 }
   0x6   :  { %3790 = sst [smem:[#allocation23_spill]] %s3775_s11 }
   0x7   :  { %16 = vsyncpa [#allocation7], 0 }
   0x8   :  { %18 = vsyncpa [#allocation7 + $0x1], 0  ;;  %s3239_s17 = smov 0   ;;  %s3241_s18 = smov 0  }
   0x9   :  { %s3243_s19 = smov 0   ;;  %s3245_s20 = smov 0  }
   0xa   :  { %s3247_s21 = smov 0   ;;  %s3249_s22 = smov 0  }
   0xb   :  { %s3251_s23 = smov 0   ;;  %s3253_s24 = smov 0  }
   0xc   :  { %s3255_s25 = smov 0   ;;  %s3257_s26 = smov 0  }
   0xd LB: > { %3791 = sst [smem:[#allocation9_spill]] %s3136_s17  ;;  %s2268_s27 = sadd.s32 4294967295, %s3172_s26   ;;  %s3172_s26 = sphi %s3257_s26, %s24_s26   ;;  %s3168_s25 = sphi %s3255_s25, %s3819_s25   ;;  %s3164_s24 = sphi %s3253_s24, %s3818_s24   ;;  %s3160_s23 = sphi %s3251_s23, %s3817_s23   ;;  %s3156_s22 = sphi %s3249_s22, %s3816_s22   ;;  %s3152_s21 = sphi %s3247_s21, %s3815_s21   ;;  %s3148_s20 = sphi %s3245_s20, %s3814_s20   ;;  %s3144_s19 = sphi %s3243_s19, %s3822_s19   ;;  %s3140_s18 = sphi %s3241_s18, %s3821_s18   ;;  %s3136_s17 = sphi %s3239_s17, %s3820_s17  }
   0xe   : > { %3792 = sst [smem:[#allocation10_spill]] %s3152_s21  ;;  %s2269_s28 = sadd.s32 4294967294, %s3172_s26  }
   0xf   : > { %3793 = sst [smem:[#allocation11_spill]] %s3164_s24  ;;  %s33_s29 = sadd.s32 1, %s3164_s24 }
  0x10   : > { %3794 = sst [smem:[#allocation12_spill]] %s3168_s25  ;;  %s36_s30 = sadd.s32 1, %s3168_s25 }
  0x11   : > { %p34_p0 = scmp.ge.s32.totalorder %s33_s29, 2  ;;  %s71_s12 = sadd.s32 1, %s3152_s21 }
  0x12   : > { %p78_p1 = scmp.ne.s32.totalorder %s3152_s21, %s3148_s20  ;;  %p79_p2 = scmp.eq.s32.totalorder %s3172_s26, 0 }
  0x13   : > { %s3824_s29 = smov (%p34_p0, %s33_s29), 0  ;;  %s3826_s30 = smov (!%p34_p0, %s36_s30), %s3168_s25 }
  0x14   : > { %3795 = sst [smem:[#allocation13_spill]] %s3824_s29  ;;  %s67_s13 = ssub.s32 %s3164_s24, %s3824_s29 }
  0x15   : > { %p3302_p3 = por %p79_p2, %p78_p1  ;;  %p38_p4 = scmp.ge.s32.totalorder %s3826_s30, 2 }
  0x16   : > { %s313_s15 = sadd.s32 1, %s3144_s19  ;;  %p323_p5 = scmp.ne.s32.totalorder %s3144_s19, %s3140_s18 }
  0x17   : > { %p324_p6 = scmp.eq.s32.totalorder %s2268_s27, 3  ;;  %s3828_s30 = smov (%p38_p4, %s3826_s30), 0 }
  0x18   : > { %3797 = sst [smem:[#allocation14_spill]] %s3828_s30  ;;  %p329_p8 = scmp.ne.s32.totalorder %s3140_s18, %s3136_s17 }
  0x19   : > { %p3311_p7 = por %p324_p6, %p323_p5  ;;  %s66_s11 = ssub.s32 %s3168_s25, %s3828_s30 }
  0x1a   : > { %p330_p9 = scmp.eq.s32.totalorder %s2269_s28, 3  ;;  %s68_s29 = sor.u32 %s67_s13, %s66_s11 }
  0x1b   : > { %p311_p10 = scmp.eq.s32.totalorder %s66_s11, 0  ;;  %p69_p11 = scmp.eq.s32.totalorder %s68_s29, 0 }
  0x1c   : > { %p3319_p12 = por %p330_p9, %p329_p8  ;;  %p2271_p13 = scmp.ge.s32.totalorder %s3172_s26, 4 }
  0x1d   : > { %s3324_s7 = scalar_select %p311_p10, %s3144_s19, %s313_s15  }
  0x1e   : > { %s3799_s10 = scalar_select %p3319_p12, 1, 0 }
  0x1f   : > { %3801 = sst [smem:[#allocation16_spill]] %s3324_s7  ;;  %358 = sbr.rel (%p2271_p13) target bundleno = 62 (0x3e), region = 32 }
  0x20   : > { %3800 = sst [smem:[#allocation15_spill]] %s3799_s10 }
  0x21   : > { %s3327_s27 = scalar_select %p69_p11, %s3152_s21, %s71_s12  }
  0x23   : > { %3802 = sst [smem:[#allocation17_spill]] %s3327_s27 }
  0x26   : > { %370 = sbr.rel (!%p3302_p3) target bundleno = 50 (0x32), region = 40  ;;  %s372_s28 = sand.u32 (%p3302_p3), 1, %s3152_s21  }
  0x27   : > { %s2311_s11 = sshll.u32 (%p3302_p3), %s3168_s25, 3  ;;  %s2272_s29 = sshll.u32 (%p3302_p3), %s372_s28, 5 }
  0x28   : > { %s377_s13 = sadd.s32 (%p3302_p3), %s3164_s24, %s2311_s11  ;;  %s3803_s1 = sld [smem:[#allocation19_spill]] (%p3302_p3) }
  0x29   : > { %s2275_s30 = sshll.u32 (%p3302_p3), %s377_s13, 3  ;;  %s374_s12 = scalar_lea.vmem (%p3302_p3), [#allocation4], %s2272_s29 }
  0x2e   : > { %s379_s15 = scalar_lea.vmem %s3803_s1, %s2275_s30 }
  0x2f   : > { %v413_v0 = vld [vmem:[%s379_s15] sm:$0xff]  ;;  %v415_v1 = vld [vmem:[%s379_s15 + $0x10] sm:$0xff] }
  0x30   : > { %v417_v2 = vld [vmem:[%s379_s15 + $0x20] sm:$0xff]  ;;  %414 = vst [vmem:[%s374_s12] sm:$0xff] %v413_v0  ;;  %416 = vst [vmem:[%s374_s12 + $0x8] sm:$0xff] %v415_v1  ;;  %v419_v3 = vld [vmem:[%s379_s15 + $0x30] sm:$0xff] }
  0x31   : > { %418 = vst [vmem:[%s374_s12 + $0x10] sm:$0xff] %v417_v2  ;;  %420 = vst [vmem:[%s374_s12 + $0x18] sm:$0xff] %v419_v3 }
  0x32 PF: > { %426 = sbr.rel (!%p3302_p3) target bundleno = 62 (0x3e), region = 78  ;;  %s428_s28 = sand.u32 (%p3302_p3), 1, %s3152_s21  }
  0x33   : > { %s2312_s11 = sshll.u32 (%p3302_p3), %s3168_s25, 3  ;;  %s2276_s10 = sshll.u32 (%p3302_p3), %s428_s28, 5 }
  0x34   : > { %s433_s17 = sadd.s32 (%p3302_p3), %s3164_s24, %s2312_s11  ;;  %s3804_s2 = sld [smem:[#allocation20_spill]] (%p3302_p3) }
  0x35   : > { %s2279_s30 = sshll.u32 (%p3302_p3), %s433_s17, 3  ;;  %s430_s15 = scalar_lea.vmem (%p3302_p3), [#allocation5], %s2276_s10 }
  0x3a   : > { %s435_s29 = scalar_lea.vmem %s3804_s2, %s2279_s30 }
  0x3b   : > { %v469_v4 = vld [vmem:[%s435_s29] sm:$0xff]  ;;  %v471_v5 = vld [vmem:[%s435_s29 + $0x10] sm:$0xff] }
  0x3c   : > { %v473_v6 = vld [vmem:[%s435_s29 + $0x20] sm:$0xff]  ;;  %470 = vst [vmem:[%s430_s15] sm:$0xff] %v469_v4  ;;  %472 = vst [vmem:[%s430_s15 + $0x8] sm:$0xff] %v471_v5  ;;  %v475_v7 = vld [vmem:[%s435_s29 + $0x30] sm:$0xff] }
  0x3d   : > { %474 = vst [vmem:[%s430_s15 + $0x10] sm:$0xff] %v473_v6  ;;  %476 = vst [vmem:[%s430_s15 + $0x18] sm:$0xff] %v475_v7 }
  0x3e PF: > { %p2280_p0 = scmp.ge.s32.totalorder %s3172_s26, 1  ;;  %p517_p1 = scmp.lt.s32.totalorder %s3172_s26, 5 }
  0x40   : > { %p518_p2 = pnand %p2280_p0, %p517_p1 }
  0x41   : > { %s524_s1 = sand.u32 (!%p518_p2), 1, %s3148_s20   ;;  %s3782_s14 = sand.u32 (!%p518_p2), 1, %s3140_s18  }
  0x42   : > { %521 = sbr.rel (%p518_p2) target bundleno = 1003 (0x3eb), region = 132  ;;  %s2281_s12 = sshll.u32 (!%p518_p2), %s524_s1, 5 }
  0x43   : > { %s2283_s28 = sshll.u32 (!%p518_p2), %s3782_s14, 7  ;;  %s2284_s11 = sshll.u32 (!%p518_p2), %s3156_s22, 4 }
  0x44   : > { %p600_p3 = scmp.lt.s32.totalorder (!%p518_p2), %s2284_s11, 31  ;;  %s2286_s10 = sshll.u32 (!%p518_p2), %s3160_s23, 4 }
  0x45   : > { %p608_p4 = scmp.lt.s32.totalorder (!%p518_p2), %s2286_s10, 31  ;;  %s3805_s0 = sld [smem:[#allocation18_spill]] (!%p518_p2) }
  0x46   : > { %s3381_s2 = scalar_lea.vmem (!%p518_p2), [#allocation5], %s2281_s12  ;;  %s3383_s25 = scalar_lea.vmem (!%p518_p2), [#allocation6], %s2283_s28 }
  0x47   : > { %p2294_p5 = scmp.ne.s32.totalorder (!%p518_p2), %s3156_s22, 0 }
  0x49   : > { %s3830_s11 = smov (!%p600_p3, %s2284_s11), 31  ;;  %s3832_s10 = smov (!%p608_p4, %s2286_s10), 31 }
  0x4a   : > { %s2285_s17 = sshll.u32 %s3830_s11, 2  ;;  %s2287_s15 = sshll.u32 %s3832_s10, 2  ;;  %v3174_v8 = vmov (!%p2294_p5), 0.0  }
  0x4b   : > { %s3357_s29 = scalar_lea.vmem %s3805_s0, %s2285_s17  ;;  %s3362_s20 = scalar_lea.vmem %s3767_s3, %s2287_s15  ;;  %637 = vst [vmem:[#allocation2] sm:$0xff] (!%p2294_p5), %v3174_v8  ;;  %638 = vst [vmem:[#allocation2 + $0x8] sm:$0xff] (!%p2294_p5), %v3174_v8 }
  0x4c   : > { %s2289_s1 = sshll.u32 %s3832_s10, 3  ;;  %s3379_s0 = scalar_lea.vmem [#allocation4], %s2281_s12  ;;  %639 = vst [vmem:[#allocation2 + $0x10] sm:$0xff] (!%p2294_p5), %v3174_v8  ;;  %640 = vst [vmem:[#allocation2 + $0x18] sm:$0xff] (!%p2294_p5), %v3174_v8 }
  0x4d   : > { %s3367_s27 = scalar_lea.vmem %s3768_s4, %s2289_s1  ;;  %s3372_s11 = scalar_lea.vmem %s3769_s5, %s2289_s1  ;;  %641 = vst [vmem:[#allocation2 + $0x20] sm:$0xff] (!%p2294_p5), %v3174_v8  ;;  %642 = vst [vmem:[#allocation2 + $0x28] sm:$0xff] (!%p2294_p5), %v3174_v8 }
  0x4e   : > { %s3377_s13 = scalar_lea.vmem %s3772_s8, %s2289_s1  ;;  %636 = sbr.rel (%p2294_p5) target bundleno = 91 (0x5b), region = 144  ;;  %643 = vst [vmem:[#allocation2 + $0x30] sm:$0xff] (!%p2294_p5), %v3174_v8  ;;  %644 = vst [vmem:[#allocation2 + $0x38] sm:$0xff] (!%p2294_p5), %v3174_v8 }
  0x4f   : > { %645 = vst [vmem:[#allocation2 + $0x40] sm:$0xff] (!%p2294_p5), %v3174_v8  ;;  %646 = vst [vmem:[#allocation2 + $0x48] sm:$0xff] (!%p2294_p5), %v3174_v8 }
  0x50   : > { %647 = vst [vmem:[#allocation2 + $0x50] sm:$0xff] (!%p2294_p5), %v3174_v8  ;;  %648 = vst [vmem:[#allocation2 + $0x58] sm:$0xff] (!%p2294_p5), %v3174_v8 }
  0x51   : > { %649 = vst [vmem:[#allocation2 + $0x60] sm:$0xff] (!%p2294_p5), %v3174_v8  ;;  %650 = vst [vmem:[#allocation2 + $0x68] sm:$0xff] (!%p2294_p5), %v3174_v8 }
  0x52   : > { %651 = vst [vmem:[#allocation2 + $0x70] sm:$0xff] (!%p2294_p5), %v3174_v8  ;;  %652 = vst [vmem:[#allocation2 + $0x78] sm:$0xff] (!%p2294_p5), %v3174_v8 }
  0x53   : > { %653 = vst [vmem:[#allocation3] sm:$0xff] (!%p2294_p5), %v3174_v8  ;;  %654 = vst [vmem:[#allocation3 + $0x8] sm:$0xff] (!%p2294_p5), %v3174_v8 }
  0x54   : > { %655 = vst [vmem:[#allocation3 + $0x10] sm:$0xff] (!%p2294_p5), %v3174_v8  ;;  %656 = vst [vmem:[#allocation3 + $0x18] sm:$0xff] (!%p2294_p5), %v3174_v8 }
  0x55   : > { %657 = vst [vmem:[#allocation3 + $0x20] sm:$0xff] %v3174_v8  ;;  %658 = vst [vmem:[#allocation3 + $0x28] sm:$0xff] %v3174_v8 }
  0x56   : > { %659 = vst [vmem:[#allocation3 + $0x30] sm:$0xff] %v3174_v8  ;;  %660 = vst [vmem:[#allocation3 + $0x38] sm:$0xff] %v3174_v8 }
  0x57   : > { %661 = vst [vmem:[#allocation3 + $0x40] sm:$0xff] %v3174_v8  ;;  %662 = vst [vmem:[#allocation3 + $0x48] sm:$0xff] %v3174_v8 }
  0x58   : > { %663 = vst [vmem:[#allocation3 + $0x50] sm:$0xff] %v3174_v8  ;;  %664 = vst [vmem:[#allocation3 + $0x58] sm:$0xff] %v3174_v8 }
  0x59   : > { %665 = vst [vmem:[#allocation3 + $0x60] sm:$0xff] %v3174_v8  ;;  %666 = vst [vmem:[#allocation3 + $0x68] sm:$0xff] %v3174_v8 }
  0x5a   : > { %667 = vst [vmem:[#allocation3 + $0x70] sm:$0xff] %v3174_v8  ;;  %668 = vst [vmem:[#allocation3 + $0x78] sm:$0xff] %v3174_v8 }
  0x5b PF: > { %v3052_v9 = vld [vmem:[%s3357_s29] sm:$0xff]   ;;  %v3053_v10 = vld [vmem:[%s3357_s29 + $0x8] sm:$0xff]   ;;  %v3054_v11 = vld [vmem:[%s3357_s29 + $0x10] sm:$0xff]   ;;  %p2303_p6 = scmp.ne.s32.totalorder %s3156_s22, 1 }
  0x5c   : > { %2513 = vmatprep.subr.bf16.mxu0 %v3052_v9  ;;  %2545 = vmatprep.subr.bf16.mxu1 %v3052_v9  ;;  %v3055_v12 = vld [vmem:[%s3357_s29 + $0x18] sm:$0xff]   ;;  %v685_v13 = vld [vmem:[%s3379_s0] sm:$0xff]  ;;  %v3057_v18 = vld [vmem:[%s3357_s29 + $0x28] sm:$0xff]   ;;  %s3806_s21 = sld [smem:[#allocation21_spill]] (!%p2303_p6)  ;;  %s3807_s14 = sld [smem:[#allocation22_spill]] (!%p2303_p6) }
  0x5d   : > { %2514 = vmatpush3.bf16.msra.mxu0 %v3052_v9  ;;  %2546 = vmatpush3.bf16.msra.mxu1 %v3052_v9  ;;  %v697_v14 = vld [vmem:[%s3381_s2] sm:$0xff]  ;;  %v689_v15 = vunpack.c.l.s8.bf16 %v685_v13  ;;  %v3058_v19 = vld [vmem:[%s3357_s29 + $0x30] sm:$0xff]   ;;  %v3059_v20 = vld [vmem:[%s3357_s29 + $0x38] sm:$0xff]   ;;  %v690_v23 = vunpack.c.h.s8.bf16 %v685_v13 }
  0x5e   : > { %2515 = vmatprep.subr.bf16.mxu0 %v3053_v10  ;;  %2547 = vmatprep.subr.bf16.mxu1 %v3053_v10  ;;  %v701_v16 = vunpack.c.l.s8.bf16 %v697_v14  ;;  %v3056_v17 = vld [vmem:[%s3357_s29 + $0x20] sm:$0xff]   ;;  %v686_v21 = vld [vmem:[%s3379_s0 + $0x8] sm:$0xff]  ;;  %v702_v24 = vunpack.c.h.s8.bf16 %v697_v14  ;;  %v687_v27 = vld [vmem:[%s3379_s0 + $0x10] sm:$0xff] }
  0x5f   : > { %2529 = vmatprep.mubr.bf16.mxu0 %v689_v15  ;;  %v698_v22 = vld [vmem:[%s3381_s2 + $0x8] sm:$0xff]  ;;  %v691_v25 = vunpack.c.l.s8.bf16 %v686_v21  ;;  %v699_v28 = vld [vmem:[%s3381_s2 + $0x10] sm:$0xff]  ;;  %v692_v29 = vunpack.c.h.s8.bf16 %v686_v21  ;;  %v693_v31 = vunpack.c.l.s8.bf16 %v687_v27  ;;  %v688_v33 = vld [vmem:[%s3379_s0 + $0x18] sm:$0xff]  ;;  %v694_v35 = vunpack.c.h.s8.bf16 %v687_v27 }
  0x60   : > { %2561 = vmatprep.mubr.bf16.mxu1 %v701_v16  ;;  %v703_v26 = vunpack.c.l.s8.bf16 %v698_v22  ;;  %v704_v30 = vunpack.c.h.s8.bf16 %v698_v22  ;;  %v705_v32 = vunpack.c.l.s8.bf16 %v699_v28  ;;  %v700_v34 = vld [vmem:[%s3381_s2 + $0x18] sm:$0xff]  ;;  %v706_v36 = vunpack.c.h.s8.bf16 %v699_v28  ;;  %v711_v41 = vld [vmem:[#allocation2 + $0x10] sm:$0xff]  ;;  %v709_v43 = vld [vmem:[#allocation2] sm:$0xff] }
  0x61   : > { %2516 = vmatpush3.bf16.msra.mxu0 %v3053_v10  ;;  %2548 = vmatpush3.bf16.msra.mxu1 %v3053_v10  ;;  %v695_v37 = vunpack.c.l.s8.bf16 %v688_v33  ;;  %v707_v38 = vunpack.c.l.s8.bf16 %v700_v34  ;;  %v696_v39 = vunpack.c.h.s8.bf16 %v688_v33  ;;  %v708_v40 = vunpack.c.h.s8.bf16 %v700_v34  ;;  %v904_v42 = vld [vmem:[#allocation3 + $0x10] sm:$0xff]  ;;  %v902_v44 = vld [vmem:[#allocation3] sm:$0xff]  ;;  %v712_v47 = vld [vmem:[#allocation2 + $0x18] sm:$0xff] }
  0x62   : > { %2517 = vmatprep.subr.bf16.mxu0 %v3054_v11  ;;  %2549 = vmatprep.subr.bf16.mxu1 %v3054_v11  ;;  %v905_v48 = vld [vmem:[#allocation3 + $0x18] sm:$0xff]  ;;  %v710_v53 = vld [vmem:[#allocation2 + $0x8] sm:$0xff]  ;;  %v715_v1 = vld [vmem:[#allocation2 + $0x30] sm:$0xff] }
  0x63   : > { %v903_v54 = vld [vmem:[#allocation3 + $0x8] sm:$0xff]  ;;  %v908_v2 = vld [vmem:[#allocation3 + $0x30] sm:$0xff]  ;;  %v713_v3 = vld [vmem:[#allocation2 + $0x20] sm:$0xff] }
  0x64   : > { %v906_v4 = vld [vmem:[#allocation3 + $0x20] sm:$0xff]  ;;  %v716_v7 = vld [vmem:[#allocation2 + $0x38] sm:$0xff]  ;;  %v714_v13 = vld [vmem:[#allocation2 + $0x28] sm:$0xff] }
  0x65   : > { %2518 = vmatpush3.bf16.msra.mxu0 %v3054_v11  ;;  %2550 = vmatpush3.bf16.msra.mxu1 %v3054_v11  ;;  %v909_v8 = vld [vmem:[#allocation3 + $0x38] sm:$0xff]  ;;  %v907_v14 = vld [vmem:[#allocation3 + $0x28] sm:$0xff]  ;;  %v717_v27 = vld [vmem:[#allocation2 + $0x40] sm:$0xff] }
  0x66   : > { %2519 = vmatprep.subr.bf16.mxu0 %v3055_v12  ;;  %2551 = vmatprep.subr.bf16.mxu1 %v3055_v12  ;;  %v910_v28 = vld [vmem:[#allocation3 + $0x40] sm:$0xff] }
  0x69   : > { %2520 = vmatpush3.bf16.msra.mxu0 %v3055_v12  ;;  %2552 = vmatpush3.bf16.msra.mxu1 %v3055_v12 }
  0x6a   : > { %2521 = vmatprep.subr.bf16.mxu0 %v3056_v17  ;;  %2553 = vmatprep.subr.bf16.mxu1 %v3056_v17 }
  0x6d   : > { %2522 = vmatpush3.bf16.msra.mxu0 %v3056_v17  ;;  %2554 = vmatpush3.bf16.msra.mxu1 %v3056_v17 }
  0x6e   : > { %2523 = vmatprep.subr.bf16.mxu0 %v3057_v18  ;;  %2555 = vmatprep.subr.bf16.mxu1 %v3057_v18 }
  0x71   : > { %2524 = vmatpush3.bf16.msra.mxu0 %v3057_v18  ;;  %2556 = vmatpush3.bf16.msra.mxu1 %v3057_v18 }
  0x72   : > { %2525 = vmatprep.subr.bf16.mxu0 %v3058_v19  ;;  %2557 = vmatprep.subr.bf16.mxu1 %v3058_v19 }
  0x75   : > { %2526 = vmatpush3.bf16.msra.mxu0 %v3058_v19  ;;  %2558 = vmatpush3.bf16.msra.mxu1 %v3058_v19 }
  0x76   : > { %2527 = vmatprep.subr.bf16.mxu0 %v3059_v20  ;;  %2559 = vmatprep.subr.bf16.mxu1 %v3059_v20 }
  0x79   : > { %2528 = vmatpush3.bf16.msra.mxu0 %v3059_v20  ;;  %2560 = vmatpush3.bf16.msra.mxu1 %v3059_v20 }
  0x7c   : > { %2530 = vmatmul.mubr.bf16.vlgmr.msra.gmra.mrb[0].mxu0 %v690_v23  ;;  %2562 = vmatmul.mubr.bf16.vlgmr.msra.gmra.mrb[0].mxu1 %v702_v24 }
  0x7d   : > { %2533 = vmatprep.mubr.bf16.mxu0 %v691_v25  ;;  %2565 = vmatprep.mubr.bf16.mxu1 %v703_v26  ;;  %v719_v25 = vld [vmem:[#allocation2 + $0x50] sm:$0xff] }
  0x7e   : > { %v912_v26 = vld [vmem:[#allocation3 + $0x50] sm:$0xff] }
  0x84   : > { %2534 = vmatmul.mubr.bf16.gmra.mrb[4].mxu0 %v692_v29  ;;  %2566 = vmatmul.mubr.bf16.gmra.mrb[4].mxu1 %v704_v30 }
  0x85   : > { %2537 = vmatprep.mubr.bf16.mxu0 %v693_v31  ;;  %2569 = vmatprep.mubr.bf16.mxu1 %v705_v32  ;;  %v720_v31 = vld [vmem:[#allocation2 + $0x58] sm:$0xff] }
  0x86   : > { %v913_v32 = vld [vmem:[#allocation3 + $0x58] sm:$0xff] }
  0x8c   : > { %2538 = vmatmul.mubr.bf16.gmra.mrb[8].mxu0 %v694_v35  ;;  %2570 = vmatmul.mubr.bf16.gmra.mrb[8].mxu1 %v706_v36 }
  0x8d   : > { %2541 = vmatprep.mubr.bf16.mxu0 %v695_v37  ;;  %2573 = vmatprep.mubr.bf16.mxu1 %v707_v38  ;;  %v718_v37 = vld [vmem:[#allocation2 + $0x48] sm:$0xff] }
  0x8e   : > { %v911_v38 = vld [vmem:[#allocation3 + $0x48] sm:$0xff] }
  0x94   : > { %2542 = vmatmul.mubr.bf16.gmra.mrb[12].mxu0 %v696_v39  ;;  %2574 = vmatmul.mubr.bf16.gmra.mrb[12].mxu1 %v708_v40 }
 0x14f   : > { %v2531_v45 = vpop.f32.mrb[0].mxu0  ;;  %v2563_v46 = vpop.f32.mrb[0].mxu1 }
 0x150   : > { %v872_v49 = vadd.f32 %v2531_v45, %v711_v41  ;;  %v1017_v50 = vadd.f32 %v2563_v46, %v904_v42  ;;  %v807_v51 = vpop.f32.mrb[1].mxu0  ;;  %v952_v52 = vpop.f32.mrb[1].mxu1 }
 0x151   : > { %v870_v55 = vadd.f32 %v807_v51, %v709_v43  ;;  %v1015_v56 = vadd.f32 %v952_v52, %v902_v44  ;;  %v2532_v57 = vpop.f32.mrb[2].mxu0  ;;  %v2564_v58 = vpop.f32.mrb[2].mxu1  ;;  %v721_v51 = vld [vmem:[#allocation2 + $0x60] sm:$0xff] }
 0x152   : > { %888 = vst [vmem:[#allocation2 + $0x10] sm:$0xff] %v872_v49  ;;  %1033 = vst [vmem:[#allocation3 + $0x10] sm:$0xff] %v1017_v50  ;;  %v873_v59 = vadd.f32 %v2532_v57, %v712_v47  ;;  %v1018_v60 = vadd.f32 %v2564_v58, %v905_v48  ;;  %v810_v61 = vpop.f32.mrb[3].mxu0  ;;  %v955_v62 = vpop.f32.mrb[3].mxu1  ;;  %v723_v49 = vld [vmem:[#allocation2 + $0x70] sm:$0xff]  ;;  %v914_v52 = vld [vmem:[#allocation3 + $0x60] sm:$0xff] }
 0x153   : > { %886 = vst [vmem:[#allocation2] sm:$0xff] %v870_v55  ;;  %1031 = vst [vmem:[#allocation3] sm:$0xff] %v1015_v56  ;;  %v871_v63 = vadd.f32 %v810_v61, %v710_v53  ;;  %v1016_v0 = vadd.f32 %v955_v62, %v903_v54  ;;  %v916_v50 = vld [vmem:[#allocation3 + $0x70] sm:$0xff]  ;;  %v724_v55 = vld [vmem:[#allocation2 + $0x78] sm:$0xff] }
 0x154   : > { %889 = vst [vmem:[#allocation2 + $0x18] sm:$0xff] %v873_v59  ;;  %1034 = vst [vmem:[#allocation3 + $0x18] sm:$0xff] %v1018_v60  ;;  %v917_v56 = vld [vmem:[#allocation3 + $0x78] sm:$0xff]  ;;  %v722_v61 = vld [vmem:[#allocation2 + $0x68] sm:$0xff] }
 0x155   : > { %887 = vst [vmem:[#allocation2 + $0x8] sm:$0xff] %v871_v63  ;;  %1032 = vst [vmem:[#allocation3 + $0x8] sm:$0xff] %v1016_v0  ;;  %v915_v62 = vld [vmem:[#allocation3 + $0x68] sm:$0xff] }
 0x157   : > { %v2535_v5 = vpop.f32.mrb[4].mxu0  ;;  %v2567_v6 = vpop.f32.mrb[4].mxu1 }
 0x158   : > { %v876_v9 = vadd.f32 %v2535_v5, %v715_v1  ;;  %v1021_v10 = vadd.f32 %v2567_v6, %v908_v2  ;;  %v823_v11 = vpop.f32.mrb[5].mxu0  ;;  %v968_v12 = vpop.f32.mrb[5].mxu1 }
 0x159   : > { %v874_v15 = vadd.f32 %v823_v11, %v713_v3  ;;  %v1019_v16 = vadd.f32 %v968_v12, %v906_v4  ;;  %v2536_v17 = vpop.f32.mrb[6].mxu0  ;;  %v2568_v18 = vpop.f32.mrb[6].mxu1  ;;  %v3175_v11 = vmov (!%p2303_p6), 0   ;;  %v1196_v12 = vld [vmem:[%s3372_s11 + $0x8] sm:$0xff] (!%p2303_p6) }
 0x15a   : > { %892 = vst [vmem:[#allocation2 + $0x30] sm:$0xff] %v876_v9  ;;  %1037 = vst [vmem:[#allocation3 + $0x30] sm:$0xff] %v1021_v10  ;;  %v877_v19 = vadd.f32 %v2536_v17, %v716_v7  ;;  %v1022_v20 = vadd.f32 %v2568_v18, %v909_v8  ;;  %v826_v21 = vpop.f32.mrb[7].mxu0  ;;  %v971_v22 = vpop.f32.mrb[7].mxu1  ;;  %v1068_v9 = vld [vmem:[%s3367_s27 + $0x8] sm:$0xff] (!%p2303_p6)  ;;  %v1067_v10 = vld [vmem:[%s3367_s27] sm:$0xff] (!%p2303_p6)  ;;  %3061 = vset.pattern.permute.xlu1 (!%p2303_p6), %v3175_v11  ;;  %3060 = vset.pattern.permute.xlu0 (!%p2303_p6), %v3175_v11 }
 0x15b   : > { %890 = vst [vmem:[#allocation2 + $0x20] sm:$0xff] %v874_v15  ;;  %1035 = vst [vmem:[#allocation3 + $0x20] sm:$0xff] %v1019_v16  ;;  %v875_v23 = vadd.f32 %v826_v21, %v714_v13  ;;  %v1020_v24 = vadd.f32 %v971_v22, %v907_v14  ;;  %1090 = vperm.xlu1 (!%p2303_p6), %3061, %v1068_v9   ;;  %1085 = vperm.xlu0 (!%p2303_p6), %3060, %v1067_v10   ;;  %v1195_v13 = vld [vmem:[%s3372_s11] sm:$0xff] (!%p2303_p6)  ;;  %v1197_v14 = vld [vmem:[%s3372_s11 + $0x10] sm:$0xff] (!%p2303_p6) }
 0x15c   : > { %893 = vst [vmem:[#allocation2 + $0x38] sm:$0xff] %v877_v19  ;;  %1038 = vst [vmem:[#allocation3 + $0x38] sm:$0xff] %v1022_v20  ;;  %v1069_v15 = vld [vmem:[%s3367_s27 + $0x10] sm:$0xff] (!%p2303_p6)  ;;  %v1198_v16 = vld [vmem:[%s3372_s11 + $0x18] sm:$0xff] (!%p2303_p6) }
 0x15d   : > { %891 = vst [vmem:[#allocation2 + $0x28] sm:$0xff] %v875_v23  ;;  %1036 = vst [vmem:[#allocation3 + $0x28] sm:$0xff] %v1020_v24  ;;  %v1070_v17 = vld [vmem:[%s3367_s27 + $0x18] sm:$0xff] (!%p2303_p6)  ;;  %v1339_v18 = vld [vmem:[%s3770_s6] sm:$0xff] (!%p2303_p6) }
 0x15e   : > { %v1340_v19 = vld [vmem:[%s3770_s6 + $0x8] sm:$0xff] (!%p2303_p6)  ;;  %v1341_v20 = vld [vmem:[%s3770_s6 + $0x10] sm:$0xff] (!%p2303_p6)  ;;  %v1342_v21 = vld [vmem:[%s3770_s6 + $0x18] sm:$0xff] (!%p2303_p6) }
 0x15f   : > { %v2539_v29 = vpop.f32.mrb[8].mxu0  ;;  %v2571_v30 = vpop.f32.mrb[8].mxu1  ;;  %1218 = vperm.xlu1 (!%p2303_p6), %3061, %v1196_v12   ;;  %1213 = vperm.xlu0 (!%p2303_p6), %3060, %v1195_v13   ;;  %v2833_v22 = vpack.c.bf16 (!%p2303_p6), %v1340_v19, %v1339_v18  ;;  %v2837_v23 = vpack.c.bf16 (!%p2303_p6), %v1342_v21, %v1341_v20  ;;  %v1199_v24 = vld [vmem:[%s3372_s11 + $0x20] sm:$0xff] (!%p2303_p6)  ;;  %v1204_v9 = vld [vmem:[%s3372_s11 + $0x48] sm:$0xff] (!%p2303_p6)  ;;  %v1077_v18 = vld [vmem:[%s3367_s27 + $0x50] sm:$0xff] (!%p2303_p6) }
 0x160   : > { %v880_v33 = vadd.f32 %v2539_v29, %v719_v25  ;;  %v1025_v34 = vadd.f32 %v2571_v30, %v912_v26  ;;  %v839_v35 = vpop.f32.mrb[9].mxu0  ;;  %v984_v36 = vpop.f32.mrb[9].mxu1  ;;  %v1343_v25 = vld [vmem:[%s3770_s6 + $0x20] sm:$0xff] (!%p2303_p6)  ;;  %v1344_v26 = vld [vmem:[%s3770_s6 + $0x28] sm:$0xff] (!%p2303_p6) }
 0x161   : > { %v878_v39 = vadd.f32 %v839_v35, %v717_v27  ;;  %v1023_v40 = vadd.f32 %v984_v36, %v910_v28  ;;  %v2540_v41 = vpop.f32.mrb[10].mxu0  ;;  %v2572_v42 = vpop.f32.mrb[10].mxu1  ;;  %v1071_v27 = vld [vmem:[%s3367_s27 + $0x20] sm:$0xff] (!%p2303_p6)  ;;  %2834 = vmatprep.subr.bf16.mxu0 (!%p2303_p6), %v2833_v22  ;;  %v1356_v29 = vld [vmem:[%s3770_s6 + $0x88] sm:$0xff] (!%p2303_p6)  ;;  %v1358_v35 = vld [vmem:[%s3770_s6 + $0x98] sm:$0xff] (!%p2303_p6) }
 0x162   : > { %896 = vst [vmem:[#allocation2 + $0x50] sm:$0xff] %v880_v33  ;;  %1041 = vst [vmem:[#allocation3 + $0x50] sm:$0xff] %v1025_v34  ;;  %v881_v43 = vadd.f32 %v2540_v41, %v720_v31  ;;  %v1026_v44 = vadd.f32 %v2572_v42, %v913_v32  ;;  %v842_v45 = vpop.f32.mrb[11].mxu0  ;;  %v987_v46 = vpop.f32.mrb[11].mxu1  ;;  %v1355_v28 = vld [vmem:[%s3770_s6 + $0x80] sm:$0xff] (!%p2303_p6)  ;;  %2836 = vmatpush3.bf16.msra.mxu0 (!%p2303_p6), %v2833_v22  ;;  %v2841_v32 = vpack.c.bf16 (!%p2303_p6), %v1344_v26, %v1343_v25  ;;  %v1357_v34 = vld [vmem:[%s3770_s6 + $0x90] sm:$0xff] (!%p2303_p6) }
 0x163   : > { %894 = vst [vmem:[#allocation2 + $0x40] sm:$0xff] %v878_v39  ;;  %1039 = vst [vmem:[#allocation3 + $0x40] sm:$0xff] %v1023_v40  ;;  %v879_v47 = vadd.f32 %v842_v45, %v718_v37  ;;  %v1024_v48 = vadd.f32 %v987_v46, %v911_v38  ;;  %1223 = vperm.xlu1 (!%p2303_p6), %3061, %v1197_v14   ;;  %1095 = vperm.xlu0 (!%p2303_p6), %3060, %v1069_v15   ;;  %v3438_v31 = vld [vmem:[%s3362_s20] sm:$0xff] (!%p2303_p6)   ;;  %v1345_v36 = vld [vmem:[%s3770_s6 + $0x30] sm:$0xff] (!%p2303_p6) }
 0x164   : > { %897 = vst [vmem:[#allocation2 + $0x58] sm:$0xff] %v881_v43  ;;  %1042 = vst [vmem:[#allocation3 + $0x58] sm:$0xff] %v1026_v44  ;;  %v2801_v30 = vpack.c.bf16 (!%p2303_p6), %v1356_v29, %v1355_v28  ;;  %2838 = vmatprep.subr.bf16.mxu0 (!%p2303_p6), %v2837_v23  ;;  %v2316_v33 = vunpack.c.l.bf16 (!%p2303_p6), %v3438_v31  ;;  %v1346_v37 = vld [vmem:[%s3770_s6 + $0x38] sm:$0xff] (!%p2303_p6)  ;;  %v2805_v38 = vpack.c.bf16 (!%p2303_p6), %v1358_v35, %v1357_v34  ;;  %v1359_v39 = vld [vmem:[%s3770_s6 + $0xa0] sm:$0xff] (!%p2303_p6)  ;;  %v2317_v26 = vunpack.c.h.bf16 (!%p2303_p6), %v3438_v31 }
 0x165   : > { %895 = vst [vmem:[#allocation2 + $0x48] sm:$0xff] %v879_v47  ;;  %1040 = vst [vmem:[#allocation3 + $0x48] sm:$0xff] %v1024_v48  ;;  %v1200_v40 = vld [vmem:[%s3372_s11 + $0x28] sm:$0xff] (!%p2303_p6)  ;;  %v2845_v43 = vpack.c.bf16 (!%p2303_p6), %v1346_v37, %v1345_v36  ;;  %v1347_v44 = vld [vmem:[%s3770_s6 + $0x40] sm:$0xff] (!%p2303_p6) }
 0x166   : > { %v1072_v41 = vld [vmem:[%s3367_s27 + $0x28] sm:$0xff] (!%p2303_p6)  ;;  %2802 = vmatprep.subr.bf16.mxu1 (!%p2303_p6), %v2801_v30  ;;  %2665 = vmatprep.mubr.f32.mxu0 (!%p2303_p6), %v2316_v33  ;;  %v1361_v47 = vld [vmem:[%s3770_s6 + $0xb0] sm:$0xff] (!%p2303_p6)  ;;  %v1362_v48 = vld [vmem:[%s3770_s6 + $0xb8] sm:$0xff] (!%p2303_p6) }
 0x167   : > { %v2543_v53 = vpop.f32.mrb[12].mxu0  ;;  %v2575_v54 = vpop.f32.mrb[12].mxu1  ;;  %1050 = sbr.rel (%p2303_p6) target bundleno = 975 (0x3cf), region = 148  ;;  %1228 = vperm.xlu1 (!%p2303_p6), %3061, %v1198_v16   ;;  %1100 = vperm.xlu0 (!%p2303_p6), %3060, %v1070_v17   ;;  %v1360_v42 = vld [vmem:[%s3770_s6 + $0xa8] sm:$0xff] (!%p2303_p6)  ;;  %v1661_v12 = vld [vmem:[%s3770_s6 + $0x100] sm:$0xff] (!%p2303_p6)  ;;  %v1369_v15 = vld [vmem:[%s3770_s6 + $0xf0] sm:$0xff] (!%p2303_p6) }
 0x168   : > { %v884_v57 = vadd.f32 %v2543_v53, %v723_v49  ;;  %v1029_v58 = vadd.f32 %v2575_v54, %v916_v50  ;;  %v855_v59 = vpop.f32.mrb[13].mxu0  ;;  %v1000_v60 = vpop.f32.mrb[13].mxu1  ;;  %2840 = vmatpush3.bf16.msra.mxu0 (!%p2303_p6), %v2837_v23  ;;  %2804 = vmatpush3.bf16.msra.mxu1 (!%p2303_p6), %v2801_v30  ;;  %v2809_v45 = vpack.c.bf16 (!%p2303_p6), %v1360_v42, %v1359_v39  ;;  %v1348_v46 = vld [vmem:[%s3770_s6 + $0x48] sm:$0xff] (!%p2303_p6)  ;;  %v1201_v49 = vld [vmem:[%s3372_s11 + $0x30] sm:$0xff] (!%p2303_p6)  ;;  %v1350_v54 = vld [vmem:[%s3770_s6 + $0x58] sm:$0xff] (!%p2303_p6) }
 0x169   : > { %v882_v63 = vadd.f32 %v855_v59, %v721_v51  ;;  %v1027_v0 = vadd.f32 %v1000_v60, %v914_v52  ;;  %v2544_v1 = vpop.f32.mrb[14].mxu0  ;;  %v2576_v2 = vpop.f32.mrb[14].mxu1  ;;  %2842 = vmatprep.subr.bf16.mxu0 (!%p2303_p6), %v2841_v32  ;;  %2806 = vmatprep.subr.bf16.mxu1 (!%p2303_p6), %v2805_v38  ;;  %v1073_v50 = vld [vmem:[%s3367_s27 + $0x30] sm:$0xff] (!%p2303_p6)  ;;  %v2849_v51 = vpack.c.bf16 (!%p2303_p6), %v1348_v46, %v1347_v44  ;;  %v1351_v60 = vld [vmem:[%s3770_s6 + $0x60] sm:$0xff] (!%p2303_p6)  ;;  %v1076_v10 = vld [vmem:[%s3367_s27 + $0x48] sm:$0xff] (!%p2303_p6) }
 0x16a   : > { %900 = vst [vmem:[#allocation2 + $0x70] sm:$0xff] %v884_v57  ;;  %1045 = vst [vmem:[#allocation3 + $0x70] sm:$0xff] %v1029_v58  ;;  %v885_v3 = vadd.f32 %v2544_v1, %v724_v55  ;;  %v1030_v4 = vadd.f32 %v2576_v2, %v917_v56  ;;  %v858_v5 = vpop.f32.mrb[15].mxu0  ;;  %v1003_v6 = vpop.f32.mrb[15].mxu1  ;;  %v1349_v52 = vld [vmem:[%s3770_s6 + $0x50] sm:$0xff] (!%p2303_p6)  ;;  %v2813_v53 = vpack.c.bf16 (!%p2303_p6), %v1362_v48, %v1361_v47  ;;  %v1363_v55 = vld [vmem:[%s3770_s6 + $0xc0] sm:$0xff] (!%p2303_p6) }
 0x16b   : > { %898 = vst [vmem:[#allocation2 + $0x60] sm:$0xff] %v882_v63  ;;  %1043 = vst [vmem:[#allocation3 + $0x60] sm:$0xff] %v1027_v0  ;;  %v883_v7 = vadd.f32 %v858_v5, %v722_v61  ;;  %v1028_v8 = vadd.f32 %v1003_v6, %v915_v62  ;;  %1233 = vperm.xlu1 (!%p2303_p6), %3061, %v1199_v24   ;;  %1105 = vperm.xlu0 (!%p2303_p6), %3060, %v1071_v27   ;;  %v1364_v56 = vld [vmem:[%s3770_s6 + $0xc8] sm:$0xff] (!%p2303_p6)  ;;  %v1202_v57 = vld [vmem:[%s3372_s11 + $0x38] sm:$0xff] (!%p2303_p6) }
 0x16c   : > { %901 = vst [vmem:[#allocation2 + $0x78] sm:$0xff] %v885_v3  ;;  %1046 = vst [vmem:[#allocation3 + $0x78] sm:$0xff] %v1030_v4  ;;  %2844 = vmatpush3.bf16.msra.mxu0 (!%p2303_p6), %v2841_v32  ;;  %2808 = vmatpush3.bf16.msra.mxu1 (!%p2303_p6), %v2805_v38  ;;  %v1074_v58 = vld [vmem:[%s3367_s27 + $0x38] sm:$0xff] (!%p2303_p6)  ;;  %v2853_v59 = vpack.c.bf16 (!%p2303_p6), %v1350_v54, %v1349_v52  ;;  %v2817_v61 = vpack.c.bf16 (!%p2303_p6), %v1364_v56, %v1363_v55  ;;  %v1352_v62 = vld [vmem:[%s3770_s6 + $0x68] sm:$0xff] (!%p2303_p6) }
 0x16d   : > { %899 = vst [vmem:[#allocation2 + $0x68] sm:$0xff] %v883_v7  ;;  %1044 = vst [vmem:[#allocation3 + $0x68] sm:$0xff] %v1028_v8  ;;  %2846 = vmatprep.subr.bf16.mxu0 (!%p2303_p6), %v2845_v43  ;;  %2810 = vmatprep.subr.bf16.mxu1 (!%p2303_p6), %v2809_v45  ;;  %v1365_v63 = vld [vmem:[%s3770_s6 + $0xd0] sm:$0xff] (!%p2303_p6)  ;;  %v1366_v0 = vld [vmem:[%s3770_s6 + $0xd8] sm:$0xff] (!%p2303_p6)  ;;  %v2857_v3 = vpack.c.bf16 (!%p2303_p6), %v1352_v62, %v1351_v60 }
 0x16e   : > { %v1203_v1 = vld [vmem:[%s3372_s11 + $0x40] sm:$0xff]  ;;  %v1353_v4 = vld [vmem:[%s3770_s6 + $0x70] sm:$0xff]  ;;  %v2821_v5 = vpack.c.bf16 %v1366_v0, %v1365_v63  ;;  %v1354_v6 = vld [vmem:[%s3770_s6 + $0x78] sm:$0xff] }
 0x16f   : > { %1238 = vperm.xlu1 %3061, %v1200_v40   ;;  %1110 = vperm.xlu0 %3060, %v1072_v41   ;;  %v1075_v2 = vld [vmem:[%s3367_s27 + $0x40] sm:$0xff]  ;;  %v1368_v8 = vld [vmem:[%s3770_s6 + $0xe8] sm:$0xff]  ;;  %v2861_v11 = vpack.c.bf16 %v1354_v6, %v1353_v4  ;;  %v1370_v16 = vld [vmem:[%s3770_s6 + $0xf8] sm:$0xff] }
 0x170   : > { %2848 = vmatpush3.bf16.msra.mxu0 %v2845_v43  ;;  %2812 = vmatpush3.bf16.msra.mxu1 %v2809_v45  ;;  %v1367_v7 = vld [vmem:[%s3770_s6 + $0xe0] sm:$0xff]  ;;  %v1662_v14 = vld [vmem:[%s3770_s6 + $0x108] sm:$0xff]  ;;  %v1205_v17 = vld [vmem:[%s3372_s11 + $0x50] sm:$0xff]  ;;  %v2829_v21 = vpack.c.bf16 %v1370_v16, %v1369_v15 }
 0x171   : > { %2850 = vmatprep.subr.bf16.mxu0 %v2849_v51  ;;  %2814 = vmatprep.subr.bf16.mxu1 %v2813_v53  ;;  %v2825_v13 = vpack.c.bf16 %v1368_v8, %v1367_v7  ;;  %v2865_v19 = vpack.c.bf16 %v1662_v14, %v1661_v12  ;;  %v2346_v20 = vld [vmem:[%s3362_s20 + $0x8] sm:$0xff]   ;;  %v1663_v22 = vld [vmem:[%s3770_s6 + $0x110] sm:$0xff]  ;;  %v1664_v23 = vld [vmem:[%s3770_s6 + $0x118] sm:$0xff] }
 0x172   : > { %v1206_v24 = vld [vmem:[%s3372_s11 + $0x58] sm:$0xff]  ;;  %v2320_v27 = vunpack.c.l.bf16 %v2346_v20  ;;  %v2869_v28 = vpack.c.bf16 %v1664_v23, %v1663_v22  ;;  %v2347_v29 = vld [vmem:[%s3362_s20 + $0x10] sm:$0xff]   ;;  %v1665_v30 = vld [vmem:[%s3770_s6 + $0x120] sm:$0xff]  ;;  %v2321_v34 = vunpack.c.h.bf16 %v2346_v20 }
 0x173   : > { %1243 = vperm.xlu1 %3061, %v1201_v49   ;;  %1115 = vperm.xlu0 %3060, %v1073_v50   ;;  %v1078_v25 = vld [vmem:[%s3367_s27 + $0x58] sm:$0xff]  ;;  %v1666_v32 = vld [vmem:[%s3770_s6 + $0x128] sm:$0xff]  ;;  %v1207_v31 = vld [vmem:[%s3372_s11 + $0x60] sm:$0xff]  ;;  %v2324_v35 = vunpack.c.l.bf16 %v2347_v29  ;;  %v2325_v42 = vunpack.c.h.bf16 %v2347_v29 }
 0x174   : > { %2852 = vmatpush3.bf16.msra.mxu0 %v2849_v51  ;;  %2816 = vmatpush3.bf16.msra.mxu1 %v2813_v53  ;;  %v1079_v33 = vld [vmem:[%s3367_s27 + $0x60] sm:$0xff]  ;;  %v2873_v36 = vpack.c.bf16 %v1666_v32, %v1665_v30  ;;  %v2348_v37 = vld [vmem:[%s3362_s20 + $0x18] sm:$0xff]   ;;  %v1667_v38 = vld [vmem:[%s3770_s6 + $0x130] sm:$0xff] }
 0x175   : > { %2854 = vmatprep.subr.bf16.mxu0 %v2853_v59  ;;  %2818 = vmatprep.subr.bf16.mxu1 %v2817_v61  ;;  %v1668_v39 = vld [vmem:[%s3770_s6 + $0x138] sm:$0xff]  ;;  %v1208_v40 = vld [vmem:[%s3372_s11 + $0x68] sm:$0xff]  ;;  %v2328_v43 = vunpack.c.l.bf16 %v2348_v37  ;;  %v2349_v45 = vld [vmem:[%s3362_s20 + $0x20] sm:$0xff]   ;;  %v2329_v50 = vunpack.c.h.bf16 %v2348_v37 }
 0x176   : > { %v1080_v41 = vld [vmem:[%s3367_s27 + $0x68] sm:$0xff]  ;;  %v2877_v44 = vpack.c.bf16 %v1668_v39, %v1667_v38  ;;  %v1669_v46 = vld [vmem:[%s3770_s6 + $0x140] sm:$0xff]  ;;  %v1209_v48 = vld [vmem:[%s3372_s11 + $0x70] sm:$0xff]  ;;  %v2332_v51 = vunpack.c.l.bf16 %v2349_v45 }
 0x177   : > { %1248 = vperm.xlu1 %3061, %v1202_v57   ;;  %1120 = vperm.xlu0 %3060, %v1074_v58   ;;  %v1670_v47 = vld [vmem:[%s3770_s6 + $0x148] sm:$0xff]  ;;  %v1081_v49 = vld [vmem:[%s3367_s27 + $0x70] sm:$0xff]  ;;  %v1672_v55 = vld [vmem:[%s3770_s6 + $0x158] sm:$0xff]  ;;  %v2333_v58 = vunpack.c.h.bf16 %v2349_v45 }
 0x178   : > { %2856 = vmatpush3.bf16.msra.mxu0 %v2853_v59  ;;  %2820 = vmatpush3.bf16.msra.mxu1 %v2817_v61  ;;  %v2881_v52 = vpack.c.bf16 %v1670_v47, %v1669_v46  ;;  %v2350_v53 = vld [vmem:[%s3362_s20 + $0x28] sm:$0xff]   ;;  %v1671_v54 = vld [vmem:[%s3770_s6 + $0x150] sm:$0xff]  ;;  %v1210_v56 = vld [vmem:[%s3372_s11 + $0x78] sm:$0xff] }
 0x179   : > { %2858 = vmatprep.subr.bf16.mxu0 %v2857_v3  ;;  %2822 = vmatprep.subr.bf16.mxu1 %v2821_v5  ;;  %v1082_v57 = vld [vmem:[%s3367_s27 + $0x78] sm:$0xff]  ;;  %v2336_v59 = vunpack.c.l.bf16 %v2350_v53  ;;  %v2885_v60 = vpack.c.bf16 %v1672_v55, %v1671_v54  ;;  %v2351_v61 = vld [vmem:[%s3362_s20 + $0x30] sm:$0xff]   ;;  %v1673_v62 = vld [vmem:[%s3770_s6 + $0x160] sm:$0xff]  ;;  %v2337_v0 = vunpack.c.h.bf16 %v2350_v53 }
 0x17a   : > { %v1674_v63 = vld [vmem:[%s3770_s6 + $0x168] sm:$0xff]  ;;  %v1675_v7 = vld [vmem:[%s3770_s6 + $0x170] sm:$0xff]  ;;  %v1676_v8 = vld [vmem:[%s3770_s6 + $0x178] sm:$0xff] }
 0x17b   : > { %1253 = vperm.xlu1 %3061, %v1203_v1   ;;  %1125 = vperm.xlu0 %3060, %v1075_v2   ;;  %v2340_v1 = vunpack.c.l.bf16 %v2351_v61  ;;  %v1909_v2 = vld [vmem:[%s3773_s9] sm:$0xff]  ;;  %v2889_v4 = vpack.c.bf16 %v1674_v63, %v1673_v62  ;;  %v1911_v15 = vld [vmem:[%s3773_s9 + $0x10] sm:$0xff]  ;;  %v1912_v16 = vld [vmem:[%s3773_s9 + $0x18] sm:$0xff] }
 0x17c   : > { %2860 = vmatpush3.bf16.msra.mxu0 %v2857_v3  ;;  %2824 = vmatpush3.bf16.msra.mxu1 %v2821_v5  ;;  %v1910_v3 = vld [vmem:[%s3773_s9 + $0x8] sm:$0xff]  ;;  %v2352_v5 = vld [vmem:[%s3362_s20 + $0x38] sm:$0xff]   ;;  %v1051_v14 = vld [vmem:[#allocation2] sm:$0xff]  ;;  %v2901_v23 = vpack.c.bf16 %v1912_v16, %v1911_v15 }
 0x17d   : > { %2862 = vmatprep.subr.bf16.mxu0 %v2861_v11  ;;  %2826 = vmatprep.subr.bf16.mxu1 %v2825_v13  ;;  %v2897_v6 = vpack.c.bf16 %v1910_v3, %v1909_v2  ;;  %v2345_v12 = vunpack.c.h.bf16 %v2352_v5  ;;  %v1179_v22 = vld [vmem:[#allocation3] sm:$0xff]  ;;  %v1181_v30 = vld [vmem:[#allocation3 + $0x10] sm:$0xff]  ;;  %v1182_v39 = vld [vmem:[#allocation3 + $0x18] sm:$0xff] }
 0x17e   : > { %v1053_v32 = vld [vmem:[#allocation2 + $0x10] sm:$0xff]  ;;  %v1184_v55 = vld [vmem:[#allocation3 + $0x28] sm:$0xff]  ;;  %v1186_v3 = vld [vmem:[#allocation3 + $0x38] sm:$0xff] }
 0x17f   : > { %1258 = vperm.xlu1 %3061, %v1204_v9   ;;  %1130 = vperm.xlu0 %3060, %v1076_v10   ;;  %v2341_v9 = vunpack.c.h.bf16 %v2351_v61  ;;  %v2344_v10 = vunpack.c.l.bf16 %v2352_v5  ;;  %v1185_v61 = vld [vmem:[#allocation3 + $0x30] sm:$0xff]  ;;  %v1188_v15 = vld [vmem:[#allocation3 + $0x48] sm:$0xff] }
 0x180   : > { %2864 = vmatpush3.bf16.msra.mxu0 %v2861_v11  ;;  %2828 = vmatpush3.bf16.msra.mxu1 %v2825_v13  ;;  %v2893_v11 = vpack.c.bf16 %v1676_v8, %v1675_v7  ;;  %v1052_v13 = vld [vmem:[#allocation2 + $0x8] sm:$0xff]  ;;  %v1057_v62 = vld [vmem:[#allocation2 + $0x30] sm:$0xff] }
 0x181   : > { %2866 = vmatprep.subr.bf16.mxu0 %v2865_v19  ;;  %2830 = vmatprep.subr.bf16.mxu1 %v2829_v21  ;;  %v1060_v16 = vld [vmem:[#allocation2 + $0x48] sm:$0xff] }
 0x183   : > { %1263 = vperm.xlu1 %3061, %v1205_v17   ;;  %1135 = vperm.xlu0 %3060, %v1077_v18  }
 0x184   : > { %2666 = vmatmul.mubr.f32.vlgmr.msra.gmra.mrb[0].mxu0 %v2317_v26  ;;  %2832 = vmatpush3.bf16.msra.mxu1 %v2829_v21  ;;  %v1180_v21 = vld [vmem:[#allocation3 + $0x8] sm:$0xff] }
 0x185   : > { %2868 = vmatpush3.bf16.msra.mxu0 %v2865_v19  ;;  %2668 = vmatprep.mubr.f32.mxu0 %v2320_v27 }
 0x186   : > { %2870 = vmatprep.subr.bf16.mxu0 %v2869_v28  ;;  %2898 = vmatprep.subr.bf16.mxu1 %v2897_v6 }
 0x187   : > { %1268 = vperm.xlu1 %3061, %v1206_v24   ;;  %1140 = vperm.xlu0 %3060, %v1078_v25   ;;  %v1913_v24 = vld [vmem:[%s3773_s9 + $0x20] sm:$0xff]  ;;  %v1914_v25 = vld [vmem:[%s3773_s9 + $0x28] sm:$0xff] }
 0x188   : > { %2669 = vmatmul.mubr.f32.gmra.mrb[2].mxu0 %v2321_v34  ;;  %v1916_v34 = vld [vmem:[%s3773_s9 + $0x38] sm:$0xff] }
 0x189   : > { %2872 = vmatpush3.bf16.msra.mxu0 %v2869_v28  ;;  %2671 = vmatprep.mubr.f32.mxu0 %v2324_v35 }
 0x18a   : > { %2874 = vmatprep.subr.bf16.mxu0 %v2873_v36 }
 0x18b   : > { %1273 = vperm.xlu1 %3061, %v1207_v31   ;;  %1145 = vperm.xlu0 %3060, %v1079_v33   ;;  %v2905_v31 = vpack.c.bf16 %v1914_v25, %v1913_v24  ;;  %v1915_v33 = vld [vmem:[%s3773_s9 + $0x30] sm:$0xff] }
 0x18c   : > { %2672 = vmatmul.mubr.f32.gmra.mrb[4].mxu0 %v2325_v42  ;;  %v1917_v42 = vld [vmem:[%s3773_s9 + $0x40] sm:$0xff] }
 0x18d   : > { %2876 = vmatpush3.bf16.msra.mxu0 %v2873_v36  ;;  %2674 = vmatprep.mubr.f32.mxu0 %v2328_v43  ;;  %v1918_v43 = vld [vmem:[%s3773_s9 + $0x48] sm:$0xff] }
 0x18e   : > { %2878 = vmatprep.subr.bf16.mxu0 %v2877_v44 }
 0x18f   : > { %1278 = vperm.xlu1 %3061, %v1208_v40   ;;  %1150 = vperm.xlu0 %3060, %v1080_v41   ;;  %v1054_v40 = vld [vmem:[#allocation2 + $0x18] sm:$0xff]  ;;  %v2909_v41 = vpack.c.bf16 %v1916_v34, %v1915_v33  ;;  %v1191_v33 = vld [vmem:[#allocation3 + $0x60] sm:$0xff] }
 0x190   : > { %2675 = vmatmul.mubr.f32.gmra.mrb[6].mxu0 %v2329_v50  ;;  %v2913_v50 = vpack.c.bf16 %v1918_v43, %v1917_v42  ;;  %v1063_v34 = vld [vmem:[#allocation2 + $0x60] sm:$0xff] }
 0x191   : > { %2880 = vmatpush3.bf16.msra.mxu0 %v2877_v44  ;;  %2677 = vmatprep.mubr.f32.mxu0 %v2332_v51 }
 0x192   : > { %2882 = vmatprep.subr.bf16.mxu0 %v2881_v52 }
 0x193   : > { %1283 = vperm.xlu1 %3061, %v1209_v48   ;;  %1155 = vperm.xlu0 %3060, %v1081_v49   ;;  %v1183_v48 = vld [vmem:[#allocation3 + $0x20] sm:$0xff] }
 0x194   : > { %2678 = vmatmul.mubr.f32.gmra.mrb[8].mxu0 %v2333_v58  ;;  %v1055_v49 = vld [vmem:[#allocation2 + $0x20] sm:$0xff] }
 0x195   : > { %2884 = vmatpush3.bf16.msra.mxu0 %v2881_v52  ;;  %2680 = vmatprep.mubr.f32.mxu0 %v2336_v59 }
 0x196   : > { %2886 = vmatprep.subr.bf16.mxu0 %v2885_v60 }
 0x197   : > { %1288 = vperm.xlu1 %3061, %v1210_v56   ;;  %1160 = vperm.xlu0 %3060, %v1082_v57   ;;  %v1056_v56 = vld [vmem:[#allocation2 + $0x28] sm:$0xff] }
 0x198   : > { %2681 = vmatmul.mubr.f32.gmra.mrb[10].mxu0 %v2337_v0 }
 0x199   : > { %2888 = vmatpush3.bf16.msra.mxu0 %v2885_v60  ;;  %2683 = vmatprep.mubr.f32.mxu0 %v2340_v1 }
 0x19a   : > { %2890 = vmatprep.subr.bf16.mxu0 %v2889_v4 }
 0x19c   : > { %2684 = vmatmul.mubr.f32.gmra.mrb[12].mxu0 %v2341_v9  ;;  %v1187_v9 = vld [vmem:[#allocation3 + $0x40] sm:$0xff] }
 0x19d   : > { %2892 = vmatpush3.bf16.msra.mxu0 %v2889_v4  ;;  %2686 = vmatprep.mubr.f32.mxu0 %v2344_v10  ;;  %v1058_v4 = vld [vmem:[#allocation2 + $0x38] sm:$0xff]  ;;  %v1059_v10 = vld [vmem:[#allocation2 + $0x40] sm:$0xff] }
 0x19e   : > { %2894 = vmatprep.subr.bf16.mxu0 %v2893_v11 }
 0x1a0   : > { %2687 = vmatmul.mubr.f32.gmra.mrb[14].mxu0 %v2345_v12 }
 0x1a1   : > { %2896 = vmatpush3.bf16.msra.mxu0 %v2893_v11 }
 0x1da   : > { %v1091_v17 = vpop.permute.xlu1 %1090  ;;  %v1086_v18 = vpop.permute.xlu0 %1085 }
 0x1db   : > { %v1164_v19 = vmul.f32 %v1091_v17, %v1052_v13  ;;  %v1163_v20 = vmul.f32 %v1086_v18, %v1051_v14 }
 0x1dd   : > { %2609 = vmatprep.mubr.f32.mxu1 %v1163_v20 }
 0x1de   : > { %v1219_v26 = vpop.permute.xlu1 %1218  ;;  %v1214_v27 = vpop.permute.xlu0 %1213  ;;  %2610 = vmatmul.mubr.f32.vlgmr.msra.gmra.mrb[0].mxu1 %v1164_v19 }
 0x1df   : > { %v1292_v28 = vmul.f32 %v1219_v26, %v1180_v21  ;;  %v1291_v29 = vmul.f32 %v1214_v27, %v1179_v22  ;;  %2900 = vmatpush3.bf16.msra.mxu1 %v2897_v6  ;;  %v1189_v21 = vld [vmem:[#allocation3 + $0x50] sm:$0xff]  ;;  %v1190_v27 = vld [vmem:[#allocation3 + $0x58] sm:$0xff] }
 0x1e0   : > { %2902 = vmatprep.subr.bf16.mxu1 %v2901_v23  ;;  %v1061_v22 = vld [vmem:[#allocation2 + $0x50] sm:$0xff] }
 0x1e1   : > { %2721 = vmatprep.mubr.f32.mxu0 %v1291_v29 }
 0x1e2   : > { %v1224_v35 = vpop.permute.xlu1 %1223  ;;  %2722 = vmatmul.mubr.f32.vlgmr.msra.gmra.mrb[0].mxu0 %v1292_v28  ;;  %v1096_v36 = vpop.permute.xlu0 %1095  ;;  %v1062_v28 = vld [vmem:[#allocation2 + $0x58] sm:$0xff] }
 0x1e3   : > { %v1293_v37 = vmul.f32 %v1224_v35, %v1181_v30  ;;  %v1165_v38 = vmul.f32 %v1096_v36, %v1053_v32  ;;  %2904 = vmatpush3.bf16.msra.mxu1 %v2901_v23 }
 0x1e4   : > { %2906 = vmatprep.subr.bf16.mxu1 %v2905_v31 }
 0x1e5   : > { %2612 = vmatprep.mubr.f32.mxu1 %v1165_v38  ;;  %2724 = vmatprep.mubr.f32.mxu0 %v1293_v37 }
 0x1e6   : > { %v1229_v44 = vpop.permute.xlu1 %1228  ;;  %v1101_v45 = vpop.permute.xlu0 %1100 }
 0x1e7   : > { %v1294_v46 = vmul.f32 %v1229_v44, %v1182_v39  ;;  %v1166_v47 = vmul.f32 %v1101_v45, %v1054_v40  ;;  %2908 = vmatpush3.bf16.msra.mxu1 %v2905_v31  ;;  %v1192_v39 = vld [vmem:[#allocation3 + $0x68] sm:$0xff]  ;;  %v1193_v45 = vld [vmem:[#allocation3 + $0x70] sm:$0xff] }
 0x1e8   : > { %2910 = vmatprep.subr.bf16.mxu1 %v2909_v41  ;;  %v1064_v40 = vld [vmem:[#allocation2 + $0x68] sm:$0xff] }
 0x1e9   : > { %2613 = vmatmul.mubr.f32.gmra.mrb[2].mxu1 %v1166_v47  ;;  %2725 = vmatmul.mubr.f32.gmra.mrb[2].mxu0 %v1294_v46  ;;  %v1065_v46 = vld [vmem:[#allocation2 + $0x70] sm:$0xff] }
 0x1ea   : > { %v1234_v51 = vpop.permute.xlu1 %1233  ;;  %v1106_v52 = vpop.permute.xlu0 %1105 }
 0x1eb   : > { %v1295_v53 = vmul.f32 %v1234_v51, %v1183_v48  ;;  %v1167_v54 = vmul.f32 %v1106_v52, %v1055_v49  ;;  %2912 = vmatpush3.bf16.msra.mxu1 %v2909_v41  ;;  %v1194_v51 = vld [vmem:[#allocation3 + $0x78] sm:$0xff] }
 0x1ec   : > { %2914 = vmatprep.subr.bf16.mxu1 %v2913_v50  ;;  %v1066_v52 = vld [vmem:[#allocation2 + $0x78] sm:$0xff] }
 0x1ed   : > { %2615 = vmatprep.mubr.f32.mxu1 %v1167_v54  ;;  %2727 = vmatprep.mubr.f32.mxu0 %v1295_v53 }
 0x1ee   : > { %v1239_v57 = vpop.permute.xlu1 %1238  ;;  %v1111_v58 = vpop.permute.xlu0 %1110 }
 0x1ef   : > { %v1296_v59 = vmul.f32 %v1239_v57, %v1184_v55  ;;  %v1168_v60 = vmul.f32 %v1111_v58, %v1056_v56  ;;  %2916 = vmatpush3.bf16.msra.mxu1 %v2913_v50  ;;  %v1919_v57 = vld [vmem:[%s3773_s9 + $0x50] sm:$0xff]  ;;  %v1920_v58 = vld [vmem:[%s3773_s9 + $0x58] sm:$0xff] }
 0x1f1   : > { %2616 = vmatmul.mubr.f32.gmra.mrb[4].mxu1 %v1168_v60  ;;  %2728 = vmatmul.mubr.f32.gmra.mrb[4].mxu0 %v1296_v59  ;;  %v2917_v59 = vpack.c.bf16 %v1920_v58, %v1919_v57  ;;  %v1921_v60 = vld [vmem:[%s3773_s9 + $0x60] sm:$0xff] }
 0x1f2   : > { %v1244_v63 = vpop.permute.xlu1 %1243  ;;  %v1116_v0 = vpop.permute.xlu0 %1115 }
 0x1f3   : > { %v1297_v1 = vmul.f32 %v1244_v63, %v1185_v61  ;;  %v1169_v2 = vmul.f32 %v1116_v0, %v1057_v62  ;;  %2918 = vmatprep.subr.bf16.mxu1 %v2917_v59  ;;  %v1922_v61 = vld [vmem:[%s3773_s9 + $0x68] sm:$0xff]  ;;  %v1923_v63 = vld [vmem:[%s3773_s9 + $0x70] sm:$0xff]  ;;  %v1924_v0 = vld [vmem:[%s3773_s9 + $0x78] sm:$0xff] }
 0x1f4   : > { %2920 = vmatpush3.bf16.msra.mxu1 %v2917_v59  ;;  %v2921_v62 = vpack.c.bf16 %v1922_v61, %v1921_v60 }
 0x1f5   : > { %2618 = vmatprep.mubr.f32.mxu1 %v1169_v2  ;;  %2730 = vmatprep.mubr.f32.mxu0 %v1297_v1  ;;  %v2925_v1 = vpack.c.bf16 %v1924_v0, %v1923_v63 }
 0x1f6   : > { %v1249_v5 = vpop.permute.xlu1 %1248  ;;  %v1121_v6 = vpop.permute.xlu0 %1120  ;;  %2922 = vmatprep.subr.bf16.mxu1 %v2921_v62 }
 0x1f7   : > { %v1298_v7 = vmul.f32 %v1249_v5, %v1186_v3  ;;  %v1170_v8 = vmul.f32 %v1121_v6, %v1058_v4  ;;  %v3642_v5 = vld [vmem:[%s3806_s21] ss:$0 sm:$0xff] }
 0x1f8   : > { %2924 = vmatpush3.bf16.msra.mxu1 %v2921_v62 }
 0x1f9   : > { %2619 = vmatmul.mubr.f32.gmra.mrb[6].mxu1 %v1170_v8  ;;  %2731 = vmatmul.mubr.f32.gmra.mrb[6].mxu0 %v1298_v7 }
 0x1fa   : > { %v1254_v11 = vpop.permute.xlu1 %1253  ;;  %v1126_v12 = vpop.permute.xlu0 %1125  ;;  %2926 = vmatprep.subr.bf16.mxu1 %v2925_v1 }
 0x1fb   : > { %v1299_v13 = vmul.f32 %v1254_v11, %v1187_v9  ;;  %v1171_v14 = vmul.f32 %v1126_v12, %v1059_v10  ;;  %v1877_v12 = vld [vmem:[%s3377_s13] sm:$0xff] }
 0x1fc   : > { %2928 = vmatpush3.bf16.msra.mxu1 %v2925_v1 }
 0x1fd   : > { %2621 = vmatprep.mubr.f32.mxu1 %v1171_v14  ;;  %2733 = vmatprep.mubr.f32.mxu0 %v1299_v13  ;;  %v1878_v13 = vld [vmem:[%s3377_s13 + $0x8] sm:$0xff] }
 0x1fe   : > { %v1259_v17 = vpop.permute.xlu1 %1258  ;;  %v1131_v18 = vpop.permute.xlu0 %1130 }
 0x1ff   : > { %v1300_v19 = vmul.f32 %v1259_v17, %v1188_v15  ;;  %v1172_v20 = vmul.f32 %v1131_v18, %v1060_v16 }
 0x201   : > { %2622 = vmatmul.mubr.f32.gmra.mrb[8].mxu1 %v1172_v20  ;;  %2734 = vmatmul.mubr.f32.gmra.mrb[8].mxu0 %v1300_v19 }
 0x202   : > { %v1264_v23 = vpop.permute.xlu1 %1263  ;;  %v1136_v24 = vpop.permute.xlu0 %1135 }
 0x203   : > { %v1301_v25 = vmul.f32 %v1264_v23, %v1189_v21  ;;  %v1173_v26 = vmul.f32 %v1136_v24, %v1061_v22 }
 0x205   : > { %2624 = vmatprep.mubr.f32.mxu1 %v1173_v26  ;;  %2736 = vmatprep.mubr.f32.mxu0 %v1301_v25  ;;  %v1879_v26 = vld [vmem:[%s3377_s13 + $0x10] sm:$0xff] }
 0x206   : > { %v1269_v29 = vpop.permute.xlu1 %1268  ;;  %v1141_v30 = vpop.permute.xlu0 %1140 }
 0x207   : > { %v1302_v32 = vmul.f32 %v1269_v29, %v1190_v27  ;;  %v1174_v31 = vmul.f32 %v1141_v30, %v1062_v28  ;;  %v1880_v28 = vld [vmem:[%s3377_s13 + $0x18] sm:$0xff] }
 0x209   : > { %2625 = vmatmul.mubr.f32.gmra.mrb[10].mxu1 %v1174_v31  ;;  %2737 = vmatmul.mubr.f32.gmra.mrb[10].mxu0 %v1302_v32 }
 0x20a   : > { %v1274_v35 = vpop.permute.xlu1 %1273  ;;  %v1146_v36 = vpop.permute.xlu0 %1145 }
 0x20b   : > { %v1303_v37 = vmul.f32 %v1274_v35, %v1191_v33  ;;  %v1175_v38 = vmul.f32 %v1146_v36, %v1063_v34 }
 0x20d   : > { %2627 = vmatprep.mubr.f32.mxu1 %v1175_v38  ;;  %2739 = vmatprep.mubr.f32.mxu0 %v1303_v37 }
 0x20e   : > { %v1279_v41 = vpop.permute.xlu1 %1278  ;;  %v1151_v42 = vpop.permute.xlu0 %1150 }
 0x20f   : > { %v1304_v43 = vmul.f32 %v1279_v41, %v1192_v39  ;;  %v1176_v44 = vmul.f32 %v1151_v42, %v1064_v40  ;;  %v1881_v40 = vld [vmem:[%s3377_s13 + $0x20] sm:$0xff]  ;;  %v1882_v42 = vld [vmem:[%s3377_s13 + $0x28] sm:$0xff] }
 0x211   : > { %2628 = vmatmul.mubr.f32.gmra.mrb[12].mxu1 %v1176_v44  ;;  %2740 = vmatmul.mubr.f32.gmra.mrb[12].mxu0 %v1304_v43 }
 0x212   : > { %v1284_v47 = vpop.permute.xlu1 %1283  ;;  %v1156_v48 = vpop.permute.xlu0 %1155 }
 0x213   : > { %v1305_v49 = vmul.f32 %v1284_v47, %v1193_v45  ;;  %v1177_v50 = vmul.f32 %v1156_v48, %v1065_v46 }
 0x215   : > { %2630 = vmatprep.mubr.f32.mxu1 %v1177_v50  ;;  %2742 = vmatprep.mubr.f32.mxu0 %v1305_v49 }
 0x216   : > { %v1289_v53 = vpop.permute.xlu1 %1288  ;;  %v1161_v54 = vpop.permute.xlu0 %1160 }
 0x217   : > { %v1306_v55 = vmul.f32 %v1289_v53, %v1194_v51  ;;  %v1178_v56 = vmul.f32 %v1161_v54, %v1066_v52  ;;  %v1883_v54 = vld [vmem:[%s3377_s13 + $0x30] sm:$0xff] }
 0x219   : > { %2631 = vmatmul.mubr.f32.gmra.mrb[14].mxu1 %v1178_v56  ;;  %2743 = vmatmul.mubr.f32.gmra.mrb[14].mxu0 %v1306_v55  ;;  %v1884_v56 = vld [vmem:[%s3377_s13 + $0x38] sm:$0xff] }
 0x2b1   : > { %v2611_v2 = vpop.f32.mrb[0].mxu1 }
 0x2b2   : > { %v1437_v3 = vpop.f32.mrb[1].mxu1 }
 0x2b5   : > { %v2723_v4 = vpop.f32.mrb[0].mxu0 }
 0x2b6   : > { %v2929_v6 = vadd.f32 %v2723_v4, %v2611_v2  ;;  %v1743_v7 = vpop.f32.mrb[1].mxu0  ;;  %v1885_v4 = vld [vmem:[%s3377_s13 + $0x40] sm:$0xff] }
 0x2b7   : > { %v2930_v8 = vadd.f32 %v1743_v7, %v1437_v3  ;;  %v1886_v7 = vld [vmem:[%s3377_s13 + $0x48] sm:$0xff] }
 0x2b8   : > { %v1846_v9 = vadd.f32 %v2929_v6, %v3642_v5 }
 0x2b9   : > { %v1845_v10 = vadd.f32 %v2930_v8, %v3642_v5 }
 0x2ba   : > { %v1862_v11 = vmax.f32 %v1846_v9, 0.0 }
 0x2bb   : > { %v1861_v14 = vmax.f32 %v1845_v10, 0.0 }
 0x2bc   : > { %v2614_v15 = vpop.f32.mrb[2].mxu1  ;;  %v2726_v16 = vpop.f32.mrb[2].mxu0  ;;  %v1894_v21 = vmax.f32 %v1878_v13, %v1862_v11 }
 0x2bd   : > { %v2931_v17 = vadd.f32 %v2726_v16, %v2614_v15  ;;  %v1447_v18 = vpop.f32.mrb[3].mxu1  ;;  %v1753_v19 = vpop.f32.mrb[3].mxu0  ;;  %v1893_v20 = vmax.f32 %v1877_v12, %v1861_v14 }
 0x2be   : > { %v2932_v22 = vadd.f32 %v1753_v19, %v1447_v18  ;;  %v1887_v19 = vld [vmem:[%s3377_s13 + $0x50] sm:$0xff] }
 0x2bf   : > { %v1848_v23 = vadd.f32 %v2931_v17, %v3642_v5  ;;  %2777 = vmatprep.mubr.f32.mxu1 %v1893_v20 }
 0x2c0   : > { %v1847_v24 = vadd.f32 %v2932_v22, %v3642_v5  ;;  %2778 = vmatmul.mubr.f32.vlgmr.msra.gmra.mrb[16].mxu1 %v1894_v21  ;;  %v1888_v21 = vld [vmem:[%s3377_s13 + $0x58] sm:$0xff] }
 0x2c1   : > { %v1864_v25 = vmax.f32 %v1848_v23, 0.0 }
 0x2c2   : > { %v1863_v27 = vmax.f32 %v1847_v24, 0.0 }
 0x2c3   : > { %v1896_v35 = vmax.f32 %v1880_v28, %v1864_v25 }
 0x2c4   : > { %v2617_v29 = vpop.f32.mrb[4].mxu1  ;;  %v2729_v30 = vpop.f32.mrb[4].mxu0  ;;  %v1895_v32 = vmax.f32 %v1879_v26, %v1863_v27 }
 0x2c5   : > { %v2933_v31 = vadd.f32 %v2729_v30, %v2617_v29  ;;  %v1457_v33 = vpop.f32.mrb[5].mxu1  ;;  %v1763_v34 = vpop.f32.mrb[5].mxu0 }
 0x2c6   : > { %v2934_v36 = vadd.f32 %v1763_v34, %v1457_v33  ;;  %2780 = vmatprep.mubr.f32.mxu1 %v1895_v32  ;;  %v1889_v33 = vld [vmem:[%s3377_s13 + $0x60] sm:$0xff] }
 0x2c7   : > { %v1850_v37 = vadd.f32 %v2933_v31, %v3642_v5  ;;  %2781 = vmatmul.mubr.f32.gmra.mrb[18].mxu1 %v1896_v35  ;;  %v1890_v35 = vld [vmem:[%s3377_s13 + $0x68] sm:$0xff] }
 0x2c8   : > { %v1849_v38 = vadd.f32 %v2934_v36, %v3642_v5 }
 0x2c9   : > { %v1866_v39 = vmax.f32 %v1850_v37, 0.0 }
 0x2ca   : > { %v1865_v41 = vmax.f32 %v1849_v38, 0.0 }
 0x2cb   : > { %v1898_v49 = vmax.f32 %v1882_v42, %v1866_v39 }
 0x2cc   : > { %v2620_v43 = vpop.f32.mrb[6].mxu1  ;;  %v2732_v44 = vpop.f32.mrb[6].mxu0  ;;  %v1897_v45 = vmax.f32 %v1881_v40, %v1865_v41 }
 0x2cd   : > { %v2935_v46 = vadd.f32 %v2732_v44, %v2620_v43  ;;  %v1467_v47 = vpop.f32.mrb[7].mxu1  ;;  %v1773_v48 = vpop.f32.mrb[7].mxu0 }
 0x2ce   : > { %v2936_v50 = vadd.f32 %v1773_v48, %v1467_v47  ;;  %2783 = vmatprep.mubr.f32.mxu1 %v1897_v45  ;;  %v1891_v47 = vld [vmem:[%s3377_s13 + $0x70] sm:$0xff] }
 0x2cf   : > { %v1852_v51 = vadd.f32 %v2935_v46, %v3642_v5  ;;  %2784 = vmatmul.mubr.f32.gmra.mrb[20].mxu1 %v1898_v49  ;;  %v1892_v49 = vld [vmem:[%s3377_s13 + $0x78] sm:$0xff] }
 0x2d0   : > { %v1851_v52 = vadd.f32 %v2936_v50, %v3642_v5 }
 0x2d1   : > { %v1868_v53 = vmax.f32 %v1852_v51, 0.0 }
 0x2d2   : > { %v1867_v55 = vmax.f32 %v1851_v52, 0.0  ;;  %v2305_v52 = vld [vmem:[%s3807_s14] ss:$0 sm:$0xff] }
 0x2d3   : > { %v1900_v63 = vmax.f32 %v1884_v56, %v1868_v53 }
 0x2d4   : > { %v2623_v57 = vpop.f32.mrb[8].mxu1  ;;  %v2735_v58 = vpop.f32.mrb[8].mxu0  ;;  %v1899_v59 = vmax.f32 %v1883_v54, %v1867_v55 }
 0x2d5   : > { %v2937_v60 = vadd.f32 %v2735_v58, %v2623_v57  ;;  %v1477_v61 = vpop.f32.mrb[9].mxu1  ;;  %v1783_v62 = vpop.f32.mrb[9].mxu0 }
 0x2d6   : > { %v2938_v0 = vadd.f32 %v1783_v62, %v1477_v61  ;;  %2786 = vmatprep.mubr.f32.mxu1 %v1899_v59 }
 0x2d7   : > { %v1854_v1 = vadd.f32 %v2937_v60, %v3642_v5  ;;  %2787 = vmatmul.mubr.f32.gmra.mrb[22].mxu1 %v1900_v63 }
 0x2d8   : > { %v1853_v2 = vadd.f32 %v2938_v0, %v3642_v5 }
 0x2d9   : > { %v1870_v3 = vmax.f32 %v1854_v1, 0.0 }
 0x2da   : > { %v1869_v6 = vmax.f32 %v1853_v2, 0.0 }
 0x2db   : > { %v1902_v14 = vmax.f32 %v1886_v7, %v1870_v3 }
 0x2dc   : > { %v2626_v8 = vpop.f32.mrb[10].mxu1  ;;  %v2738_v9 = vpop.f32.mrb[10].mxu0  ;;  %v1901_v10 = vmax.f32 %v1885_v4, %v1869_v6 }
 0x2dd   : > { %v2939_v11 = vadd.f32 %v2738_v9, %v2626_v8  ;;  %v1487_v12 = vpop.f32.mrb[11].mxu1  ;;  %v1793_v13 = vpop.f32.mrb[11].mxu0 }
 0x2de   : > { %v2940_v15 = vadd.f32 %v1793_v13, %v1487_v12  ;;  %2789 = vmatprep.mubr.f32.mxu1 %v1901_v10 }
 0x2df   : > { %v1856_v16 = vadd.f32 %v2939_v11, %v3642_v5  ;;  %2790 = vmatmul.mubr.f32.gmra.mrb[24].mxu1 %v1902_v14 }
 0x2e0   : > { %v1855_v17 = vadd.f32 %v2940_v15, %v3642_v5 }
 0x2e1   : > { %v1872_v18 = vmax.f32 %v1856_v16, 0.0 }
 0x2e2   : > { %v1871_v20 = vmax.f32 %v1855_v17, 0.0 }
 0x2e3   : > { %v1904_v28 = vmax.f32 %v1888_v21, %v1872_v18 }
 0x2e4   : > { %v2629_v22 = vpop.f32.mrb[12].mxu1  ;;  %v2741_v23 = vpop.f32.mrb[12].mxu0  ;;  %v1903_v24 = vmax.f32 %v1887_v19, %v1871_v20 }
 0x2e5   : > { %v2941_v25 = vadd.f32 %v2741_v23, %v2629_v22  ;;  %v1497_v26 = vpop.f32.mrb[13].mxu1  ;;  %v1803_v27 = vpop.f32.mrb[13].mxu0 }
 0x2e6   : > { %v2942_v29 = vadd.f32 %v1803_v27, %v1497_v26  ;;  %2792 = vmatprep.mubr.f32.mxu1 %v1903_v24 }
 0x2e7   : > { %v1858_v30 = vadd.f32 %v2941_v25, %v3642_v5  ;;  %2793 = vmatmul.mubr.f32.gmra.mrb[26].mxu1 %v1904_v28 }
 0x2e8   : > { %v1857_v32 = vadd.f32 %v2942_v29, %v3642_v5 }
 0x2e9   : > { %v1874_v31 = vmax.f32 %v1858_v30, 0.0 }
 0x2ea   : > { %v1873_v34 = vmax.f32 %v1857_v32, 0.0 }
 0x2eb   : > { %v1906_v42 = vmax.f32 %v1890_v35, %v1874_v31 }
 0x2ec   : > { %v2632_v36 = vpop.f32.mrb[14].mxu1  ;;  %v2744_v37 = vpop.f32.mrb[14].mxu0  ;;  %v1905_v38 = vmax.f32 %v1889_v33, %v1873_v34 }
 0x2ed   : > { %v2943_v39 = vadd.f32 %v2744_v37, %v2632_v36  ;;  %v1507_v40 = vpop.f32.mrb[15].mxu1  ;;  %v1813_v41 = vpop.f32.mrb[15].mxu0 }
 0x2ee   : > { %v2944_v43 = vadd.f32 %v1813_v41, %v1507_v40  ;;  %2795 = vmatprep.mubr.f32.mxu1 %v1905_v38 }
 0x2ef   : > { %v1860_v44 = vadd.f32 %v2943_v39, %v3642_v5  ;;  %2796 = vmatmul.mubr.f32.gmra.mrb[28].mxu1 %v1906_v42 }
 0x2f0   : > { %v1859_v45 = vadd.f32 %v2944_v43, %v3642_v5 }
 0x2f1   : > { %v1876_v46 = vmax.f32 %v1860_v44, 0.0 }
 0x2f2   : > { %v1875_v48 = vmax.f32 %v1859_v45, 0.0 }
 0x2f3   : > { %v1908_v51 = vmax.f32 %v1892_v49, %v1876_v46 }
 0x2f4   : > { %v1907_v50 = vmax.f32 %v1891_v47, %v1875_v48 }
 0x2f6   : > { %2798 = vmatprep.mubr.f32.mxu1 %v1907_v50 }
 0x2f7   : > { %2799 = vmatmul.mubr.f32.gmra.mrb[30].mxu1 %v1908_v51 }
 0x393   : > { %v2779_v53 = vpop.f32.mrb[16].mxu1 }
 0x394   : > { %v2004_v54 = vadd.f32 %v2779_v53, %v2305_v52  ;;  %v1998_v55 = vpop.f32.mrb[17].mxu1 }
 0x395   : > { %v1999_v5 = vadd.f32 %v2305_v52, %v1998_v55 }
 0x396   : > { %2078 = vst [vmem:[%s3383_s25 + $0x8] sm:$0xff] %v2004_v54 }
 0x397   : > { %2077 = vst [vmem:[%s3383_s25] sm:$0xff] %v1999_v5 }
 0x39a   : > { %v2782_v56 = vpop.f32.mrb[18].mxu1 }
 0x39b   : > { %v2014_v57 = vadd.f32 %v2782_v56, %v2305_v52  ;;  %v2008_v58 = vpop.f32.mrb[19].mxu1 }
 0x39c   : > { %v2009_v59 = vadd.f32 %v2305_v52, %v2008_v58 }
 0x39d   : > { %2080 = vst [vmem:[%s3383_s25 + $0x18] sm:$0xff] %v2014_v57 }
 0x39e   : > { %2079 = vst [vmem:[%s3383_s25 + $0x10] sm:$0xff] %v2009_v59 }
 0x3a2   : > { %v2785_v60 = vpop.f32.mrb[20].mxu1 }
 0x3a3   : > { %v2024_v61 = vadd.f32 %v2785_v60, %v2305_v52  ;;  %v2018_v62 = vpop.f32.mrb[21].mxu1 }
 0x3a4   : > { %v2019_v63 = vadd.f32 %v2305_v52, %v2018_v62 }
 0x3a5   : > { %2082 = vst [vmem:[%s3383_s25 + $0x28] sm:$0xff] %v2024_v61 }
 0x3a6   : > { %2081 = vst [vmem:[%s3383_s25 + $0x20] sm:$0xff] %v2019_v63 }
 0x3aa   : > { %v2788_v0 = vpop.f32.mrb[22].mxu1 }
 0x3ab   : > { %v2034_v1 = vadd.f32 %v2788_v0, %v2305_v52  ;;  %v2028_v2 = vpop.f32.mrb[23].mxu1 }
 0x3ac   : > { %v2029_v3 = vadd.f32 %v2305_v52, %v2028_v2 }
 0x3ad   : > { %2084 = vst [vmem:[%s3383_s25 + $0x38] sm:$0xff] %v2034_v1 }
 0x3ae   : > { %2083 = vst [vmem:[%s3383_s25 + $0x30] sm:$0xff] %v2029_v3 }
 0x3b2   : > { %v2791_v4 = vpop.f32.mrb[24].mxu1 }
 0x3b3   : > { %v2044_v6 = vadd.f32 %v2791_v4, %v2305_v52  ;;  %v2038_v7 = vpop.f32.mrb[25].mxu1 }
 0x3b4   : > { %v2039_v8 = vadd.f32 %v2305_v52, %v2038_v7 }
 0x3b5   : > { %2086 = vst [vmem:[%s3383_s25 + $0x48] sm:$0xff] %v2044_v6 }
 0x3b6   : > { %2085 = vst [vmem:[%s3383_s25 + $0x40] sm:$0xff] %v2039_v8 }
 0x3ba   : > { %v2794_v9 = vpop.f32.mrb[26].mxu1 }
 0x3bb   : > { %v2054_v10 = vadd.f32 %v2794_v9, %v2305_v52  ;;  %v2048_v11 = vpop.f32.mrb[27].mxu1 }
 0x3bc   : > { %v2049_v12 = vadd.f32 %v2305_v52, %v2048_v11 }
 0x3bd   : > { %2088 = vst [vmem:[%s3383_s25 + $0x58] sm:$0xff] %v2054_v10 }
 0x3be   : > { %2087 = vst [vmem:[%s3383_s25 + $0x50] sm:$0xff] %v2049_v12 }
 0x3c2   : > { %v2797_v13 = vpop.f32.mrb[28].mxu1 }
 0x3c3   : > { %v2064_v14 = vadd.f32 %v2797_v13, %v2305_v52  ;;  %v2058_v15 = vpop.f32.mrb[29].mxu1 }
 0x3c4   : > { %v2059_v16 = vadd.f32 %v2305_v52, %v2058_v15 }
 0x3c5   : > { %2090 = vst [vmem:[%s3383_s25 + $0x68] sm:$0xff] %v2064_v14 }
 0x3c6   : > { %2089 = vst [vmem:[%s3383_s25 + $0x60] sm:$0xff] %v2059_v16 }
 0x3ca   : > { %v2800_v17 = vpop.f32.mrb[30].mxu1 }
 0x3cb   : > { %v2074_v18 = vadd.f32 %v2800_v17, %v2305_v52  ;;  %v2068_v19 = vpop.f32.mrb[31].mxu1 }
 0x3cc   : > { %v2069_v20 = vadd.f32 %v2305_v52, %v2068_v19 }
 0x3cd   : > { %2092 = vst [vmem:[%s3383_s25 + $0x78] sm:$0xff] %v2074_v18 }
 0x3ce   : > { %2091 = vst [vmem:[%s3383_s25 + $0x70] sm:$0xff] %v2069_v20 }
 0x3cf PF: > { %s2313_s13 = sshll.u32 %s3160_s23, 11  ;;  %s3808_s20 = sld [smem:[#allocation23_spill]] }
 0x3d0   : > { %s2107_s15 = sshll.u32 %s3383_s25, 4  ;;  %s3810_s1 = sand.u32 1, %s3140_s18   ;;  %s3702_s15 = int_to_ptr.vmem [resolvable:$true] %s2107_s15 }
 0x3d1   : > { %s3706_s30 = scalar_lea.sflag [#allocation7], %s3810_s1  ;;  %s3062_s17 = scalar_lea.vmem %s3702_s15, 2048 }
 0x3d2   : > { %p3063_p8 = scmp.ne.s32.totalorder %s3702_s15, %s3062_s17  ;;  %s3176_s23 = smov [#allocation6]  }
 0x3d3   : > { %s3066_s2 = sshll.u32 %s3176_s23, 4  ;;  %s3067_s2 = int_to_ptr.vmem [resolvable:$false] %s3066_s2 }
 0x3d4   : > { %p3064_p9 = pnand %p3063_p8, %p3311_p7  ;;  %s3068_s0 = scalar_lea.vmem %s3067_s2, 4096 }
 0x3d5   : > { %s3809_s10 = smov %s3808_s20  ;;  %s3699_s29 = scalar_lea.hbm %s3808_s20, %s2313_s13 }
 0x3d6   : > { %p3065_p10 = pneg %p3064_p9  ;;  %p3069_p11 = scmp.lt.s32.totalorder %s3702_s15, %s3067_s2 }
 0x3d7   : > { %p3070_p13 = scmp.lt.s32.totalorder %s3068_s0, %s3062_s17 }
 0x3d9   : > { %p3071_p0 = por %p3070_p13, %p3069_p11 }
 0x3db   : > { %p3072_p1 = pnand %p3071_p0, %p3065_p10 }
 0x3dd   : > { %3075 = shalt.err (!%p3072_p1)
}
 0x3de   : > { %s3076_s25 = scalar_lea.hbm %s3699_s29, 2048  ;;  %s3080_s11 = scalar_lea.hbm %s3809_s10, 4096 }
 0x3df   : > { %p3077_p2 = scmp.ne.s32.totalorder %s3699_s29, %s3076_s25  ;;  %p3081_p5 = scmp.lt.u32.totalorder %s3699_s29, %s3809_s10 }
 0x3e0   : > { %p3082_p6 = scmp.lt.u32.totalorder %s3080_s11, %s3076_s25  ;;  %p3084_p9 = scmp.lt.u32.totalorder %s3076_s25, %s3699_s29 }
 0x3e1   : > { %p3078_p3 = pnand %p3077_p2, %p3311_p7 }
 0x3e2   : > { %p3083_p8 = por %p3082_p6, %p3081_p5 }
 0x3e3   : > { %p3079_p4 = pneg %p3078_p3 }
 0x3e4   : > { %p3085_p10 = por %p3084_p9, %p3083_p8 }
 0x3e6   : > { %p3086_p11 = pnand %p3085_p10, %p3079_p4 }
 0x3e8   : > { %3089 = shalt.err (!%p3086_p11)
}
 0x3e9   : > { %s3177_s24 = smov 128   ;;  %s3178_s14 = smov 8  }
 0x3ea   : > { %2961 = dma.vmem_to_hbm [thread:$0]  (%p3311_p7), %s3702_s15, 2048, %s3699_s29, %s3706_s30, %s3177_s24, %s3177_s24, %s3178_s14  }
 0x3eb PF: > { %s3811_s13 = sld [smem:[#allocation9_spill]]  ;;  %p2967_p13 = scmp.ge.s32.totalorder %s3172_s26, 2 }
 0x3ed   : > { %p2964_p0 = pnand %p2967_p13, %p3319_p12 }
 0x3f1   : > { %s2122_s28 = sand.u32 1, %s3811_s13  }
 0x3f2   : > { %s2123_s20 = scalar_lea.sflag [#allocation7], %s2122_s28 }
 0x3f3   : > { %3131 = dma.done.wait (!%p2964_p0), %s2123_s20, 2048  }
 0x3f4   : > { %3133 = vsyncadd (!%p2964_p0), %s2123_s20, 4294965248  ;;  %s24_s26 = sadd.s32 1, %s3172_s26   ;;  %s3813_s1 = sld [smem:[#allocation16_spill]] }
 0x3f5   : > { %p21_p1 = scmp.ge.s32.totalorder %s24_s26, 6   ;;  %s3814_s20 = sld [smem:[#allocation10_spill]] }
 0x3f6   : > { %s3815_s21 = sld [smem:[#allocation17_spill]]  ;;  %s3816_s22 = sld [smem:[#allocation11_spill]] }
 0x3f7   : > { %s3817_s23 = sld [smem:[#allocation12_spill]]  ;;  %s3818_s24 = sld [smem:[#allocation13_spill]] }
 0x3f8   : > { %s3819_s25 = sld [smem:[#allocation14_spill]]  ;;  %s3820_s17 = smov %s3140_s18 }
 0x3f9   : > { %s3821_s18 = smov %s3144_s19  ;;  %23 = sbr.rel (!%p21_p1) target bundleno = 13 (0xd), region = 211 }
 0x3fa   : > { %s3822_s19 = smov %s3813_s1 }
 0x400   :  { %2128 = vsyncpa [#allocation7], 1 }
 0x401   :  { %2130 = vsyncpa [#allocation7 + $0x1], 1 }

// kernel: dirsage_forward.3
= control target key start
LH: loop header
LB: loop body
LE: loop exit
PB: predicated region body
PF: predicated region fallthrough
CT: control target
= control target key end

     0   :  { %s3539_s0 = inlined_call_operand.vmem [shape: bf16[256,128], index: 0, kind: input, shape index: {}, may-alias: {0,3}]   ;;  %s3540_s1 = inlined_call_operand.vmem [shape: s8[256,256], index: 1, kind: input, shape index: {}]   ;;  %s3541_s2 = inlined_call_operand.vmem [shape: s8[256,256], index: 2, kind: input, shape index: {}]   ;;  %s3542_s3 = inlined_call_operand.vmem [shape: bf16[256,128], index: 3, kind: input, shape index: {}, may-alias: {0,3}]   ;;  %s3543_s4 = inlined_call_operand.vmem [shape: f32[256,1], index: 4, kind: input, shape index: {}]   ;;  %s3544_s5 = inlined_call_operand.vmem [shape: f32[256,1], index: 5, kind: input, shape index: {}]   ;;  %s3545_s6 = inlined_call_operand.vmem [shape: f32[384,128], index: 6, kind: input, shape index: {}]   ;;  %s3546_s7 = inlined_call_operand.vmem [shape: f32[1,128], index: 7, kind: input, shape index: {}]   ;;  %s3547_s8 = inlined_call_operand.vmem [shape: f32[256,128], index: 8, kind: input, shape index: {}, may-alias: {8,10}]   ;;  %s3548_s9 = inlined_call_operand.vmem [shape: bf16[256,128], index: 9, kind: output, shape index: {0}]   ;;  %s3549_s10 = inlined_call_operand.vmem [shape: f32[256,128], index: 10, kind: output, shape index: {1}, may-alias: {8,10}]  }
   0x1   :  { %3553 = sst [smem:[#allocation9_spill]] %s3539_s0 }
   0x2   :  { %3554 = sst [smem:[#allocation10_spill]] %s3540_s1 }
   0x3   :  { %3555 = sst [smem:[#allocation11_spill]] %s3541_s2 }
   0x4   :  { %3556 = sst [smem:[#allocation12_spill]] %s3542_s3 }
   0x5   :  { %s3031_s13 = smov 0   ;;  %s3033_s14 = smov 0  }
   0x6   :  { %s3035_s15 = smov 0   ;;  %s3037_s16 = smov 0  }
   0x7   :  { %s3039_s17 = smov 0   ;;  %s3041_s18 = smov 0  }
   0x8   :  { %s3043_s19 = smov 0  }
   0x9 LB: > { %3557 = sst [smem:[#allocation6_spill]] %s2968_s18  ;;  %s30_s20 = sadd.s32 1, %s2964_s17  ;;  %s2972_s19 = sphi %s3043_s19, %s21_s19   ;;  %s2968_s18 = sphi %s3041_s18, %s3567_s18   ;;  %s2964_s17 = sphi %s3039_s17, %s3571_s17   ;;  %s2960_s16 = sphi %s3037_s16, %s3565_s16   ;;  %s2956_s15 = sphi %s3035_s15, %s3570_s15   ;;  %s2952_s14 = sphi %s3033_s14, %s3569_s14   ;;  %s2948_s13 = sphi %s3031_s13, %s3568_s13  }
   0xa   : > { %p31_p0 = scmp.ge.s32.totalorder %s30_s20, 2  ;;  %s33_s21 = sadd.s32 1, %s2968_s18 }
   0xb   : > { %p75_p1 = scmp.ne.s32.totalorder %s2952_s14, %s2948_s13  ;;  %p76_p2 = scmp.eq.s32.totalorder %s2972_s19, 0 }
   0xc   : > { %s3573_s20 = smov (%p31_p0, %s30_s20), 0  ;;  %s3575_s21 = smov (!%p31_p0, %s33_s21), %s2968_s18 }
   0xd   : > { %3558 = sst [smem:[#allocation7_spill]] %s3573_s20  ;;  %p3074_p3 = por %p76_p2, %p75_p1 }
   0xe   : > { %p35_p4 = scmp.ge.s32.totalorder %s3575_s21, 2  ;;  %s64_s23 = ssub.s32 %s2964_s17, %s3573_s20 }
   0xf   : > { %s68_s26 = sadd.s32 1, %s2952_s14  ;;  %p2187_p6 = scmp.ge.s32.totalorder %s2972_s19, 4 }
  0x10   : > { %s3577_s21 = smov (%p35_p4, %s3575_s21), 0 }
  0x11   : > { %3560 = sst [smem:[#allocation8_spill]] %s3577_s21  ;;  %s63_s24 = ssub.s32 %s2968_s18, %s3577_s21 }
  0x12   : > { %s65_s25 = sor.u32 %s64_s23, %s63_s24  ;;  %333 = sbr.rel (%p2187_p6) target bundleno = 49 (0x31), region = 24 }
  0x13   : > { %p66_p5 = scmp.eq.s32.totalorder %s65_s25, 0 }
  0x15   : > { %s3086_s27 = scalar_select %p66_p5, %s2952_s14, %s68_s26  }
  0x19   : > { %345 = sbr.rel (!%p3074_p3) target bundleno = 37 (0x25), region = 32  ;;  %s347_s28 = sand.u32 (%p3074_p3), 1, %s2952_s14  }
  0x1a   : > { %s2242_s29 = sshll.u32 (%p3074_p3), %s2968_s18, 3  ;;  %s2188_s30 = sshll.u32 (%p3074_p3), %s347_s28, 5 }
  0x1b   : > { %s352_s11 = sadd.s32 (%p3074_p3), %s2964_s17, %s2242_s29  ;;  %s3561_s1 = sld [smem:[#allocation10_spill]] (%p3074_p3) }
  0x1c   : > { %s2191_s12 = sshll.u32 (%p3074_p3), %s352_s11, 3  ;;  %s349_s25 = scalar_lea.vmem (%p3074_p3), [#allocation4], %s2188_s30 }
  0x21   : > { %s354_s24 = scalar_lea.vmem %s3561_s1, %s2191_s12 }
  0x22   : > { %v388_v0 = vld [vmem:[%s354_s24] sm:$0xff]  ;;  %v390_v1 = vld [vmem:[%s354_s24 + $0x10] sm:$0xff] }
  0x23   : > { %v392_v2 = vld [vmem:[%s354_s24 + $0x20] sm:$0xff]  ;;  %389 = vst [vmem:[%s349_s25] sm:$0xff] %v388_v0  ;;  %391 = vst [vmem:[%s349_s25 + $0x8] sm:$0xff] %v390_v1  ;;  %v394_v3 = vld [vmem:[%s354_s24 + $0x30] sm:$0xff] }
  0x24   : > { %393 = vst [vmem:[%s349_s25 + $0x10] sm:$0xff] %v392_v2  ;;  %395 = vst [vmem:[%s349_s25 + $0x18] sm:$0xff] %v394_v3 }
  0x25 PF: > { %401 = sbr.rel (!%p3074_p3) target bundleno = 49 (0x31), region = 70  ;;  %s403_s26 = sand.u32 (%p3074_p3), 1, %s2952_s14  }
  0x26   : > { %s2243_s28 = sshll.u32 (%p3074_p3), %s2968_s18, 3  ;;  %s2192_s21 = sshll.u32 (%p3074_p3), %s403_s26, 5 }
  0x27   : > { %s408_s29 = sadd.s32 (%p3074_p3), %s2964_s17, %s2243_s28  ;;  %s3562_s2 = sld [smem:[#allocation11_spill]] (%p3074_p3) }
  0x28   : > { %s2195_s11 = sshll.u32 (%p3074_p3), %s408_s29, 3  ;;  %s405_s24 = scalar_lea.vmem (%p3074_p3), [#allocation5], %s2192_s21 }
  0x2d   : > { %s410_s30 = scalar_lea.vmem %s3562_s2, %s2195_s11 }
  0x2e   : > { %v444_v4 = vld [vmem:[%s410_s30] sm:$0xff]  ;;  %v446_v5 = vld [vmem:[%s410_s30 + $0x10] sm:$0xff] }
  0x2f   : > { %v448_v6 = vld [vmem:[%s410_s30 + $0x20] sm:$0xff]  ;;  %445 = vst [vmem:[%s405_s24] sm:$0xff] %v444_v4  ;;  %447 = vst [vmem:[%s405_s24 + $0x8] sm:$0xff] %v446_v5  ;;  %v450_v7 = vld [vmem:[%s410_s30 + $0x30] sm:$0xff] }
  0x30   : > { %449 = vst [vmem:[%s405_s24 + $0x10] sm:$0xff] %v448_v6  ;;  %451 = vst [vmem:[%s405_s24 + $0x18] sm:$0xff] %v450_v7 }
  0x31 PF: > { %p2196_p7 = scmp.ge.s32.totalorder %s2972_s19, 1  ;;  %p492_p8 = scmp.lt.s32.totalorder %s2972_s19, 5 }
  0x33   : > { %p493_p9 = pnand %p2196_p7, %p492_p8 }
  0x34   : > { %s499_s22 = sand.u32 (!%p493_p9), 1, %s2948_s13   ;;  %s2199_s25 = sshll.u32 (!%p493_p9), %s2956_s15, 4 }
  0x35   : > { %496 = sbr.rel (%p493_p9) target bundleno = 747 (0x2eb), region = 124  ;;  %s2197_s26 = sshll.u32 (!%p493_p9), %s499_s22, 5 }
  0x36   : > { %p578_p10 = scmp.lt.s32.totalorder (!%p493_p9), %s2199_s25, 31  ;;  %s2201_s28 = sshll.u32 (!%p493_p9), %s2960_s16, 4 }
  0x37   : > { %p586_p11 = scmp.lt.s32.totalorder (!%p493_p9), %s2201_s28, 31  ;;  %s3563_s0 = sld [smem:[#allocation9_spill]] (!%p493_p9) }
  0x38   : > { %s3564_s3 = sld [smem:[#allocation12_spill]] (!%p493_p9)  ;;  %s3145_s22 = scalar_lea.vmem (!%p493_p9), [#allocation4], %s2197_s26 }
  0x39   : > { %s3147_s16 = scalar_lea.vmem (!%p493_p9), [#allocation5], %s2197_s26  ;;  %p2213_p12 = scmp.ne.s32.totalorder (!%p493_p9), %s2956_s15, 0 }
  0x3c   : > { %s3579_s25 = smov (!%p578_p10, %s2199_s25), 31  ;;  %s3581_s28 = smov (!%p586_p11, %s2201_s28), 31 }
  0x3d   : > { %s2200_s21 = sshll.u32 %s3579_s25, 2  ;;  %s2202_s23 = sshll.u32 %s3581_s28, 2  ;;  %v2974_v8 = vmov (!%p2213_p12), 0.0  }
  0x3e   : > { %s3113_s12 = scalar_lea.vmem %s3563_s0, %s2200_s21  ;;  %s2204_s30 = sshll.u32 %s3581_s28, 3  ;;  %626 = vst [vmem:[#allocation2] sm:$0xff] (!%p2213_p12), %v2974_v8  ;;  %627 = vst [vmem:[#allocation2 + $0x8] sm:$0xff] (!%p2213_p12), %v2974_v8 }
  0x3f   : > { %s3118_s2 = scalar_lea.vmem %s3564_s3, %s2202_s23  ;;  %s3123_s20 = scalar_lea.vmem %s3543_s4, %s2204_s30  ;;  %628 = vst [vmem:[#allocation2 + $0x10] sm:$0xff] (!%p2213_p12), %v2974_v8  ;;  %629 = vst [vmem:[#allocation2 + $0x18] sm:$0xff] (!%p2213_p12), %v2974_v8 }
  0x40   : > { %s3128_s18 = scalar_lea.vmem %s3544_s5, %s2204_s30  ;;  %s3133_s11 = scalar_lea.vmem %s3547_s8, %s2204_s30  ;;  %630 = vst [vmem:[#allocation2 + $0x20] sm:$0xff] (!%p2213_p12), %v2974_v8  ;;  %631 = vst [vmem:[#allocation2 + $0x28] sm:$0xff] (!%p2213_p12), %v2974_v8 }
  0x41   : > { %s3138_s1 = scalar_lea.vmem %s3548_s9, %s2202_s23  ;;  %s3143_s13 = scalar_lea.vmem %s3549_s10, %s2204_s30  ;;  %632 = vst [vmem:[#allocation2 + $0x30] sm:$0xff] (!%p2213_p12), %v2974_v8  ;;  %633 = vst [vmem:[#allocation2 + $0x38] sm:$0xff] (!%p2213_p12), %v2974_v8 }
  0x42   : > { %625 = sbr.rel (%p2213_p12) target bundleno = 78 (0x4e), region = 136  ;;  %634 = vst [vmem:[#allocation2 + $0x40] sm:$0xff] (!%p2213_p12), %v2974_v8  ;;  %635 = vst [vmem:[#allocation2 + $0x48] sm:$0xff] (!%p2213_p12), %v2974_v8 }
  0x43   : > { %636 = vst [vmem:[#allocation2 + $0x50] sm:$0xff] (!%p2213_p12), %v2974_v8  ;;  %637 = vst [vmem:[#allocation2 + $0x58] sm:$0xff] (!%p2213_p12), %v2974_v8 }
  0x44   : > { %638 = vst [vmem:[#allocation2 + $0x60] sm:$0xff] (!%p2213_p12), %v2974_v8  ;;  %639 = vst [vmem:[#allocation2 + $0x68] sm:$0xff] (!%p2213_p12), %v2974_v8 }
  0x45   : > { %640 = vst [vmem:[#allocation2 + $0x70] sm:$0xff] (!%p2213_p12), %v2974_v8  ;;  %641 = vst [vmem:[#allocation2 + $0x78] sm:$0xff] (!%p2213_p12), %v2974_v8 }
  0x46   : > { %642 = vst [vmem:[#allocation3] sm:$0xff] (!%p2213_p12), %v2974_v8  ;;  %643 = vst [vmem:[#allocation3 + $0x8] sm:$0xff] (!%p2213_p12), %v2974_v8 }
  0x47   : > { %644 = vst [vmem:[#allocation3 + $0x10] sm:$0xff] (!%p2213_p12), %v2974_v8  ;;  %645 = vst [vmem:[#allocation3 + $0x18] sm:$0xff] (!%p2213_p12), %v2974_v8 }
  0x48   : > { %646 = vst [vmem:[#allocation3 + $0x20] sm:$0xff] (!%p2213_p12), %v2974_v8  ;;  %647 = vst [vmem:[#allocation3 + $0x28] sm:$0xff] (!%p2213_p12), %v2974_v8 }
  0x49   : > { %648 = vst [vmem:[#allocation3 + $0x30] sm:$0xff] %v2974_v8  ;;  %649 = vst [vmem:[#allocation3 + $0x38] sm:$0xff] %v2974_v8 }
  0x4a   : > { %650 = vst [vmem:[#allocation3 + $0x40] sm:$0xff] %v2974_v8  ;;  %651 = vst [vmem:[#allocation3 + $0x48] sm:$0xff] %v2974_v8 }
  0x4b   : > { %652 = vst [vmem:[#allocation3 + $0x50] sm:$0xff] %v2974_v8  ;;  %653 = vst [vmem:[#allocation3 + $0x58] sm:$0xff] %v2974_v8 }
  0x4c   : > { %654 = vst [vmem:[#allocation3 + $0x60] sm:$0xff] %v2974_v8  ;;  %655 = vst [vmem:[#allocation3 + $0x68] sm:$0xff] %v2974_v8 }
  0x4d   : > { %656 = vst [vmem:[#allocation3 + $0x70] sm:$0xff] %v2974_v8  ;;  %657 = vst [vmem:[#allocation3 + $0x78] sm:$0xff] %v2974_v8 }
  0x4e PF: > { %v2908_v9 = vld [vmem:[%s3113_s12] sm:$0xff]   ;;  %v2909_v10 = vld [vmem:[%s3113_s12 + $0x8] sm:$0xff]   ;;  %v2910_v11 = vld [vmem:[%s3113_s12 + $0x10] sm:$0xff]   ;;  %p2222_p13 = scmp.ne.s32.totalorder %s2956_s15, 1 }
  0x4f   : > { %2474 = vmatprep.subr.bf16.mxu0 %v2908_v9  ;;  %2506 = vmatprep.subr.bf16.mxu1 %v2908_v9  ;;  %v2911_v12 = vld [vmem:[%s3113_s12 + $0x18] sm:$0xff]   ;;  %v674_v13 = vld [vmem:[%s3145_s22] sm:$0xff]  ;;  %v2913_v18 = vld [vmem:[%s3113_s12 + $0x28] sm:$0xff]  }
  0x50   : > { %2475 = vmatpush3.bf16.msra.mxu0 %v2908_v9  ;;  %2507 = vmatpush3.bf16.msra.mxu1 %v2908_v9  ;;  %v686_v14 = vld [vmem:[%s3147_s16] sm:$0xff]  ;;  %v678_v15 = vunpack.c.l.s8.bf16 %v674_v13  ;;  %v2914_v19 = vld [vmem:[%s3113_s12 + $0x30] sm:$0xff]   ;;  %v2915_v20 = vld [vmem:[%s3113_s12 + $0x38] sm:$0xff]   ;;  %v679_v23 = vunpack.c.h.s8.bf16 %v674_v13 }
  0x51   : > { %2476 = vmatprep.subr.bf16.mxu0 %v2909_v10  ;;  %2508 = vmatprep.subr.bf16.mxu1 %v2909_v10  ;;  %v690_v16 = vunpack.c.l.s8.bf16 %v686_v14  ;;  %v2912_v17 = vld [vmem:[%s3113_s12 + $0x20] sm:$0xff]   ;;  %v675_v21 = vld [vmem:[%s3145_s22 + $0x8] sm:$0xff]  ;;  %v691_v24 = vunpack.c.h.s8.bf16 %v686_v14  ;;  %v676_v27 = vld [vmem:[%s3145_s22 + $0x10] sm:$0xff] }
  0x52   : > { %2490 = vmatprep.mubr.bf16.mxu0 %v678_v15  ;;  %v687_v22 = vld [vmem:[%s3147_s16 + $0x8] sm:$0xff]  ;;  %v680_v25 = vunpack.c.l.s8.bf16 %v675_v21  ;;  %v688_v28 = vld [vmem:[%s3147_s16 + $0x10] sm:$0xff]  ;;  %v681_v29 = vunpack.c.h.s8.bf16 %v675_v21  ;;  %v682_v31 = vunpack.c.l.s8.bf16 %v676_v27  ;;  %v677_v33 = vld [vmem:[%s3145_s22 + $0x18] sm:$0xff]  ;;  %v683_v35 = vunpack.c.h.s8.bf16 %v676_v27 }
  0x53   : > { %2522 = vmatprep.mubr.bf16.mxu1 %v690_v16  ;;  %v692_v26 = vunpack.c.l.s8.bf16 %v687_v22  ;;  %v693_v30 = vunpack.c.h.s8.bf16 %v687_v22  ;;  %v694_v32 = vunpack.c.l.s8.bf16 %v688_v28  ;;  %v689_v34 = vld [vmem:[%s3147_s16 + $0x18] sm:$0xff]  ;;  %v695_v36 = vunpack.c.h.s8.bf16 %v688_v28  ;;  %v700_v41 = vld [vmem:[#allocation2 + $0x10] sm:$0xff]  ;;  %v698_v43 = vld [vmem:[#allocation2] sm:$0xff] }
  0x54   : > { %2477 = vmatpush3.bf16.msra.mxu0 %v2909_v10  ;;  %2509 = vmatpush3.bf16.msra.mxu1 %v2909_v10  ;;  %v684_v37 = vunpack.c.l.s8.bf16 %v677_v33  ;;  %v696_v38 = vunpack.c.l.s8.bf16 %v689_v34  ;;  %v685_v39 = vunpack.c.h.s8.bf16 %v677_v33  ;;  %v697_v40 = vunpack.c.h.s8.bf16 %v689_v34  ;;  %v893_v42 = vld [vmem:[#allocation3 + $0x10] sm:$0xff]  ;;  %v891_v44 = vld [vmem:[#allocation3] sm:$0xff]  ;;  %v701_v47 = vld [vmem:[#allocation2 + $0x18] sm:$0xff] }
  0x55   : > { %2478 = vmatprep.subr.bf16.mxu0 %v2910_v11  ;;  %2510 = vmatprep.subr.bf16.mxu1 %v2910_v11  ;;  %v894_v48 = vld [vmem:[#allocation3 + $0x18] sm:$0xff]  ;;  %v699_v53 = vld [vmem:[#allocation2 + $0x8] sm:$0xff]  ;;  %v704_v1 = vld [vmem:[#allocation2 + $0x30] sm:$0xff] }
  0x56   : > { %v892_v54 = vld [vmem:[#allocation3 + $0x8] sm:$0xff]  ;;  %v897_v2 = vld [vmem:[#allocation3 + $0x30] sm:$0xff]  ;;  %v702_v3 = vld [vmem:[#allocation2 + $0x20] sm:$0xff] }
  0x57   : > { %v895_v4 = vld [vmem:[#allocation3 + $0x20] sm:$0xff]  ;;  %v705_v7 = vld [vmem:[#allocation2 + $0x38] sm:$0xff]  ;;  %v703_v13 = vld [vmem:[#allocation2 + $0x28] sm:$0xff] }
  0x58   : > { %2479 = vmatpush3.bf16.msra.mxu0 %v2910_v11  ;;  %2511 = vmatpush3.bf16.msra.mxu1 %v2910_v11  ;;  %v898_v8 = vld [vmem:[#allocation3 + $0x38] sm:$0xff]  ;;  %v896_v14 = vld [vmem:[#allocation3 + $0x28] sm:$0xff]  ;;  %v706_v27 = vld [vmem:[#allocation2 + $0x40] sm:$0xff] }
  0x59   : > { %2480 = vmatprep.subr.bf16.mxu0 %v2911_v12  ;;  %2512 = vmatprep.subr.bf16.mxu1 %v2911_v12  ;;  %v899_v28 = vld [vmem:[#allocation3 + $0x40] sm:$0xff] }
  0x5c   : > { %2481 = vmatpush3.bf16.msra.mxu0 %v2911_v12  ;;  %2513 = vmatpush3.bf16.msra.mxu1 %v2911_v12 }
  0x5d   : > { %2482 = vmatprep.subr.bf16.mxu0 %v2912_v17  ;;  %2514 = vmatprep.subr.bf16.mxu1 %v2912_v17 }
  0x60   : > { %2483 = vmatpush3.bf16.msra.mxu0 %v2912_v17  ;;  %2515 = vmatpush3.bf16.msra.mxu1 %v2912_v17 }
  0x61   : > { %2484 = vmatprep.subr.bf16.mxu0 %v2913_v18  ;;  %2516 = vmatprep.subr.bf16.mxu1 %v2913_v18 }
  0x64   : > { %2485 = vmatpush3.bf16.msra.mxu0 %v2913_v18  ;;  %2517 = vmatpush3.bf16.msra.mxu1 %v2913_v18 }
  0x65   : > { %2486 = vmatprep.subr.bf16.mxu0 %v2914_v19  ;;  %2518 = vmatprep.subr.bf16.mxu1 %v2914_v19 }
  0x68   : > { %2487 = vmatpush3.bf16.msra.mxu0 %v2914_v19  ;;  %2519 = vmatpush3.bf16.msra.mxu1 %v2914_v19 }
  0x69   : > { %2488 = vmatprep.subr.bf16.mxu0 %v2915_v20  ;;  %2520 = vmatprep.subr.bf16.mxu1 %v2915_v20 }
  0x6c   : > { %2489 = vmatpush3.bf16.msra.mxu0 %v2915_v20  ;;  %2521 = vmatpush3.bf16.msra.mxu1 %v2915_v20 }
  0x6f   : > { %2491 = vmatmul.mubr.bf16.vlgmr.msra.gmra.mrb[0].mxu0 %v679_v23  ;;  %2523 = vmatmul.mubr.bf16.vlgmr.msra.gmra.mrb[0].mxu1 %v691_v24 }
  0x70   : > { %2494 = vmatprep.mubr.bf16.mxu0 %v680_v25  ;;  %2526 = vmatprep.mubr.bf16.mxu1 %v692_v26  ;;  %v708_v25 = vld [vmem:[#allocation2 + $0x50] sm:$0xff] }
  0x71   : > { %v901_v26 = vld [vmem:[#allocation3 + $0x50] sm:$0xff] }
  0x77   : > { %2495 = vmatmul.mubr.bf16.gmra.mrb[4].mxu0 %v681_v29  ;;  %2527 = vmatmul.mubr.bf16.gmra.mrb[4].mxu1 %v693_v30 }
  0x78   : > { %2498 = vmatprep.mubr.bf16.mxu0 %v682_v31  ;;  %2530 = vmatprep.mubr.bf16.mxu1 %v694_v32  ;;  %v709_v31 = vld [vmem:[#allocation2 + $0x58] sm:$0xff] }
  0x79   : > { %v902_v32 = vld [vmem:[#allocation3 + $0x58] sm:$0xff] }
  0x7f   : > { %2499 = vmatmul.mubr.bf16.gmra.mrb[8].mxu0 %v683_v35  ;;  %2531 = vmatmul.mubr.bf16.gmra.mrb[8].mxu1 %v695_v36 }
  0x80   : > { %2502 = vmatprep.mubr.bf16.mxu0 %v684_v37  ;;  %2534 = vmatprep.mubr.bf16.mxu1 %v696_v38  ;;  %v707_v37 = vld [vmem:[#allocation2 + $0x48] sm:$0xff] }
  0x81   : > { %v900_v38 = vld [vmem:[#allocation3 + $0x48] sm:$0xff] }
  0x87   : > { %2503 = vmatmul.mubr.bf16.gmra.mrb[12].mxu0 %v685_v39  ;;  %2535 = vmatmul.mubr.bf16.gmra.mrb[12].mxu1 %v697_v40 }
 0x142   : > { %v2492_v45 = vpop.f32.mrb[0].mxu0  ;;  %v2524_v46 = vpop.f32.mrb[0].mxu1 }
 0x143   : > { %v861_v49 = vadd.f32 %v2492_v45, %v700_v41  ;;  %v1006_v50 = vadd.f32 %v2524_v46, %v893_v42  ;;  %v796_v51 = vpop.f32.mrb[1].mxu0  ;;  %v941_v52 = vpop.f32.mrb[1].mxu1 }
 0x144   : > { %v859_v55 = vadd.f32 %v796_v51, %v698_v43  ;;  %v1004_v56 = vadd.f32 %v941_v52, %v891_v44  ;;  %v2493_v57 = vpop.f32.mrb[2].mxu0  ;;  %v2525_v58 = vpop.f32.mrb[2].mxu1  ;;  %v710_v51 = vld [vmem:[#allocation2 + $0x60] sm:$0xff] }
 0x145   : > { %877 = vst [vmem:[#allocation2 + $0x10] sm:$0xff] %v861_v49  ;;  %1022 = vst [vmem:[#allocation3 + $0x10] sm:$0xff] %v1006_v50  ;;  %v862_v59 = vadd.f32 %v2493_v57, %v701_v47  ;;  %v1007_v60 = vadd.f32 %v2525_v58, %v894_v48  ;;  %v799_v61 = vpop.f32.mrb[3].mxu0  ;;  %v944_v62 = vpop.f32.mrb[3].mxu1  ;;  %v712_v49 = vld [vmem:[#allocation2 + $0x70] sm:$0xff]  ;;  %v903_v52 = vld [vmem:[#allocation3 + $0x60] sm:$0xff] }
 0x146   : > { %875 = vst [vmem:[#allocation2] sm:$0xff] %v859_v55  ;;  %1020 = vst [vmem:[#allocation3] sm:$0xff] %v1004_v56  ;;  %v860_v63 = vadd.f32 %v799_v61, %v699_v53  ;;  %v1005_v0 = vadd.f32 %v944_v62, %v892_v54  ;;  %v905_v50 = vld [vmem:[#allocation3 + $0x70] sm:$0xff]  ;;  %v713_v55 = vld [vmem:[#allocation2 + $0x78] sm:$0xff] }
 0x147   : > { %878 = vst [vmem:[#allocation2 + $0x18] sm:$0xff] %v862_v59  ;;  %1023 = vst [vmem:[#allocation3 + $0x18] sm:$0xff] %v1007_v60  ;;  %v906_v56 = vld [vmem:[#allocation3 + $0x78] sm:$0xff]  ;;  %v711_v61 = vld [vmem:[#allocation2 + $0x68] sm:$0xff] }
 0x148   : > { %876 = vst [vmem:[#allocation2 + $0x8] sm:$0xff] %v860_v63  ;;  %1021 = vst [vmem:[#allocation3 + $0x8] sm:$0xff] %v1005_v0  ;;  %v904_v62 = vld [vmem:[#allocation3 + $0x68] sm:$0xff] }
 0x14a   : > { %v2496_v5 = vpop.f32.mrb[4].mxu0  ;;  %v2528_v6 = vpop.f32.mrb[4].mxu1 }
 0x14b   : > { %v865_v9 = vadd.f32 %v2496_v5, %v704_v1  ;;  %v1010_v10 = vadd.f32 %v2528_v6, %v897_v2  ;;  %v812_v11 = vpop.f32.mrb[5].mxu0  ;;  %v957_v12 = vpop.f32.mrb[5].mxu1 }
 0x14c   : > { %v863_v15 = vadd.f32 %v812_v11, %v702_v3  ;;  %v1008_v16 = vadd.f32 %v957_v12, %v895_v4  ;;  %v2497_v17 = vpop.f32.mrb[6].mxu0  ;;  %v2529_v18 = vpop.f32.mrb[6].mxu1  ;;  %v2975_v11 = vmov (!%p2222_p13), 0   ;;  %v1059_v12 = vld [vmem:[%s3123_s20 + $0x18] sm:$0xff] (!%p2222_p13) }
 0x14d   : > { %881 = vst [vmem:[#allocation2 + $0x30] sm:$0xff] %v865_v9  ;;  %1026 = vst [vmem:[#allocation3 + $0x30] sm:$0xff] %v1010_v10  ;;  %v866_v19 = vadd.f32 %v2497_v17, %v705_v7  ;;  %v1011_v20 = vadd.f32 %v2529_v18, %v898_v8  ;;  %v815_v21 = vpop.f32.mrb[7].mxu0  ;;  %v960_v22 = vpop.f32.mrb[7].mxu1  ;;  %v1058_v9 = vld [vmem:[%s3123_s20 + $0x10] sm:$0xff] (!%p2222_p13)  ;;  %v1056_v10 = vld [vmem:[%s3123_s20] sm:$0xff] (!%p2222_p13)  ;;  %2917 = vset.pattern.permute.xlu1 (!%p2222_p13), %v2975_v11  ;;  %2916 = vset.pattern.permute.xlu0 (!%p2222_p13), %v2975_v11 }
 0x14e   : > { %879 = vst [vmem:[#allocation2 + $0x20] sm:$0xff] %v863_v15  ;;  %1024 = vst [vmem:[#allocation3 + $0x20] sm:$0xff] %v1008_v16  ;;  %v864_v23 = vadd.f32 %v815_v21, %v703_v13  ;;  %v1009_v24 = vadd.f32 %v960_v22, %v896_v14  ;;  %1084 = vperm.xlu1 (!%p2222_p13), %2917, %v1058_v9   ;;  %1074 = vperm.xlu0 (!%p2222_p13), %2916, %v1056_v10   ;;  %v1057_v13 = vld [vmem:[%s3123_s20 + $0x8] sm:$0xff] (!%p2222_p13)  ;;  %v1060_v15 = vld [vmem:[%s3123_s20 + $0x20] sm:$0xff] (!%p2222_p13) }
 0x14f   : > { %882 = vst [vmem:[#allocation2 + $0x38] sm:$0xff] %v866_v19  ;;  %1027 = vst [vmem:[#allocation3 + $0x38] sm:$0xff] %v1011_v20  ;;  %v1061_v14 = vld [vmem:[%s3123_s20 + $0x28] sm:$0xff] (!%p2222_p13)  ;;  %v1063_v16 = vld [vmem:[%s3123_s20 + $0x38] sm:$0xff] (!%p2222_p13) }
 0x150   : > { %880 = vst [vmem:[#allocation2 + $0x28] sm:$0xff] %v864_v23  ;;  %1025 = vst [vmem:[#allocation3 + $0x28] sm:$0xff] %v1009_v24  ;;  %v1062_v17 = vld [vmem:[%s3123_s20 + $0x30] sm:$0xff] (!%p2222_p13)  ;;  %v1328_v18 = vld [vmem:[%s3545_s6] sm:$0xff] (!%p2222_p13) }
 0x151   : > { %v1329_v19 = vld [vmem:[%s3545_s6 + $0x8] sm:$0xff] (!%p2222_p13)  ;;  %v1344_v20 = vld [vmem:[%s3545_s6 + $0x80] sm:$0xff] (!%p2222_p13)  ;;  %v1330_v24 = vld [vmem:[%s3545_s6 + $0x10] sm:$0xff] (!%p2222_p13) }
 0x152   : > { %v2500_v29 = vpop.f32.mrb[8].mxu0  ;;  %v2532_v30 = vpop.f32.mrb[8].mxu1  ;;  %1089 = vperm.xlu1 (!%p2222_p13), %2917, %v1059_v12   ;;  %1079 = vperm.xlu0 (!%p2222_p13), %2916, %v1057_v13   ;;  %v1345_v21 = vld [vmem:[%s3545_s6 + $0x88] sm:$0xff] (!%p2222_p13)  ;;  %v2738_v22 = vpack.c.bf16 (!%p2222_p13), %v1329_v19, %v1328_v18  ;;  %v1343_v9 = vld [vmem:[%s3545_s6 + $0x78] sm:$0xff] (!%p2222_p13)  ;;  %v1358_v10 = vld [vmem:[%s3545_s6 + $0xf0] sm:$0xff] (!%p2222_p13) }
 0x153   : > { %v869_v33 = vadd.f32 %v2500_v29, %v708_v25  ;;  %v1014_v34 = vadd.f32 %v2532_v30, %v901_v26  ;;  %v828_v35 = vpop.f32.mrb[9].mxu0  ;;  %v973_v36 = vpop.f32.mrb[9].mxu1  ;;  %v2706_v23 = vpack.c.bf16 (!%p2222_p13), %v1345_v21, %v1344_v20  ;;  %v1331_v25 = vld [vmem:[%s3545_s6 + $0x18] sm:$0xff] (!%p2222_p13)  ;;  %v1346_v26 = vld [vmem:[%s3545_s6 + $0x90] sm:$0xff] (!%p2222_p13)  ;;  %v1332_v29 = vld [vmem:[%s3545_s6 + $0x20] sm:$0xff] (!%p2222_p13) }
 0x154   : > { %v867_v39 = vadd.f32 %v828_v35, %v706_v27  ;;  %v1012_v40 = vadd.f32 %v973_v36, %v899_v28  ;;  %v2501_v41 = vpop.f32.mrb[10].mxu0  ;;  %v2533_v42 = vpop.f32.mrb[10].mxu1  ;;  %v2742_v27 = vpack.c.bf16 (!%p2222_p13), %v1331_v25, %v1330_v24  ;;  %v1347_v28 = vld [vmem:[%s3545_s6 + $0x98] sm:$0xff] (!%p2222_p13)  ;;  %v1064_v35 = vld [vmem:[%s3123_s20 + $0x40] sm:$0xff] (!%p2222_p13)  ;;  %2739 = vmatprep.subr.bf16.mxu0 (!%p2222_p13), %v2738_v22  ;;  %v1193_v12 = vld [vmem:[%s3128_s18 + $0x48] sm:$0xff] (!%p2222_p13) }
 0x155   : > { %885 = vst [vmem:[#allocation2 + $0x50] sm:$0xff] %v869_v33  ;;  %1030 = vst [vmem:[#allocation3 + $0x50] sm:$0xff] %v1014_v34  ;;  %v870_v43 = vadd.f32 %v2501_v41, %v709_v31  ;;  %v1015_v44 = vadd.f32 %v2533_v42, %v902_v32  ;;  %v831_v45 = vpop.f32.mrb[11].mxu0  ;;  %v976_v46 = vpop.f32.mrb[11].mxu1  ;;  %v2710_v30 = vpack.c.bf16 (!%p2222_p13), %v1347_v28, %v1346_v26  ;;  %v1333_v31 = vld [vmem:[%s3545_s6 + $0x28] sm:$0xff] (!%p2222_p13)  ;;  %v1348_v32 = vld [vmem:[%s3545_s6 + $0xa0] sm:$0xff] (!%p2222_p13)  ;;  %2707 = vmatprep.subr.bf16.mxu1 (!%p2222_p13), %v2706_v23 }
 0x156   : > { %883 = vst [vmem:[#allocation2 + $0x40] sm:$0xff] %v867_v39  ;;  %1028 = vst [vmem:[#allocation3 + $0x40] sm:$0xff] %v1012_v40  ;;  %v868_v47 = vadd.f32 %v831_v45, %v707_v37  ;;  %v1013_v48 = vadd.f32 %v976_v46, %v900_v38  ;;  %1099 = vperm.xlu1 (!%p2222_p13), %2917, %v1061_v14   ;;  %1094 = vperm.xlu0 (!%p2222_p13), %2916, %v1060_v15   ;;  %v1349_v33 = vld [vmem:[%s3545_s6 + $0xa8] sm:$0xff] (!%p2222_p13)  ;;  %v1334_v38 = vld [vmem:[%s3545_s6 + $0x30] sm:$0xff] (!%p2222_p13) }
 0x157   : > { %886 = vst [vmem:[#allocation2 + $0x58] sm:$0xff] %v870_v43  ;;  %1031 = vst [vmem:[#allocation3 + $0x58] sm:$0xff] %v1015_v44  ;;  %v1065_v34 = vld [vmem:[%s3123_s20 + $0x48] sm:$0xff] (!%p2222_p13)  ;;  %2741 = vmatpush3.bf16.msra.mxu0 (!%p2222_p13), %v2738_v22  ;;  %2709 = vmatpush3.bf16.msra.mxu1 (!%p2222_p13), %v2706_v23  ;;  %v2746_v36 = vpack.c.bf16 (!%p2222_p13), %v1333_v31, %v1332_v29  ;;  %v2714_v37 = vpack.c.bf16 (!%p2222_p13), %v1349_v33, %v1348_v32  ;;  %v1335_v39 = vld [vmem:[%s3545_s6 + $0x38] sm:$0xff] (!%p2222_p13) }
 0x158   : > { %884 = vst [vmem:[#allocation2 + $0x48] sm:$0xff] %v868_v47  ;;  %1029 = vst [vmem:[#allocation3 + $0x48] sm:$0xff] %v1013_v48  ;;  %2743 = vmatprep.subr.bf16.mxu0 (!%p2222_p13), %v2742_v27  ;;  %2711 = vmatprep.subr.bf16.mxu1 (!%p2222_p13), %v2710_v30  ;;  %v1350_v40 = vld [vmem:[%s3545_s6 + $0xb0] sm:$0xff] (!%p2222_p13)  ;;  %v1351_v41 = vld [vmem:[%s3545_s6 + $0xb8] sm:$0xff] (!%p2222_p13)  ;;  %v2750_v44 = vpack.c.bf16 (!%p2222_p13), %v1335_v39, %v1334_v38 }
 0x159   : > { %v1067_v42 = vld [vmem:[%s3123_s20 + $0x58] sm:$0xff] (!%p2222_p13)  ;;  %v1066_v43 = vld [vmem:[%s3123_s20 + $0x50] sm:$0xff] (!%p2222_p13)  ;;  %v2718_v45 = vpack.c.bf16 (!%p2222_p13), %v1351_v41, %v1350_v40  ;;  %v1336_v46 = vld [vmem:[%s3545_s6 + $0x40] sm:$0xff] (!%p2222_p13) }
 0x15a   : > { %v2504_v53 = vpop.f32.mrb[12].mxu0  ;;  %v2536_v54 = vpop.f32.mrb[12].mxu1  ;;  %1039 = sbr.rel (%p2222_p13) target bundleno = 747 (0x2eb), region = 140  ;;  %1109 = vperm.xlu1 (!%p2222_p13), %2917, %v1063_v16   ;;  %1104 = vperm.xlu0 (!%p2222_p13), %2916, %v1062_v17   ;;  %v1337_v47 = vld [vmem:[%s3545_s6 + $0x48] sm:$0xff] (!%p2222_p13)  ;;  %v1352_v48 = vld [vmem:[%s3545_s6 + $0xc0] sm:$0xff] (!%p2222_p13)  ;;  %v1359_v11 = vld [vmem:[%s3545_s6 + $0xf8] sm:$0xff] (!%p2222_p13) }
 0x15b   : > { %v873_v57 = vadd.f32 %v2504_v53, %v712_v49  ;;  %v1018_v58 = vadd.f32 %v2536_v54, %v905_v50  ;;  %v844_v59 = vpop.f32.mrb[13].mxu0  ;;  %v989_v60 = vpop.f32.mrb[13].mxu1  ;;  %2745 = vmatpush3.bf16.msra.mxu0 (!%p2222_p13), %v2742_v27  ;;  %2713 = vmatpush3.bf16.msra.mxu1 (!%p2222_p13), %v2710_v30  ;;  %v1353_v49 = vld [vmem:[%s3545_s6 + $0xc8] sm:$0xff] (!%p2222_p13)  ;;  %v3240_v50 = vld [vmem:[%s3118_s2] sm:$0xff] (!%p2222_p13)   ;;  %v2754_v54 = vpack.c.bf16 (!%p2222_p13), %v1337_v47, %v1336_v46  ;;  %v1194_v18 = vld [vmem:[%s3128_s18 + $0x50] sm:$0xff] (!%p2222_p13) }
 0x15c   : > { %v871_v63 = vadd.f32 %v844_v59, %v710_v51  ;;  %v1016_v0 = vadd.f32 %v989_v60, %v903_v52  ;;  %v2505_v1 = vpop.f32.mrb[14].mxu0  ;;  %v2537_v2 = vpop.f32.mrb[14].mxu1  ;;  %2747 = vmatprep.subr.bf16.mxu0 (!%p2222_p13), %v2746_v36  ;;  %2715 = vmatprep.subr.bf16.mxu1 (!%p2222_p13), %v2714_v37  ;;  %v1069_v51 = vld [vmem:[%s3123_s20 + $0x68] sm:$0xff] (!%p2222_p13)  ;;  %v1068_v52 = vld [vmem:[%s3123_s20 + $0x60] sm:$0xff] (!%p2222_p13)  ;;  %v2262_v53 = vunpack.c.l.bf16 (!%p2222_p13), %v3240_v50  ;;  %v1355_v59 = vld [vmem:[%s3545_s6 + $0xd8] sm:$0xff] (!%p2222_p13)  ;;  %v2734_v15 = vpack.c.bf16 (!%p2222_p13), %v1359_v11, %v1358_v10 }
 0x15d   : > { %889 = vst [vmem:[#allocation2 + $0x70] sm:$0xff] %v873_v57  ;;  %1034 = vst [vmem:[#allocation3 + $0x70] sm:$0xff] %v1018_v58  ;;  %v874_v3 = vadd.f32 %v2505_v1, %v713_v55  ;;  %v1019_v4 = vadd.f32 %v2537_v2, %v906_v56  ;;  %v847_v5 = vpop.f32.mrb[15].mxu0  ;;  %v992_v6 = vpop.f32.mrb[15].mxu1  ;;  %v2722_v55 = vpack.c.bf16 (!%p2222_p13), %v1353_v49, %v1352_v48  ;;  %v1338_v56 = vld [vmem:[%s3545_s6 + $0x50] sm:$0xff] (!%p2222_p13)  ;;  %v1339_v57 = vld [vmem:[%s3545_s6 + $0x58] sm:$0xff] (!%p2222_p13)  ;;  %v2263_v26 = vunpack.c.h.bf16 (!%p2222_p13), %v3240_v50 }
 0x15e   : > { %887 = vst [vmem:[#allocation2 + $0x60] sm:$0xff] %v871_v63  ;;  %1032 = vst [vmem:[#allocation3 + $0x60] sm:$0xff] %v1016_v0  ;;  %v872_v7 = vadd.f32 %v847_v5, %v711_v61  ;;  %v1017_v8 = vadd.f32 %v992_v6, %v904_v62  ;;  %1119 = vperm.xlu1 (!%p2222_p13), %2917, %v1065_v34   ;;  %1114 = vperm.xlu0 (!%p2222_p13), %2916, %v1064_v35   ;;  %v1354_v58 = vld [vmem:[%s3545_s6 + $0xd0] sm:$0xff] (!%p2222_p13)  ;;  %v1071_v60 = vld [vmem:[%s3123_s20 + $0x78] sm:$0xff] (!%p2222_p13) }
 0x15f   : > { %890 = vst [vmem:[#allocation2 + $0x78] sm:$0xff] %v874_v3  ;;  %1035 = vst [vmem:[#allocation3 + $0x78] sm:$0xff] %v1019_v4  ;;  %2749 = vmatpush3.bf16.msra.mxu0 (!%p2222_p13), %v2746_v36  ;;  %2717 = vmatpush3.bf16.msra.mxu1 (!%p2222_p13), %v2714_v37  ;;  %v1070_v61 = vld [vmem:[%s3123_s20 + $0x70] sm:$0xff] (!%p2222_p13)  ;;  %v2758_v62 = vpack.c.bf16 (!%p2222_p13), %v1339_v57, %v1338_v56  ;;  %v2726_v63 = vpack.c.bf16 (!%p2222_p13), %v1355_v59, %v1354_v58  ;;  %v1340_v0 = vld [vmem:[%s3545_s6 + $0x60] sm:$0xff] (!%p2222_p13) }
 0x160   : > { %888 = vst [vmem:[#allocation2 + $0x68] sm:$0xff] %v872_v7  ;;  %1033 = vst [vmem:[#allocation3 + $0x68] sm:$0xff] %v1017_v8  ;;  %2751 = vmatprep.subr.bf16.mxu0 (!%p2222_p13), %v2750_v44  ;;  %2719 = vmatprep.subr.bf16.mxu1 (!%p2222_p13), %v2718_v45  ;;  %v1341_v1 = vld [vmem:[%s3545_s6 + $0x68] sm:$0xff] (!%p2222_p13)  ;;  %v1356_v2 = vld [vmem:[%s3545_s6 + $0xe0] sm:$0xff] (!%p2222_p13) }
 0x161   : > { %2626 = vmatprep.mubr.f32.mxu0 %v2262_v53  ;;  %v1357_v3 = vld [vmem:[%s3545_s6 + $0xe8] sm:$0xff]  ;;  %v1192_v4 = vld [vmem:[%s3128_s18 + $0x40] sm:$0xff]  ;;  %v2762_v6 = vpack.c.bf16 %v1341_v1, %v1340_v0  ;;  %v1342_v8 = vld [vmem:[%s3545_s6 + $0x70] sm:$0xff] }
 0x162   : > { %1129 = vperm.xlu1 %2917, %v1067_v42   ;;  %1124 = vperm.xlu0 %2916, %v1066_v43   ;;  %v1184_v5 = vld [vmem:[%s3128_s18] sm:$0xff]  ;;  %v2730_v7 = vpack.c.bf16 %v1357_v3, %v1356_v2  ;;  %v1185_v13 = vld [vmem:[%s3128_s18 + $0x8] sm:$0xff]  ;;  %v2766_v14 = vpack.c.bf16 %v1343_v9, %v1342_v8  ;;  %v1186_v19 = vld [vmem:[%s3128_s18 + $0x10] sm:$0xff] }
 0x163   : > { %2753 = vmatpush3.bf16.msra.mxu0 %v2750_v44  ;;  %2721 = vmatpush3.bf16.msra.mxu1 %v2718_v45  ;;  %v1650_v16 = vld [vmem:[%s3545_s6 + $0x100] sm:$0xff]  ;;  %v1651_v17 = vld [vmem:[%s3545_s6 + $0x108] sm:$0xff]  ;;  %v1652_v22 = vld [vmem:[%s3545_s6 + $0x110] sm:$0xff] }
 0x164   : > { %2755 = vmatprep.subr.bf16.mxu0 %v2754_v54  ;;  %2723 = vmatprep.subr.bf16.mxu1 %v2722_v55  ;;  %v3295_v20 = vpack.c.bf16 %v1651_v17, %v1650_v16  ;;  %v2332_v21 = vld [vmem:[%s3118_s2 + $0x8] sm:$0xff]   ;;  %v1653_v23 = vld [vmem:[%s3545_s6 + $0x118] sm:$0xff]  ;;  %v2333_v29 = vld [vmem:[%s3118_s2 + $0x10] sm:$0xff]  }
 0x165   : > { %v1195_v24 = vld [vmem:[%s3128_s18 + $0x58] sm:$0xff]  ;;  %v2266_v27 = vunpack.c.l.bf16 %v2332_v21  ;;  %v3309_v28 = vpack.c.bf16 %v1653_v23, %v1652_v22  ;;  %v1654_v30 = vld [vmem:[%s3545_s6 + $0x120] sm:$0xff]  ;;  %v1655_v31 = vld [vmem:[%s3545_s6 + $0x128] sm:$0xff]  ;;  %v2267_v34 = vunpack.c.h.bf16 %v2332_v21  ;;  %v2270_v35 = vunpack.c.l.bf16 %v2333_v29 }
 0x166   : > { %1139 = vperm.xlu1 %2917, %v1069_v51   ;;  %1134 = vperm.xlu0 %2916, %v1068_v52   ;;  %v1187_v25 = vld [vmem:[%s3128_s18 + $0x18] sm:$0xff]  ;;  %v1196_v32 = vld [vmem:[%s3128_s18 + $0x60] sm:$0xff]  ;;  %v3322_v36 = vpack.c.bf16 %v1655_v31, %v1654_v30  ;;  %v1656_v38 = vld [vmem:[%s3545_s6 + $0x130] sm:$0xff]  ;;  %v2271_v42 = vunpack.c.h.bf16 %v2333_v29 }
 0x167   : > { %2757 = vmatpush3.bf16.msra.mxu0 %v2754_v54  ;;  %2725 = vmatpush3.bf16.msra.mxu1 %v2722_v55  ;;  %v1188_v33 = vld [vmem:[%s3128_s18 + $0x20] sm:$0xff]  ;;  %v2334_v37 = vld [vmem:[%s3118_s2 + $0x18] sm:$0xff]   ;;  %v1197_v40 = vld [vmem:[%s3128_s18 + $0x68] sm:$0xff] }
 0x168   : > { %2759 = vmatprep.subr.bf16.mxu0 %v2758_v62  ;;  %2727 = vmatprep.subr.bf16.mxu1 %v2726_v63  ;;  %v1657_v39 = vld [vmem:[%s3545_s6 + $0x138] sm:$0xff]  ;;  %v1189_v41 = vld [vmem:[%s3128_s18 + $0x28] sm:$0xff]  ;;  %v2274_v43 = vunpack.c.l.bf16 %v2334_v37  ;;  %v2335_v45 = vld [vmem:[%s3118_s2 + $0x20] sm:$0xff]   ;;  %v2275_v50 = vunpack.c.h.bf16 %v2334_v37 }
 0x169   : > { %v3335_v44 = vpack.c.bf16 %v1657_v39, %v1656_v38  ;;  %v1658_v46 = vld [vmem:[%s3545_s6 + $0x140] sm:$0xff]  ;;  %v1659_v47 = vld [vmem:[%s3545_s6 + $0x148] sm:$0xff]  ;;  %v1198_v48 = vld [vmem:[%s3128_s18 + $0x70] sm:$0xff]  ;;  %v2278_v51 = vunpack.c.l.bf16 %v2335_v45  ;;  %v2279_v58 = vunpack.c.h.bf16 %v2335_v45 }
 0x16a   : > { %1149 = vperm.xlu1 %2917, %v1071_v60   ;;  %1144 = vperm.xlu0 %2916, %v1070_v61   ;;  %v1190_v49 = vld [vmem:[%s3128_s18 + $0x30] sm:$0xff]  ;;  %v3348_v52 = vpack.c.bf16 %v1659_v47, %v1658_v46  ;;  %v2336_v53 = vld [vmem:[%s3118_s2 + $0x28] sm:$0xff]   ;;  %v1661_v55 = vld [vmem:[%s3545_s6 + $0x158] sm:$0xff] }
 0x16b   : > { %2761 = vmatpush3.bf16.msra.mxu0 %v2758_v62  ;;  %2729 = vmatpush3.bf16.msra.mxu1 %v2726_v63  ;;  %v1660_v54 = vld [vmem:[%s3545_s6 + $0x150] sm:$0xff]  ;;  %v1199_v56 = vld [vmem:[%s3128_s18 + $0x78] sm:$0xff]  ;;  %v2282_v59 = vunpack.c.l.bf16 %v2336_v53  ;;  %v1662_v62 = vld [vmem:[%s3545_s6 + $0x160] sm:$0xff]  ;;  %v2283_v0 = vunpack.c.h.bf16 %v2336_v53 }
 0x16c   : > { %2763 = vmatprep.subr.bf16.mxu0 %v2762_v6  ;;  %2731 = vmatprep.subr.bf16.mxu1 %v2730_v7  ;;  %v1191_v57 = vld [vmem:[%s3128_s18 + $0x38] sm:$0xff]  ;;  %v3361_v60 = vpack.c.bf16 %v1661_v55, %v1660_v54  ;;  %v2337_v61 = vld [vmem:[%s3118_s2 + $0x30] sm:$0xff]   ;;  %v1663_v63 = vld [vmem:[%s3545_s6 + $0x168] sm:$0xff] }
 0x16d   : > { %v2286_v1 = vunpack.c.l.bf16 %v2337_v61  ;;  %v3372_v2 = vpack.c.bf16 %v1663_v63, %v1662_v62  ;;  %v2338_v3 = vld [vmem:[%s3118_s2 + $0x38] sm:$0xff]   ;;  %v1040_v10 = vld [vmem:[#allocation2] sm:$0xff]  ;;  %v1046_v29 = vld [vmem:[#allocation2 + $0x30] sm:$0xff] }
 0x16e   : > { %1242 = vperm.xlu1 %2917, %v1192_v4   ;;  %1202 = vperm.xlu0 %2916, %v1184_v5   ;;  %v1664_v4 = vld [vmem:[%s3545_s6 + $0x170] sm:$0xff]  ;;  %v1665_v5 = vld [vmem:[%s3545_s6 + $0x178] sm:$0xff]  ;;  %v2291_v9 = vunpack.c.h.bf16 %v2338_v3  ;;  %v1044_v22 = vld [vmem:[#allocation2 + $0x20] sm:$0xff] }
 0x16f   : > { %2765 = vmatpush3.bf16.msra.mxu0 %v2762_v6  ;;  %2733 = vmatpush3.bf16.msra.mxu1 %v2730_v7  ;;  %v2287_v6 = vunpack.c.h.bf16 %v2337_v61  ;;  %v2290_v7 = vunpack.c.l.bf16 %v2338_v3  ;;  %v3383_v8 = vpack.c.bf16 %v1665_v5, %v1664_v4  ;;  %v1043_v21 = vld [vmem:[#allocation2 + $0x18] sm:$0xff]  ;;  %v1052_v47 = vld [vmem:[#allocation2 + $0x60] sm:$0xff]  ;;  %v1054_v53 = vld [vmem:[#allocation2 + $0x70] sm:$0xff] }
 0x170   : > { %2767 = vmatprep.subr.bf16.mxu0 %v2766_v14  ;;  %2735 = vmatprep.subr.bf16.mxu1 %v2734_v15  ;;  %v1051_v46 = vld [vmem:[#allocation2 + $0x58] sm:$0xff] }
 0x172   : > { %1247 = vperm.xlu1 %2917, %v1193_v12   ;;  %1207 = vperm.xlu0 %2916, %v1185_v13  }
 0x173   : > { %2769 = vmatpush3.bf16.msra.mxu0 %v2766_v14  ;;  %2737 = vmatpush3.bf16.msra.mxu1 %v2734_v15  ;;  %v1041_v14 = vld [vmem:[#allocation2 + $0x8] sm:$0xff]  ;;  %v1042_v15 = vld [vmem:[#allocation2 + $0x10] sm:$0xff] }
 0x174   : > { %2771 = vmatprep.subr.bf16.mxu0 %v3295_v20  ;;  %2802 = vmatprep.subr.bf16.mxu1 %v3295_v20 }
 0x176   : > { %1252 = vperm.xlu1 %2917, %v1194_v18   ;;  %1212 = vperm.xlu0 %2916, %v1186_v19  }
 0x177   : > { %2627 = vmatmul.mubr.f32.vlgmr.msra.gmra.mrb[0].mxu0 %v2263_v26 }
 0x178   : > { %2773 = vmatpush3.bf16.msra.mxu0 %v3295_v20  ;;  %2629 = vmatprep.mubr.f32.mxu0 %v2266_v27  ;;  %v1045_v27 = vld [vmem:[#allocation2 + $0x28] sm:$0xff] }
 0x179   : > { %2775 = vmatprep.subr.bf16.mxu0 %v3309_v28 }
 0x17a   : > { %1257 = vperm.xlu1 %2917, %v1195_v24   ;;  %1217 = vperm.xlu0 %2916, %v1187_v25  }
 0x17b   : > { %2630 = vmatmul.mubr.f32.gmra.mrb[2].mxu0 %v2267_v34  ;;  %v1047_v34 = vld [vmem:[#allocation2 + $0x38] sm:$0xff] }
 0x17c   : > { %2777 = vmatpush3.bf16.msra.mxu0 %v3309_v28  ;;  %2632 = vmatprep.mubr.f32.mxu0 %v2270_v35  ;;  %v1048_v35 = vld [vmem:[#allocation2 + $0x40] sm:$0xff] }
 0x17d   : > { %2779 = vmatprep.subr.bf16.mxu0 %v3322_v36 }
 0x17e   : > { %1262 = vperm.xlu1 %2917, %v1196_v32   ;;  %1222 = vperm.xlu0 %2916, %v1188_v33  }
 0x17f   : > { %2633 = vmatmul.mubr.f32.gmra.mrb[4].mxu0 %v2271_v42 }
 0x180   : > { %2781 = vmatpush3.bf16.msra.mxu0 %v3322_v36  ;;  %2635 = vmatprep.mubr.f32.mxu0 %v2274_v43 }
 0x181   : > { %2783 = vmatprep.subr.bf16.mxu0 %v3335_v44 }
 0x182   : > { %1267 = vperm.xlu1 %2917, %v1197_v40   ;;  %1227 = vperm.xlu0 %2916, %v1189_v41   ;;  %v1049_v40 = vld [vmem:[#allocation2 + $0x48] sm:$0xff]  ;;  %v1050_v41 = vld [vmem:[#allocation2 + $0x50] sm:$0xff] }
 0x183   : > { %2636 = vmatmul.mubr.f32.gmra.mrb[6].mxu0 %v2275_v50 }
 0x184   : > { %2785 = vmatpush3.bf16.msra.mxu0 %v3335_v44  ;;  %2638 = vmatprep.mubr.f32.mxu0 %v2278_v51  ;;  %v1053_v51 = vld [vmem:[#allocation2 + $0x68] sm:$0xff] }
 0x185   : > { %2787 = vmatprep.subr.bf16.mxu0 %v3348_v52 }
 0x186   : > { %1272 = vperm.xlu1 %2917, %v1198_v48   ;;  %1232 = vperm.xlu0 %2916, %v1190_v49  }
 0x187   : > { %2639 = vmatmul.mubr.f32.gmra.mrb[8].mxu0 %v2279_v58  ;;  %v1176_v58 = vld [vmem:[#allocation3 + $0x40] sm:$0xff] }
 0x188   : > { %2789 = vmatpush3.bf16.msra.mxu0 %v3348_v52  ;;  %2641 = vmatprep.mubr.f32.mxu0 %v2282_v59  ;;  %v1168_v59 = vld [vmem:[#allocation3] sm:$0xff] }
 0x189   : > { %2791 = vmatprep.subr.bf16.mxu0 %v3361_v60 }
 0x18a   : > { %1277 = vperm.xlu1 %2917, %v1199_v56   ;;  %1237 = vperm.xlu0 %2916, %v1191_v57   ;;  %v1055_v57 = vld [vmem:[#allocation2 + $0x78] sm:$0xff] }
 0x18b   : > { %2642 = vmatmul.mubr.f32.gmra.mrb[10].mxu0 %v2283_v0 }
 0x18c   : > { %2793 = vmatpush3.bf16.msra.mxu0 %v3361_v60  ;;  %2644 = vmatprep.mubr.f32.mxu0 %v2286_v1  ;;  %v1177_v1 = vld [vmem:[#allocation3 + $0x48] sm:$0xff] }
 0x18d   : > { %2795 = vmatprep.subr.bf16.mxu0 %v3372_v2 }
 0x18f   : > { %2645 = vmatmul.mubr.f32.gmra.mrb[12].mxu0 %v2287_v6 }
 0x190   : > { %2797 = vmatpush3.bf16.msra.mxu0 %v3372_v2  ;;  %2647 = vmatprep.mubr.f32.mxu0 %v2290_v7  ;;  %v1178_v7 = vld [vmem:[#allocation3 + $0x50] sm:$0xff] }
 0x191   : > { %2799 = vmatprep.subr.bf16.mxu0 %v3383_v8 }
 0x193   : > { %2648 = vmatmul.mubr.f32.gmra.mrb[14].mxu0 %v2291_v9  ;;  %v1170_v9 = vld [vmem:[#allocation3 + $0x10] sm:$0xff] }
 0x194   : > { %2801 = vmatpush3.bf16.msra.mxu0 %v3383_v8 }
 0x1cd   : > { %v1085_v11 = vpop.permute.xlu1 %1084  ;;  %v1075_v12 = vpop.permute.xlu0 %1074 }
 0x1ce   : > { %v1152_v13 = vmul.f32 %v1075_v12, %v1040_v10  ;;  %v1154_v19 = vmul.f32 %v1085_v11, %v1042_v15 }
 0x1d0   : > { %2570 = vmatprep.mubr.f32.mxu1 %v1152_v13  ;;  %v1179_v13 = vld [vmem:[#allocation3 + $0x58] sm:$0xff] }
 0x1d1   : > { %v1090_v16 = vpop.permute.xlu1 %1089  ;;  %v1080_v17 = vpop.permute.xlu0 %1079 }
 0x1d2   : > { %v1153_v18 = vmul.f32 %v1080_v17, %v1041_v14  ;;  %v1155_v25 = vmul.f32 %v1090_v16, %v1043_v21  ;;  %v1171_v14 = vld [vmem:[#allocation3 + $0x18] sm:$0xff] }
 0x1d4   : > { %2571 = vmatmul.mubr.f32.vlgmr.msra.gmra.mrb[0].mxu1 %v1153_v18 }
 0x1d5   : > { %v1100_v23 = vpop.permute.xlu1 %1099  ;;  %v1095_v24 = vpop.permute.xlu0 %1094  ;;  %2573 = vmatprep.mubr.f32.mxu1 %v1154_v19  ;;  %2810 = vmatpush3.bf16.msra.mxu1 %v3295_v20  ;;  %v1172_v19 = vld [vmem:[#allocation3 + $0x20] sm:$0xff] }
 0x1d6   : > { %v1156_v26 = vmul.f32 %v1095_v24, %v1044_v22  ;;  %2803 = vmatprep.subr.bf16.mxu1 %v3309_v28  ;;  %v1157_v32 = vmul.f32 %v1100_v23, %v1045_v27 }
 0x1d8   : > { %2574 = vmatmul.mubr.f32.gmra.mrb[2].mxu1 %v1155_v25  ;;  %v1181_v25 = vld [vmem:[#allocation3 + $0x68] sm:$0xff] }
 0x1d9   : > { %v1110_v30 = vpop.permute.xlu1 %1109  ;;  %v1105_v31 = vpop.permute.xlu0 %1104  ;;  %2576 = vmatprep.mubr.f32.mxu1 %v1156_v26  ;;  %2811 = vmatpush3.bf16.msra.mxu1 %v3309_v28  ;;  %v1173_v26 = vld [vmem:[#allocation3 + $0x28] sm:$0xff] }
 0x1da   : > { %v1158_v33 = vmul.f32 %v1105_v31, %v1046_v29  ;;  %2804 = vmatprep.subr.bf16.mxu1 %v3322_v36  ;;  %v1159_v38 = vmul.f32 %v1110_v30, %v1047_v34 }
 0x1dc   : > { %2577 = vmatmul.mubr.f32.gmra.mrb[4].mxu1 %v1157_v32  ;;  %v1182_v32 = vld [vmem:[#allocation3 + $0x70] sm:$0xff] }
 0x1dd   : > { %v1120_v20 = vpop.permute.xlu1 %1119  ;;  %v1115_v37 = vpop.permute.xlu0 %1114  ;;  %2579 = vmatprep.mubr.f32.mxu1 %v1158_v33  ;;  %2812 = vmatpush3.bf16.msra.mxu1 %v3322_v36  ;;  %v1174_v33 = vld [vmem:[#allocation3 + $0x30] sm:$0xff] }
 0x1de   : > { %v1160_v39 = vmul.f32 %v1115_v37, %v1048_v35  ;;  %2805 = vmatprep.subr.bf16.mxu1 %v3335_v44  ;;  %v1161_v43 = vmul.f32 %v1120_v20, %v1049_v40 }
 0x1e0   : > { %2580 = vmatmul.mubr.f32.gmra.mrb[6].mxu1 %v1159_v38  ;;  %v1183_v38 = vld [vmem:[#allocation3 + $0x78] sm:$0xff] }
 0x1e1   : > { %v1130_v28 = vpop.permute.xlu1 %1129  ;;  %v1125_v42 = vpop.permute.xlu0 %1124  ;;  %2582 = vmatprep.mubr.f32.mxu1 %v1160_v39  ;;  %2813 = vmatpush3.bf16.msra.mxu1 %v3335_v44  ;;  %v1175_v39 = vld [vmem:[#allocation3 + $0x38] sm:$0xff] }
 0x1e2   : > { %v1162_v45 = vmul.f32 %v1125_v42, %v1050_v41  ;;  %2806 = vmatprep.subr.bf16.mxu1 %v3348_v52  ;;  %v1163_v49 = vmul.f32 %v1130_v28, %v1051_v46 }
 0x1e4   : > { %2583 = vmatmul.mubr.f32.gmra.mrb[8].mxu1 %v1161_v43 }
 0x1e5   : > { %v1140_v36 = vpop.permute.xlu1 %1139  ;;  %v1135_v48 = vpop.permute.xlu0 %1134  ;;  %2585 = vmatprep.mubr.f32.mxu1 %v1162_v45  ;;  %2814 = vmatpush3.bf16.msra.mxu1 %v3348_v52 }
 0x1e6   : > { %v1164_v50 = vmul.f32 %v1135_v48, %v1052_v47  ;;  %2807 = vmatprep.subr.bf16.mxu1 %v3361_v60  ;;  %v1165_v55 = vmul.f32 %v1140_v36, %v1053_v51 }
 0x1e8   : > { %2586 = vmatmul.mubr.f32.gmra.mrb[10].mxu1 %v1163_v49 }
 0x1e9   : > { %v1150_v44 = vpop.permute.xlu1 %1149  ;;  %v1145_v54 = vpop.permute.xlu0 %1144  ;;  %2588 = vmatprep.mubr.f32.mxu1 %v1164_v50  ;;  %2815 = vmatpush3.bf16.msra.mxu1 %v3361_v60  ;;  %v1169_v60 = vld [vmem:[#allocation3 + $0x8] sm:$0xff] }
 0x1ea   : > { %v1166_v56 = vmul.f32 %v1145_v54, %v1054_v53  ;;  %2808 = vmatprep.subr.bf16.mxu1 %v3372_v2  ;;  %v1167_v62 = vmul.f32 %v1150_v44, %v1055_v57 }
 0x1ec   : > { %2589 = vmatmul.mubr.f32.gmra.mrb[12].mxu1 %v1165_v55 }
 0x1ed   : > { %v1243_v52 = vpop.permute.xlu1 %1242  ;;  %v1203_v61 = vpop.permute.xlu0 %1202  ;;  %2591 = vmatprep.mubr.f32.mxu1 %v1166_v56  ;;  %2816 = vmatpush3.bf16.msra.mxu1 %v3372_v2 }
 0x1ee   : > { %v1288_v63 = vmul.f32 %v1243_v52, %v1176_v58  ;;  %v1280_v0 = vmul.f32 %v1203_v61, %v1168_v59  ;;  %2809 = vmatprep.subr.bf16.mxu1 %v3383_v8 }
 0x1f0   : > { %2592 = vmatmul.mubr.f32.gmra.mrb[14].mxu1 %v1167_v62  ;;  %2682 = vmatprep.mubr.f32.mxu0 %v1280_v0 }
 0x1f1   : > { %v1248_v3 = vpop.permute.xlu1 %1247  ;;  %v1208_v4 = vpop.permute.xlu0 %1207  ;;  %2817 = vmatpush3.bf16.msra.mxu1 %v3383_v8  ;;  %2694 = vmatprep.mubr.f32.mxu1 %v1288_v63  ;;  %v1180_v8 = vld [vmem:[#allocation3 + $0x60] sm:$0xff] }
 0x1f2   : > { %v1289_v5 = vmul.f32 %v1248_v3, %v1177_v1  ;;  %v1281_v6 = vmul.f32 %v1208_v4, %v1169_v60 }
 0x1f4   : > { %2683 = vmatmul.mubr.f32.vlgmr.msra.gmra.mrb[0].mxu0 %v1281_v6  ;;  %2695 = vmatmul.mubr.f32.vlgmr.msra.gmra.mrb[16].mxu1 %v1289_v5 }
 0x1f5   : > { %v1253_v2 = vpop.permute.xlu1 %1252  ;;  %v1213_v10 = vpop.permute.xlu0 %1212 }
 0x1f6   : > { %v1290_v11 = vmul.f32 %v1253_v2, %v1178_v7  ;;  %v1282_v12 = vmul.f32 %v1213_v10, %v1170_v9 }
 0x1f8   : > { %2685 = vmatprep.mubr.f32.mxu0 %v1282_v12  ;;  %2697 = vmatprep.mubr.f32.mxu1 %v1290_v11  ;;  %v3426_v12 = vld [vmem:[%s3546_s7] ss:$0 sm:$0xff] }
 0x1f9   : > { %v1258_v15 = vpop.permute.xlu1 %1257  ;;  %v1218_v16 = vpop.permute.xlu0 %1217 }
 0x1fa   : > { %v1291_v17 = vmul.f32 %v1258_v15, %v1179_v13  ;;  %v1283_v18 = vmul.f32 %v1218_v16, %v1171_v14 }
 0x1fc   : > { %2686 = vmatmul.mubr.f32.gmra.mrb[2].mxu0 %v1283_v18  ;;  %2698 = vmatmul.mubr.f32.gmra.mrb[18].mxu1 %v1291_v17  ;;  %v1867_v18 = vld [vmem:[%s3133_s11 + $0x8] sm:$0xff] }
 0x1fd   : > { %v1263_v21 = vpop.permute.xlu1 %1262  ;;  %v1223_v22 = vpop.permute.xlu0 %1222 }
 0x1fe   : > { %v1292_v23 = vmul.f32 %v1263_v21, %v1180_v8  ;;  %v1284_v24 = vmul.f32 %v1223_v22, %v1172_v19 }
 0x200   : > { %2688 = vmatprep.mubr.f32.mxu0 %v1284_v24  ;;  %2700 = vmatprep.mubr.f32.mxu1 %v1292_v23  ;;  %v1875_v23 = vld [vmem:[%s3133_s11 + $0x48] sm:$0xff]  ;;  %v1866_v24 = vld [vmem:[%s3133_s11] sm:$0xff] }
 0x201   : > { %v1268_v27 = vpop.permute.xlu1 %1267  ;;  %v1228_v29 = vpop.permute.xlu0 %1227 }
 0x202   : > { %v1293_v30 = vmul.f32 %v1268_v27, %v1181_v25  ;;  %v1285_v31 = vmul.f32 %v1228_v29, %v1173_v26  ;;  %v1874_v25 = vld [vmem:[%s3133_s11 + $0x40] sm:$0xff]  ;;  %v1869_v29 = vld [vmem:[%s3133_s11 + $0x18] sm:$0xff] }
 0x204   : > { %2689 = vmatmul.mubr.f32.gmra.mrb[4].mxu0 %v1285_v31  ;;  %2701 = vmatmul.mubr.f32.gmra.mrb[20].mxu1 %v1293_v30  ;;  %v1877_v30 = vld [vmem:[%s3133_s11 + $0x58] sm:$0xff]  ;;  %v1868_v31 = vld [vmem:[%s3133_s11 + $0x10] sm:$0xff] }
 0x205   : > { %v1273_v34 = vpop.permute.xlu1 %1272  ;;  %v1233_v35 = vpop.permute.xlu0 %1232 }
 0x206   : > { %v1294_v20 = vmul.f32 %v1273_v34, %v1182_v32  ;;  %v1286_v37 = vmul.f32 %v1233_v35, %v1174_v33  ;;  %v1876_v32 = vld [vmem:[%s3133_s11 + $0x50] sm:$0xff]  ;;  %v3441_v33 = vld [vmem:[%s3133_s11 + $0x28] sm:$0xff] }
 0x207   : > { %v3444_v34 = vld [vmem:[%s3133_s11 + $0x68] sm:$0xff] }
 0x208   : > { %2691 = vmatprep.mubr.f32.mxu0 %v1286_v37  ;;  %2703 = vmatprep.mubr.f32.mxu1 %v1294_v20  ;;  %v3447_v37 = vld [vmem:[%s3133_s11 + $0x20] sm:$0xff] }
 0x209   : > { %v1278_v40 = vpop.permute.xlu1 %1277  ;;  %v1238_v41 = vpop.permute.xlu0 %1237 }
 0x20a   : > { %v1295_v28 = vmul.f32 %v1278_v40, %v1183_v38  ;;  %v1287_v42 = vmul.f32 %v1238_v41, %v1175_v39  ;;  %v3450_v38 = vld [vmem:[%s3133_s11 + $0x60] sm:$0xff]  ;;  %v3453_v39 = vld [vmem:[%s3133_s11 + $0x38] sm:$0xff] }
 0x20c   : > { %2692 = vmatmul.mubr.f32.gmra.mrb[6].mxu0 %v1287_v42  ;;  %2704 = vmatmul.mubr.f32.gmra.mrb[22].mxu1 %v1295_v28  ;;  %v3456_v28 = vld [vmem:[%s3133_s11 + $0x78] sm:$0xff]  ;;  %v3459_v42 = vld [vmem:[%s3133_s11 + $0x30] sm:$0xff] }
 0x25a   : > { %v2640_v43 = vpop.f32.mrb[8].mxu0 }
 0x25b   : > { %v1611_v45 = vpop.f32.mrb[9].mxu0 }
 0x25e   : > { %v2643_v46 = vpop.f32.mrb[10].mxu0 }
 0x25f   : > { %v1621_v47 = vpop.f32.mrb[11].mxu0 }
 0x262   : > { %v2646_v36 = vpop.f32.mrb[12].mxu0 }
 0x263   : > { %v1631_v48 = vpop.f32.mrb[13].mxu0 }
 0x266   : > { %v2649_v49 = vpop.f32.mrb[14].mxu0 }
 0x267   : > { %v1641_v50 = vpop.f32.mrb[15].mxu0 }
 0x2a7   : > { %v2572_v51 = vpop.f32.mrb[0].mxu1 }
 0x2a8   : > { %v1426_v53 = vpop.f32.mrb[1].mxu1 }
 0x2ab   : > { %v3403_v44 = vpop.f32.mrb[2].mxu1 }
 0x2ac   : > { %v3405_v54 = vpop.f32.mrb[3].mxu1 }
 0x2af   : > { %v3407_v55 = vpop.f32.mrb[4].mxu1 }
 0x2b0   : > { %v3409_v56 = vpop.f32.mrb[5].mxu1 }
 0x2b3   : > { %v3411_v57 = vpop.f32.mrb[6].mxu1 }
 0x2b4   : > { %v3413_v58 = vpop.f32.mrb[7].mxu1 }
 0x2b7   : > { %v2584_v59 = vpop.f32.mrb[8].mxu1 }
 0x2b8   : > { %v1617_v52 = vadd.f32 %v2640_v43, %v2584_v59  ;;  %v1466_v61 = vpop.f32.mrb[9].mxu1  ;;  %v3462_v43 = vld [vmem:[%s3133_s11 + $0x70] sm:$0xff] }
 0x2b9   : > { %v1612_v62 = vadd.f32 %v1611_v45, %v1466_v61 }
 0x2bb   : > { %v2587_v63 = vpop.f32.mrb[10].mxu1 }
 0x2bc   : > { %v1627_v0 = vadd.f32 %v2643_v46, %v2587_v63  ;;  %v1476_v1 = vpop.f32.mrb[11].mxu1 }
 0x2bd   : > { %v1622_v60 = vadd.f32 %v1621_v47, %v1476_v1 }
 0x2bf   : > { %v2590_v3 = vpop.f32.mrb[12].mxu1 }
 0x2c0   : > { %v3415_v4 = vadd.f32 %v2646_v36, %v2590_v3  ;;  %v1486_v5 = vpop.f32.mrb[13].mxu1 }
 0x2c1   : > { %v3417_v6 = vadd.f32 %v1631_v48, %v1486_v5 }
 0x2c3   : > { %v2593_v7 = vpop.f32.mrb[14].mxu1 }
 0x2c4   : > { %v3419_v9 = vadd.f32 %v2649_v49, %v2593_v7  ;;  %v1496_v2 = vpop.f32.mrb[15].mxu1 }
 0x2c5   : > { %v3421_v10 = vadd.f32 %v1641_v50, %v1496_v2 }
 0x2c7   : > { %v2684_v11 = vpop.f32.mrb[0].mxu0  ;;  %v2696_v13 = vpop.f32.mrb[16].mxu1 }
 0x2c8   : > { %v2818_v14 = vadd.f32 %v2684_v11, %v2572_v51  ;;  %v1820_v15 = vadd.f32 %v2696_v13, %v1617_v52  ;;  %v1732_v16 = vpop.f32.mrb[1].mxu0  ;;  %v1772_v17 = vpop.f32.mrb[17].mxu1 }
 0x2c9   : > { %v2819_v8 = vadd.f32 %v1732_v16, %v1426_v53  ;;  %v1819_v19 = vadd.f32 %v1772_v17, %v1612_v62 }
 0x2ca   : > { %v1835_v21 = vadd.f32 %v2818_v14, %v3426_v12  ;;  %v1843_v22 = vadd.f32 %v3426_v12, %v1820_v15 }
 0x2cb   : > { %v1834_v26 = vadd.f32 %v2819_v8, %v3426_v12  ;;  %v1842_v27 = vadd.f32 %v3426_v12, %v1819_v19 }
 0x2cc   : > { %v1851_v35 = vmax.f32 %v1835_v21, 0.0  ;;  %v1859_v20 = vmax.f32 %v1843_v22, 0.0 }
 0x2cd   : > { %v1850_v40 = vmax.f32 %v1834_v26, 0.0  ;;  %v1858_v41 = vmax.f32 %v1842_v27, 0.0 }
 0x2ce   : > { %v1883_v45 = vmax.f32 %v1867_v18, %v1851_v35  ;;  %v1891_v46 = vmax.f32 %v1875_v23, %v1859_v20 }
 0x2cf   : > { %v1882_v47 = vmax.f32 %v1866_v24, %v1850_v40  ;;  %v2295_v36 = vpack.c.bf16 %v1851_v35, %v1850_v40  ;;  %v1890_v48 = vmax.f32 %v1874_v25, %v1858_v41  ;;  %v2315_v49 = vpack.c.bf16 %v1859_v20, %v1858_v41  ;;  %v2687_v50 = vpop.f32.mrb[2].mxu0  ;;  %v2699_v51 = vpop.f32.mrb[18].mxu1 }
 0x2d0   : > { %v2820_v53 = vadd.f32 %v2687_v50, %v3403_v44  ;;  %v1822_v59 = vadd.f32 %v2699_v51, %v1627_v0  ;;  %v1742_v52 = vpop.f32.mrb[3].mxu0  ;;  %v1782_v61 = vpop.f32.mrb[19].mxu1  ;;  %1979 = vst [vmem:[%s3143_s13 + $0x8] sm:$0xff] %v1883_v45  ;;  %1987 = vst [vmem:[%s3143_s13 + $0x48] sm:$0xff] %v1891_v46 }
 0x2d1   : > { %2296 = vst [vmem:[%s3138_s1] sm:$0xff] %v2295_v36   ;;  %2342 = vst [vmem:[%s3138_s1 + $0x20] sm:$0xff] %v2315_v49   ;;  %v2821_v62 = vadd.f32 %v1742_v52, %v3405_v54  ;;  %v1821_v63 = vadd.f32 %v1782_v61, %v1622_v60 }
 0x2d2   : > { %1978 = vst [vmem:[%s3143_s13] sm:$0xff] %v1882_v47  ;;  %1986 = vst [vmem:[%s3143_s13 + $0x40] sm:$0xff] %v1890_v48  ;;  %v1837_v1 = vadd.f32 %v2820_v53, %v3426_v12  ;;  %v1845_v3 = vadd.f32 %v3426_v12, %v1822_v59 }
 0x2d3   : > { %v1836_v5 = vadd.f32 %v2821_v62, %v3426_v12  ;;  %v1844_v44 = vadd.f32 %v3426_v12, %v1821_v63 }
 0x2d4   : > { %v1853_v0 = vmax.f32 %v1837_v1, 0.0  ;;  %v1861_v7 = vmax.f32 %v1845_v3, 0.0 }
 0x2d5   : > { %v1852_v2 = vmax.f32 %v1836_v5, 0.0  ;;  %v1860_v11 = vmax.f32 %v1844_v44, 0.0 }
 0x2d6   : > { %v1885_v54 = vmax.f32 %v1869_v29, %v1853_v0  ;;  %v1893_v60 = vmax.f32 %v1877_v30, %v1861_v7 }
 0x2d7   : > { %v1884_v13 = vmax.f32 %v1868_v31, %v1852_v2  ;;  %v2300_v14 = vpack.c.bf16 %v1853_v0, %v1852_v2  ;;  %v1892_v15 = vmax.f32 %v1876_v32, %v1860_v11  ;;  %v2320_v16 = vpack.c.bf16 %v1861_v7, %v1860_v11  ;;  %v2690_v17 = vpop.f32.mrb[4].mxu0  ;;  %v2702_v18 = vpop.f32.mrb[20].mxu1 }
 0x2d8   : > { %v2822_v8 = vadd.f32 %v2690_v17, %v3407_v55  ;;  %v1824_v19 = vadd.f32 %v2702_v18, %v3415_v4  ;;  %v1752_v21 = vpop.f32.mrb[5].mxu0  ;;  %v1792_v22 = vpop.f32.mrb[21].mxu1  ;;  %1981 = vst [vmem:[%s3143_s13 + $0x18] sm:$0xff] %v1885_v54  ;;  %1989 = vst [vmem:[%s3143_s13 + $0x58] sm:$0xff] %v1893_v60 }
 0x2d9   : > { %2339 = vst [vmem:[%s3138_s1 + $0x8] sm:$0xff] %v2300_v14   ;;  %2343 = vst [vmem:[%s3138_s1 + $0x28] sm:$0xff] %v2320_v16   ;;  %v2823_v23 = vadd.f32 %v1752_v21, %v3409_v56  ;;  %v1823_v24 = vadd.f32 %v1792_v22, %v3417_v6 }
 0x2da   : > { %1980 = vst [vmem:[%s3143_s13 + $0x10] sm:$0xff] %v1884_v13  ;;  %1988 = vst [vmem:[%s3143_s13 + $0x50] sm:$0xff] %v1892_v15  ;;  %v1839_v25 = vadd.f32 %v2822_v8, %v3426_v12  ;;  %v1847_v26 = vadd.f32 %v3426_v12, %v1824_v19 }
 0x2db   : > { %v1838_v55 = vadd.f32 %v2823_v23, %v3426_v12  ;;  %v1846_v4 = vadd.f32 %v3426_v12, %v1823_v24 }
 0x2dc   : > { %v1855_v27 = vmax.f32 %v1839_v25, 0.0  ;;  %v1863_v29 = vmax.f32 %v1847_v26, 0.0 }
 0x2dd   : > { %v1854_v30 = vmax.f32 %v1838_v55, 0.0  ;;  %v1862_v31 = vmax.f32 %v1846_v4, 0.0 }
 0x2de   : > { %v1887_v56 = vmax.f32 %v3441_v33, %v1855_v27  ;;  %v1895_v6 = vmax.f32 %v3444_v34, %v1863_v29 }
 0x2df   : > { %v1886_v32 = vmax.f32 %v3447_v37, %v1854_v30  ;;  %v2305_v35 = vpack.c.bf16 %v1855_v27, %v1854_v30  ;;  %v1894_v20 = vmax.f32 %v3450_v38, %v1862_v31  ;;  %v2325_v40 = vpack.c.bf16 %v1863_v29, %v1862_v31  ;;  %v2693_v41 = vpop.f32.mrb[6].mxu0  ;;  %v2705_v45 = vpop.f32.mrb[22].mxu1 }
 0x2e0   : > { %v2824_v46 = vadd.f32 %v2693_v41, %v3411_v57  ;;  %v1826_v47 = vadd.f32 %v2705_v45, %v3419_v9  ;;  %v1762_v36 = vpop.f32.mrb[7].mxu0  ;;  %v1802_v48 = vpop.f32.mrb[23].mxu1  ;;  %1983 = vst [vmem:[%s3143_s13 + $0x28] sm:$0xff] %v1887_v56  ;;  %1991 = vst [vmem:[%s3143_s13 + $0x68] sm:$0xff] %v1895_v6 }
 0x2e1   : > { %2340 = vst [vmem:[%s3138_s1 + $0x10] sm:$0xff] %v2305_v35   ;;  %2344 = vst [vmem:[%s3138_s1 + $0x30] sm:$0xff] %v2325_v40   ;;  %v2825_v33 = vadd.f32 %v1762_v36, %v3413_v58  ;;  %v1825_v34 = vadd.f32 %v1802_v48, %v3421_v10 }
 0x2e2   : > { %1982 = vst [vmem:[%s3143_s13 + $0x20] sm:$0xff] %v1886_v32  ;;  %1990 = vst [vmem:[%s3143_s13 + $0x60] sm:$0xff] %v1894_v20  ;;  %v1841_v37 = vadd.f32 %v2824_v46, %v3426_v12  ;;  %v1849_v57 = vadd.f32 %v3426_v12, %v1826_v47 }
 0x2e3   : > { %v1840_v9 = vadd.f32 %v2825_v33, %v3426_v12  ;;  %v1848_v38 = vadd.f32 %v3426_v12, %v1825_v34 }
 0x2e4   : > { %v1857_v49 = vmax.f32 %v1841_v37, 0.0  ;;  %v1865_v58 = vmax.f32 %v1849_v57, 0.0 }
 0x2e5   : > { %v1856_v50 = vmax.f32 %v1840_v9, 0.0  ;;  %v1864_v10 = vmax.f32 %v1848_v38, 0.0 }
 0x2e6   : > { %v1889_v51 = vmax.f32 %v3453_v39, %v1857_v49  ;;  %v1897_v53 = vmax.f32 %v3456_v28, %v1865_v58 }
 0x2e7   : > { %v1888_v59 = vmax.f32 %v3459_v42, %v1856_v50  ;;  %v2310_v52 = vpack.c.bf16 %v1857_v49, %v1856_v50  ;;  %v1896_v61 = vmax.f32 %v3462_v43, %v1864_v10  ;;  %v2330_v62 = vpack.c.bf16 %v1865_v58, %v1864_v10 }
 0x2e8   : > { %1985 = vst [vmem:[%s3143_s13 + $0x38] sm:$0xff] %v1889_v51  ;;  %1993 = vst [vmem:[%s3143_s13 + $0x78] sm:$0xff] %v1897_v53 }
 0x2e9   : > { %2341 = vst [vmem:[%s3138_s1 + $0x18] sm:$0xff] %v2310_v52   ;;  %2345 = vst [vmem:[%s3138_s1 + $0x38] sm:$0xff] %v2330_v62  }
 0x2ea   : > { %1984 = vst [vmem:[%s3143_s13 + $0x30] sm:$0xff] %v1888_v59  ;;  %1992 = vst [vmem:[%s3143_s13 + $0x70] sm:$0xff] %v1896_v61 }
 0x2eb PF: > { %s21_s19 = sadd.s32 1, %s2972_s19   ;;  %s3565_s16 = sld [smem:[#allocation6_spill]] }
 0x2ec   : > { %p18_p0 = scmp.ge.s32.totalorder %s21_s19, 6   ;;  %s3566_s11 = sld [smem:[#allocation7_spill]] }
 0x2ed   : > { %s3567_s18 = sld [smem:[#allocation8_spill]]  ;;  %s3568_s13 = smov %s2952_s14 }
 0x2ee   : > { %s3569_s14 = smov %s3086_s27  ;;  %s3570_s15 = smov %s2964_s17 }
 0x2ef   :  { %20 = sbr.rel (!%p18_p0) target bundleno = 9 (0x9), region = 210 }
 0x2f2   : > { %s3571_s17 = smov %s3566_s11 }

</bundles_post_ra>
